<compile_context>
chip_gen: v7x
topology: tpu7x:2x2x1
jax: 0.10.0
libtpu: 0.0.40
codegen_flags: <defaults>
</compile_context>

<pallas_src>
import functools
import numpy as np
import jax
import jax.numpy as jnp
from jax import lax
from jax.experimental import pallas as pl
from jax.experimental.pallas import tpu as pltpu

_LOG10_INV = float(1.0 / np.log(10.0))
_LANE = 128


def _round_up(x, m):
    return (x + m - 1) // m * m


# ---------------- deterministic parameter construction (glue) ----------------

def _hann_window(win_length, n_fft):
    # scipy.signal.get_window('hann', win_length, fftbins=True), centered in n_fft
    n = np.arange(win_length)
    w = 0.5 - 0.5 * np.cos(2.0 * np.pi * n / win_length)
    lpad = (n_fft - win_length) // 2
    return np.pad(w, (lpad, n_fft - win_length - lpad)).astype(np.float64)


def _rdft_matrices(n_fft):
    n_freq = n_fft // 2 + 1
    n = np.arange(n_fft)[:, None].astype(np.float64)
    k = np.arange(n_freq)[None, :].astype(np.float64)
    ang = 2.0 * np.pi * n * k / n_fft
    return np.cos(ang), -np.sin(ang)


def _hz_to_mel(f):
    f = np.asarray(f, dtype=np.float64)
    f_sp = 200.0 / 3
    mels = f / f_sp
    min_log_hz = 1000.0
    min_log_mel = min_log_hz / f_sp
    logstep = np.log(6.4) / 27.0
    return np.where(f >= min_log_hz,
                    min_log_mel + np.log(np.maximum(f, 1e-10) / min_log_hz) / logstep,
                    mels)


def _mel_to_hz(m):
    m = np.asarray(m, dtype=np.float64)
    f_sp = 200.0 / 3
    freqs = m * f_sp
    min_log_hz = 1000.0
    min_log_mel = min_log_hz / f_sp
    logstep = np.log(6.4) / 27.0
    return np.where(m >= min_log_mel,
                    min_log_hz * np.exp(logstep * (m - min_log_mel)),
                    freqs)


def _mel_filterbank(sr, n_fft, n_mels):
    # librosa.filters.mel: slaney scale, slaney norm, fmin=0, fmax=sr/2
    n_freq = n_fft // 2 + 1
    fftfreqs = np.linspace(0.0, sr / 2.0, n_freq)
    mel_f = _mel_to_hz(np.linspace(_hz_to_mel(0.0), _hz_to_mel(sr / 2.0), n_mels + 2))
    fdiff = np.diff(mel_f)
    ramps = mel_f[:, None] - fftfreqs[None, :]
    lower = -ramps[:-2] / fdiff[:-1, None]
    upper = ramps[2:] / fdiff[1:, None]
    weights = np.maximum(0.0, np.minimum(lower, upper))
    enorm = 2.0 / (mel_f[2:n_mels + 2] - mel_f[:n_mels])
    weights *= enorm[:, None]
    return weights.astype(np.float64)  # (n_mels, n_freq)


# --------------------------------- kernels -----------------------------------

def _mel_tile_kernel(frames_ref, dft_ref, melfb_ref, out_ref, *, f_pad):
    # one wide MXU matmul -> [Re | Im] in f32
    reim = jnp.dot(frames_ref[...], dft_ref[...],
                   preferred_element_type=jnp.float32)
    re = reim[:, :f_pad]
    im = reim[:, f_pad:]
    power = re * re + im * im                           # |STFT|^2 (padded bins are 0)
    mel = jnp.dot(power.astype(melfb_ref.dtype), melfb_ref[...],
                  preferred_element_type=jnp.float32)   # zero-padded melfb rows inert
    # un-clamped dB (librosa power_to_db core); clamp + normalize in pass 2
    out_ref[...] = (10.0 * _LOG10_INV) * jnp.log(jnp.maximum(mel, 1e-10))


def _stft_tile_kernel(frames_ref, dft_ref, out_ref, *, f_pad, n_freq):
    reim = jnp.dot(frames_ref[...], dft_ref[...],
                   preferred_element_type=jnp.float32)
    re = reim[:, :f_pad]
    im = reim[:, f_pad:]
    power = re * re + im * im
    # 20*log10(max(|S|,1e-5)) == 10*log10(max(|S|^2,1e-10)) -> no sqrt needed.
    log_spec = (10.0 * _LOG10_INV) * jnp.log(jnp.maximum(power, 1e-10))
    # Padded freq lanes get an in-range value (the row's DC bin) so they cannot
    # win the global min/max reductions in pass 2; they are sliced off later.
    lane = lax.broadcasted_iota(jnp.int32, log_spec.shape, 1)
    out_ref[...] = jnp.where(lane < n_freq, log_spec, log_spec[:, :1])


# --------------------------------- wrapper ------------------------------------

@functools.partial(
    jax.jit,
    static_argnames=("mel", "sr", "win_length", "hopsize", "n_fft", "n_mels",
                     "compute_dtype"))
def librosa_spec(y, *, mel=True, sr=32000.0, win_length=800, hopsize=320,
                 n_fft=1024, n_mels=128, compute_dtype=jnp.bfloat16):
    y = jnp.asarray(y)
    squeeze = (y.ndim == 1)
    if squeeze:
        y = y[None, :]
    B, n = y.shape

    n_freq = n_fft // 2 + 1
    f_pad = _round_up(n_freq, _LANE)          # 513 -> 640, lane-dense
    n_out = n_mels if mel else f_pad

    # --- framing (librosa.stft: center=True, pad_mode='constant') -----------
    pad = n_fft // 2
    y_pad = jnp.pad(y.astype(compute_dtype), ((0, 0), (pad, pad)))
    n_frames = 1 + n // hopsize
    idx = np.arange(n_frames)[:, None] * hopsize + np.arange(n_fft)[None, :]
    frames = y_pad[:, idx].reshape(B * n_frames, n_fft)

    BT = B * n_frames
    tile_bt = 256
    if BT < tile_bt:
        tile_bt = max(32, _round_up(BT, 32))
    bt_pad = _round_up(BT, tile_bt)
    if bt_pad != BT:
        frames = jnp.pad(frames, ((0, bt_pad - BT), (0, 0)))

    # --- windowed real-DFT matrix: [win*cos | -win*sin], freq padded to 640 --
    win = _hann_window(win_length, n_fft)
    cos_m, sin_m = _rdft_matrices(n_fft)
    dft_np = np.zeros((n_fft, 2 * f_pad), np.float32)
    dft_np[:, :n_freq] = win[:, None] * cos_m
    dft_np[:, f_pad:f_pad + n_freq] = win[:, None] * sin_m
    dft = jnp.asarray(dft_np, dtype=compute_dtype)

    cp = pltpu.CompilerParams(
        dimension_semantics=("parallel",),
        vmem_limit_bytes=48 << 20,            # valid on v5e/v6e/v7x (64 MiB phys)
    )
    grid = (bt_pad // tile_bt,)
    frames_spec = pl.BlockSpec((tile_bt, n_fft), lambda i: (i, 0))
    dft_spec = pl.BlockSpec((n_fft, 2 * f_pad), lambda i: (0, 0))   # resident
    out_spec = pl.BlockSpec((tile_bt, n_out), lambda i: (i, 0))

    if mel:
        melfb_np = np.zeros((f_pad, n_mels), np.float32)
        melfb_np[:n_freq, :] = _mel_filterbank(sr, n_fft, n_mels).T
        melfb = jnp.asarray(melfb_np, dtype=compute_dtype)
        log_spec = pl.pallas_call(
            functools.partial(_mel_tile_kernel, f_pad=f_pad),
            out_shape=jax.ShapeDtypeStruct((bt_pad, n_out), jnp.float32),
            grid=grid,
            in_specs=[frames_spec, dft_spec,
                      pl.BlockSpec((f_pad, n_mels), lambda i: (0, 0))],
            out_specs=out_spec,
            compiler_params=cp,
        )(frames, dft, melfb)
    else:
        log_spec = pl.pallas_call(
            functools.partial(_stft_tile_kernel, f_pad=f_pad, n_freq=n_freq),
            out_shape=jax.ShapeDtypeStruct((bt_pad, n_out), jnp.float32),
            grid=grid,
            in_specs=[frames_spec, dft_spec],
            out_specs=out_spec,
            compiler_params=cp,
        )(frames, dft)

    # --- pass 2 (tiny, memory-bound): top_db clamp + global min-max normalize.
    # For amplitude_to_db(ref=np.max) the constant ref subtraction cancels under
    # min-max normalization, so both paths share this epilogue.
    L = log_spec[:BT]                         # drop zero-padded frame rows
    mx = jnp.max(L)
    floor = mx - 80.0                         # top_db = 80
    mn = jnp.maximum(jnp.min(L), floor)
    out = (jnp.maximum(L, floor) - mn) / (mx - mn)

    out = out.reshape(B, n_frames, n_out).transpose(0, 2, 1)   # (B, F, T)
    if not mel:
        out = out[:, :n_freq, :]              # strip padded frequency bins
    if squeeze:
        out = out[0]
    return out


if __name__ == "__main__":
    key = jax.random.PRNGKey(0)
    # batch=2, 3200 samples -> 11 frames with hop=320 (center padded)
    y = jax.random.normal(key, (2, 3200), dtype=jnp.float32)

    out_mel = jax.block_until_ready(librosa_spec(y, mel=True))
    out_stft = jax.block_until_ready(librosa_spec(y, mel=False))

    assert out_mel.shape == (2, 128, 11), out_mel.shape
    assert out_stft.shape == (2, 513, 11), out_stft.shape
    assert out_mel.dtype == jnp.float32 and out_stft.dtype == jnp.float32
    assert bool(jnp.isfinite(out_mel).all()) and bool(jnp.isfinite(out_stft).all())
    print("KERNEL_OK")
</pallas_src>

<mosaic_0001>
module attributes {stable_mosaic.version = 11 : i64} {
  func.func @_mel_tile_kernel(%arg0: i32, %arg1: memref<32x1024xbf16, #tpu.memory_space<vmem>>, %arg2: memref<1024x1280xbf16, #tpu.memory_space<vmem>>, %arg3: memref<640x128xbf16, #tpu.memory_space<vmem>>, %arg4: memref<32x128xf32, #tpu.memory_space<vmem>>) attributes {dimension_semantics = [#tpu.dimension_semantics<parallel>], iteration_bounds = array<i64: 1>, scalar_prefetch = 0 : i64, scratch_operands = 0 : i64, tpu.core_type = #tpu.core_type<tc>, window_params = [{transform_indices = @transform_0, window_bounds = array<i64: 32, 1024>}, {pipeline_mode = #tpu.pipeline_mode<synchronous>, transform_indices = @transform_1, window_bounds = array<i64: 1024, 1280>}, {pipeline_mode = #tpu.pipeline_mode<synchronous>, transform_indices = @transform_2, window_bounds = array<i64: 640, 128>}, {transform_indices = @transform_3, window_bounds = array<i64: 32, 128>}]} {
    %c0 = arith.constant 0 : index
    %c0_0 = arith.constant 0 : index
    %0 = vector.load %arg1[%c0, %c0_0] : memref<32x1024xbf16, #tpu.memory_space<vmem>>, vector<32x1024xbf16>
    %c0_1 = arith.constant 0 : index
    %c0_2 = arith.constant 0 : index
    %1 = vector.load %arg2[%c0_1, %c0_2] : memref<1024x1280xbf16, #tpu.memory_space<vmem>>, vector<1024x1280xbf16>
    %cst = arith.constant dense<0.000000e+00> : vector<32x1280xf32>
    %2 = tpu.matmul %0, %1, %cst {dimension_numbers = #tpu.dot_dimension_numbers<[1], [0], [0], [1], [0, 0, 1, 1], [], []>} : vector<32x1024xbf16>, vector<1024x1280xbf16>, vector<32x1280xf32> -> vector<32x1280xf32>
    %3 = vector.extract_strided_slice %2 {offsets = [0, 0], sizes = [32, 640], strides = [1, 1]} : vector<32x1280xf32> to vector<32x640xf32>
    %4 = vector.extract_strided_slice %2 {offsets = [0, 640], sizes = [32, 640], strides = [1, 1]} : vector<32x1280xf32> to vector<32x640xf32>
    %5 = arith.mulf %3, %3 : vector<32x640xf32>
    %6 = arith.mulf %4, %4 : vector<32x640xf32>
    %7 = arith.addf %5, %6 : vector<32x640xf32>
    %8 = arith.truncf %7 : vector<32x640xf32> to vector<32x640xbf16>
    %c0_3 = arith.constant 0 : index
    %c0_4 = arith.constant 0 : index
    %9 = vector.load %arg3[%c0_3, %c0_4] : memref<640x128xbf16, #tpu.memory_space<vmem>>, vector<640x128xbf16>
    %cst_5 = arith.constant dense<0.000000e+00> : vector<32x128xf32>
    %10 = tpu.matmul %8, %9, %cst_5 {dimension_numbers = #tpu.dot_dimension_numbers<[1], [0], [0], [1], [0, 0, 1, 1], [], []>} : vector<32x640xbf16>, vector<640x128xbf16>, vector<32x128xf32> -> vector<32x128xf32>
    %cst_6 = arith.constant 1.000000e-10 : f32
    %11 = vector.broadcast %cst_6 : f32 to vector<32x128xf32>
    %12 = arith.maximumf %10, %11 : vector<32x128xf32>
    %13 = math.log %12 : vector<32x128xf32>
    %cst_7 = arith.constant 4.34294462 : f32
    %14 = vector.broadcast %cst_7 : f32 to vector<32x128xf32>
    %15 = arith.mulf %14, %13 : vector<32x128xf32>
    %c0_8 = arith.constant 0 : index
    %c0_9 = arith.constant 0 : index
    %16 = vector.load %arg4[%c0_8, %c0_9] : memref<32x128xf32, #tpu.memory_space<vmem>>, vector<32x128xf32>
    tpu.vector_store %arg4[%c0_8, %c0_9], %15 {strides = array<i32>} : memref<32x128xf32, #tpu.memory_space<vmem>>, vector<32x128xf32>,
    return
  }
  func.func @transform_0(%arg0: i32) -> (i32, i32) {
    %c0_i32 = arith.constant 0 : i32
    %c0_i32_0 = arith.constant 0 : i32
    return %arg0, %c0_i32 : i32, i32
  }
  func.func @transform_1(%arg0: i32) -> (i32, i32) {
    %c0_i32 = arith.constant 0 : i32
    %c0_i32_0 = arith.constant 0 : i32
    %c0_i32_1 = arith.constant 0 : i32
    return %c0_i32, %c0_i32_0 : i32, i32
  }
  func.func @transform_2(%arg0: i32) -> (i32, i32) {
    %c0_i32 = arith.constant 0 : i32
    %c0_i32_0 = arith.constant 0 : i32
    %c0_i32_1 = arith.constant 0 : i32
    return %c0_i32, %c0_i32_0 : i32, i32
  }
  func.func @transform_3(%arg0: i32) -> (i32, i32) {
    %c0_i32 = arith.constant 0 : i32
    %c0_i32_0 = arith.constant 0 : i32
    return %arg0, %c0_i32 : i32, i32
  }
}

</mosaic_0001>

<bundles_post_ra>
// kernel: librosa_spec.1
= control target key start
LH: loop header
LB: loop body
LE: loop exit
PB: predicated region body
PF: predicated region fallthrough
CT: control target
= control target key end

     0   :  { %s9870_s1 = inlined_call_operand.vmem [shape: bf16[1024,1280], index: 1, kind: input, shape index: {}]   ;;  %s9871_s0 = inlined_call_operand.vmem [shape: bf16[32,1024], index: 0, kind: input, shape index: {}]   ;;  %s9872_s2 = inlined_call_operand.vmem [shape: bf16[640,128], index: 2, kind: input, shape index: {}]   ;;  %s9873_s3 = inlined_call_operand.vmem [shape: f32[32,128], index: 3, kind: output, shape index: {}]  }
   0x1   :  { %v6474_v0 = vld [vmem:[%s9870_s1 + $0x4] ss:$40 sps:$4 sm:$0xff]   ;;  %v6478_v2 = vld [vmem:[%s9870_s1] ss:$40 sps:$4 sm:$0xff]   ;;  %v6480_v4 = vld [vmem:[%s9870_s1 + $0x54] ss:$40 sps:$4 sm:$0xff]  }
   0x2   :  { %v6476_v1 = vld [vmem:[%s9870_s1 + $0x504] ss:$40 sps:$4 sm:$0xff]   ;;  %3951 = vmatprep.subr.bf16.mxu1 %v6474_v0  ;;  %v6479_v3 = vld [vmem:[%s9870_s1 + $0x500] ss:$40 sps:$4 sm:$0xff]   ;;  %v6482_v5 = vld [vmem:[%s9870_s1 + $0x554] ss:$40 sps:$4 sm:$0xff]  }
   0x3   :  { %4004 = vmatprep.subr.bf16.mxu0 %v6476_v1  ;;  %3952 = vmatpush1.bf16.msra.mxu1 %v6478_v2  ;;  %v6484_v6 = vld [vmem:[%s9870_s1 + $0x50] ss:$40 sps:$4 sm:$0xff]   ;;  %v6486_v8 = vld [vmem:[%s9870_s1 + $0xa4] ss:$40 sps:$4 sm:$0xff]   ;;  %v6490_v10 = vld [vmem:[%s9870_s1 + $0xa0] ss:$40 sps:$4 sm:$0xff]  }
   0x4   :  { %4005 = vmatpush1.bf16.msra.mxu0 %v6479_v3  ;;  %3953 = vmatprep.subr.bf16.mxu1 %v6480_v4  ;;  %v6485_v7 = vld [vmem:[%s9870_s1 + $0x550] ss:$40 sps:$4 sm:$0xff]   ;;  %v6488_v9 = vld [vmem:[%s9870_s1 + $0x5a4] ss:$40 sps:$4 sm:$0xff]   ;;  %v6491_v11 = vld [vmem:[%s9870_s1 + $0x5a0] ss:$40 sps:$4 sm:$0xff]  }
   0x5   :  { %4006 = vmatprep.subr.bf16.mxu0 %v6482_v5  ;;  %v6492_v12 = vld [vmem:[%s9870_s1 + $0xf4] ss:$40 sps:$4 sm:$0xff]   ;;  %v6496_v14 = vld [vmem:[%s9870_s1 + $0xf0] ss:$40 sps:$4 sm:$0xff]   ;;  %v6498_v16 = vld [vmem:[%s9870_s1 + $0x144] ss:$40 sps:$4 sm:$0xff]  }
   0x6   :  { %v6494_v13 = vld [vmem:[%s9870_s1 + $0x5f4] ss:$40 sps:$4 sm:$0xff]   ;;  %v6497_v15 = vld [vmem:[%s9870_s1 + $0x5f0] ss:$40 sps:$4 sm:$0xff]   ;;  %v6500_v17 = vld [vmem:[%s9870_s1 + $0x644] ss:$40 sps:$4 sm:$0xff]  }
   0x7   :  { %3954 = vmatpush1.bf16.msra.mxu1 %v6484_v6  ;;  %v6502_v18 = vld [vmem:[%s9870_s1 + $0x140] ss:$40 sps:$4 sm:$0xff]   ;;  %v6504_v20 = vld [vmem:[%s9870_s1 + $0x194] ss:$40 sps:$4 sm:$0xff]   ;;  %v6508_v22 = vld [vmem:[%s9870_s1 + $0x190] ss:$40 sps:$4 sm:$0xff]  }
   0x8   :  { %4007 = vmatpush1.bf16.msra.mxu0 %v6485_v7  ;;  %3955 = vmatprep.subr.bf16.mxu1 %v6486_v8  ;;  %v6503_v19 = vld [vmem:[%s9870_s1 + $0x640] ss:$40 sps:$4 sm:$0xff]   ;;  %v6506_v21 = vld [vmem:[%s9870_s1 + $0x694] ss:$40 sps:$4 sm:$0xff]   ;;  %v6509_v23 = vld [vmem:[%s9870_s1 + $0x690] ss:$40 sps:$4 sm:$0xff]  }
   0x9   :  { %4008 = vmatprep.subr.bf16.mxu0 %v6488_v9  ;;  %v6510_v24 = vld [vmem:[%s9870_s1 + $0x1e4] ss:$40 sps:$4 sm:$0xff]   ;;  %v6514_v26 = vld [vmem:[%s9870_s1 + $0x1e0] ss:$40 sps:$4 sm:$0xff]   ;;  %v6516_v28 = vld [vmem:[%s9870_s1 + $0x234] ss:$40 sps:$4 sm:$0xff]  }
   0xa   :  { %v6512_v25 = vld [vmem:[%s9870_s1 + $0x6e4] ss:$40 sps:$4 sm:$0xff]   ;;  %v6515_v27 = vld [vmem:[%s9870_s1 + $0x6e0] ss:$40 sps:$4 sm:$0xff]   ;;  %v6518_v29 = vld [vmem:[%s9870_s1 + $0x734] ss:$40 sps:$4 sm:$0xff]  }
   0xb   :  { %3956 = vmatpush1.bf16.msra.mxu1 %v6490_v10  ;;  %v6520_v30 = vld [vmem:[%s9870_s1 + $0x230] ss:$40 sps:$4 sm:$0xff]   ;;  %v6522_v32 = vld [vmem:[%s9870_s1 + $0x284] ss:$40 sps:$4 sm:$0xff]   ;;  %v6526_v34 = vld [vmem:[%s9870_s1 + $0x280] ss:$40 sps:$4 sm:$0xff]  }
   0xc   :  { %4009 = vmatpush1.bf16.msra.mxu0 %v6491_v11  ;;  %3957 = vmatprep.subr.bf16.mxu1 %v6492_v12  ;;  %v6521_v31 = vld [vmem:[%s9870_s1 + $0x730] ss:$40 sps:$4 sm:$0xff]   ;;  %v6524_v33 = vld [vmem:[%s9870_s1 + $0x784] ss:$40 sps:$4 sm:$0xff]   ;;  %v6527_v35 = vld [vmem:[%s9870_s1 + $0x780] ss:$40 sps:$4 sm:$0xff]  }
   0xd   :  { %4010 = vmatprep.subr.bf16.mxu0 %v6494_v13  ;;  %v6528_v36 = vld [vmem:[%s9870_s1 + $0x2d4] ss:$40 sps:$4 sm:$0xff]   ;;  %v6532_v38 = vld [vmem:[%s9870_s1 + $0x2d0] ss:$40 sps:$4 sm:$0xff]   ;;  %v6534_v40 = vld [vmem:[%s9870_s1 + $0x324] ss:$40 sps:$4 sm:$0xff]  }
   0xe   :  { %v6530_v37 = vld [vmem:[%s9870_s1 + $0x7d4] ss:$40 sps:$4 sm:$0xff]   ;;  %v6533_v39 = vld [vmem:[%s9870_s1 + $0x7d0] ss:$40 sps:$4 sm:$0xff]   ;;  %v6536_v41 = vld [vmem:[%s9870_s1 + $0x824] ss:$40 sps:$4 sm:$0xff]  }
   0xf   :  { %3958 = vmatpush1.bf16.msra.mxu1 %v6496_v14  ;;  %v6538_v42 = vld [vmem:[%s9870_s1 + $0x320] ss:$40 sps:$4 sm:$0xff]   ;;  %v6540_v44 = vld [vmem:[%s9870_s1 + $0x374] ss:$40 sps:$4 sm:$0xff]   ;;  %v6544_v46 = vld [vmem:[%s9870_s1 + $0x370] ss:$40 sps:$4 sm:$0xff]  }
  0x10   :  { %4011 = vmatpush1.bf16.msra.mxu0 %v6497_v15  ;;  %3959 = vmatprep.subr.bf16.mxu1 %v6498_v16  ;;  %v6539_v43 = vld [vmem:[%s9870_s1 + $0x820] ss:$40 sps:$4 sm:$0xff]   ;;  %v6542_v45 = vld [vmem:[%s9870_s1 + $0x874] ss:$40 sps:$4 sm:$0xff]   ;;  %v6545_v47 = vld [vmem:[%s9870_s1 + $0x870] ss:$40 sps:$4 sm:$0xff]  }
  0x11   :  { %4012 = vmatprep.subr.bf16.mxu0 %v6500_v17  ;;  %v15_v48 = vld [vmem:[%s9871_s0] sm:$0xff]  ;;  %v16_v50 = vld [vmem:[%s9871_s0 + $0x8] sm:$0xff]  ;;  %v6552_v58 = vld [vmem:[%s9870_s1 + $0x414] ss:$40 sps:$4 sm:$0xff]  }
  0x12   :  { %v19_v49 = vld [vmem:[%s9871_s0 + $0x20] sm:$0xff]  ;;  %v20_v51 = vld [vmem:[%s9871_s0 + $0x28] sm:$0xff]  ;;  %v6554_v59 = vld [vmem:[%s9870_s1 + $0x914] ss:$40 sps:$4 sm:$0xff]  }
  0x13   :  { %3960 = vmatpush1.bf16.msra.mxu1 %v6502_v18  ;;  %v6546_v52 = vld [vmem:[%s9870_s1 + $0x3c4] ss:$40 sps:$4 sm:$0xff]   ;;  %v7661_v53 = vcombine.high %v15_v48, %v19_v49  ;;  %v7663_v54 = vcombine.high %v16_v50, %v20_v51  ;;  %v6550_v56 = vld [vmem:[%s9870_s1 + $0x3c0] ss:$40 sps:$4 sm:$0xff]   ;;  %v6556_v60 = vld [vmem:[%s9870_s1 + $0x410] ss:$40 sps:$4 sm:$0xff]   ;;  %v7724_v10 = vcombine.low %v15_v48, %v19_v49  ;;  %v7726_v11 = vcombine.low %v16_v50, %v20_v51 }
  0x14   :  { %4013 = vmatpush1.bf16.msra.mxu0 %v6503_v19  ;;  %3961 = vmatprep.subr.bf16.mxu1 %v6504_v20  ;;  %v6548_v55 = vld [vmem:[%s9870_s1 + $0x8c4] ss:$40 sps:$4 sm:$0xff]   ;;  %v6551_v57 = vld [vmem:[%s9870_s1 + $0x8c0] ss:$40 sps:$4 sm:$0xff]   ;;  %v6557_v61 = vld [vmem:[%s9870_s1 + $0x910] ss:$40 sps:$4 sm:$0xff]  }
  0x15   :  { %4014 = vmatprep.subr.bf16.mxu0 %v6506_v21  ;;  %3983 = vmatprep.mubr.bf16.mxu1 %v7661_v53  ;;  %v6558_v62 = vld [vmem:[%s9870_s1 + $0x464] ss:$40 sps:$4 sm:$0xff]   ;;  %v6562_v0 = vld [vmem:[%s9870_s1 + $0x460] ss:$40 sps:$4 sm:$0xff]   ;;  %v6564_v2 = vld [vmem:[%s9870_s1 + $0x4b4] ss:$40 sps:$4 sm:$0xff]  }
  0x16   :  { %4036 = vmatprep.mubr.bf16.mxu0 %v7663_v54  ;;  %v6560_v63 = vld [vmem:[%s9870_s1 + $0x964] ss:$40 sps:$4 sm:$0xff]   ;;  %v6563_v1 = vld [vmem:[%s9870_s1 + $0x960] ss:$40 sps:$4 sm:$0xff]   ;;  %v6566_v3 = vld [vmem:[%s9870_s1 + $0x9b4] ss:$40 sps:$4 sm:$0xff]  }
  0x17   :  { %3962 = vmatpush1.bf16.msra.mxu1 %v6508_v22  ;;  %v6568_v4 = vld [vmem:[%s9870_s1 + $0x4b0] ss:$40 sps:$4 sm:$0xff]   ;;  %v6572_v6 = vld [vmem:[%s9870_s1 + $0xa04] ss:$40 sps:$4 sm:$0xff]   ;;  %v6570_v8 = vld [vmem:[%s9870_s1 + $0xa00] ss:$40 sps:$4 sm:$0xff]  }
  0x18   :  { %4015 = vmatpush1.bf16.msra.mxu0 %v6509_v23  ;;  %3963 = vmatprep.subr.bf16.mxu1 %v6510_v24  ;;  %v6569_v5 = vld [vmem:[%s9870_s1 + $0x9b0] ss:$40 sps:$4 sm:$0xff]   ;;  %v6575_v7 = vld [vmem:[%s9870_s1 + $0xc] ss:$40 sps:$4 sm:$0xff]   ;;  %v6581_v13 = vld [vmem:[%s9870_s1 + $0x5c] ss:$40 sps:$4 sm:$0xff]  }
  0x19   :  { %4016 = vmatprep.subr.bf16.mxu0 %v6512_v25  ;;  %v6573_v9 = vld [vmem:[%s9870_s1 + $0x8] ss:$40 sps:$4 sm:$0xff]   ;;  %v6578_v12 = vld [vmem:[%s9870_s1 + $0xa54] ss:$40 sps:$4 sm:$0xff]   ;;  %v6579_v15 = vld [vmem:[%s9870_s1 + $0x58] ss:$40 sps:$4 sm:$0xff]  }
  0x1a   :  { %v6576_v14 = vld [vmem:[%s9870_s1 + $0xa50] ss:$40 sps:$4 sm:$0xff]   ;;  %v6584_v16 = vld [vmem:[%s9870_s1 + $0xaa4] ss:$40 sps:$4 sm:$0xff]   ;;  %v6582_v18 = vld [vmem:[%s9870_s1 + $0xaa0] ss:$40 sps:$4 sm:$0xff]  }
  0x1b   :  { %3964 = vmatpush1.bf16.msra.mxu1 %v6514_v26  ;;  %v6587_v17 = vld [vmem:[%s9870_s1 + $0xac] ss:$40 sps:$4 sm:$0xff]   ;;  %v6585_v19 = vld [vmem:[%s9870_s1 + $0xa8] ss:$40 sps:$4 sm:$0xff]   ;;  %v6593_v21 = vld [vmem:[%s9870_s1 + $0xfc] ss:$40 sps:$4 sm:$0xff]  }
  0x1c   :  { %4017 = vmatpush1.bf16.msra.mxu0 %v6515_v27  ;;  %3965 = vmatprep.subr.bf16.mxu1 %v6516_v28  ;;  %v6590_v20 = vld [vmem:[%s9870_s1 + $0xaf4] ss:$40 sps:$4 sm:$0xff]   ;;  %v6588_v22 = vld [vmem:[%s9870_s1 + $0xaf0] ss:$40 sps:$4 sm:$0xff]   ;;  %v6596_v24 = vld [vmem:[%s9870_s1 + $0xb44] ss:$40 sps:$4 sm:$0xff]  }
  0x1d   :  { %4018 = vmatprep.subr.bf16.mxu0 %v6518_v29  ;;  %v6591_v23 = vld [vmem:[%s9870_s1 + $0xf8] ss:$40 sps:$4 sm:$0xff]   ;;  %v6599_v25 = vld [vmem:[%s9870_s1 + $0x14c] ss:$40 sps:$4 sm:$0xff]   ;;  %v6597_v27 = vld [vmem:[%s9870_s1 + $0x148] ss:$40 sps:$4 sm:$0xff]  }
  0x1e   :  { %v6594_v26 = vld [vmem:[%s9870_s1 + $0xb40] ss:$40 sps:$4 sm:$0xff]   ;;  %v6602_v28 = vld [vmem:[%s9870_s1 + $0xb94] ss:$40 sps:$4 sm:$0xff]   ;;  %v6612_v49 = vld [vmem:[%s9870_s1 + $0xc30] ss:$40 sps:$4 sm:$0xff]  }
  0x1f   :  { %3966 = vmatpush1.bf16.msra.mxu1 %v6520_v30  ;;  %v6605_v29 = vld [vmem:[%s9870_s1 + $0x19c] ss:$40 sps:$4 sm:$0xff]   ;;  %v6615_v50 = vld [vmem:[%s9870_s1 + $0x238] ss:$40 sps:$4 sm:$0xff]  }
  0x20   :  { %4019 = vmatpush1.bf16.msra.mxu0 %v6521_v31  ;;  %3967 = vmatprep.subr.bf16.mxu1 %v6522_v32  ;;  %v23_v30 = vld [vmem:[%s9871_s0 + $0x40] sm:$0xff] }
  0x21   :  { %4020 = vmatprep.subr.bf16.mxu0 %v6524_v33  ;;  %v27_v31 = vld [vmem:[%s9871_s0 + $0x60] sm:$0xff]  ;;  %v24_v33 = vld [vmem:[%s9871_s0 + $0x48] sm:$0xff] }
  0x22   :  { %v7790_v32 = vcombine.high %v23_v30, %v27_v31  ;;  %v6620_v51 = vld [vmem:[%s9870_s1 + $0xc84] ss:$40 sps:$4 sm:$0xff]  }
  0x23   :  { %3968 = vmatpush1.bf16.msra.mxu1 %v6526_v34  ;;  %v28_v34 = vld [vmem:[%s9871_s0 + $0x68] sm:$0xff] }
  0x24   :  { %4021 = vmatpush1.bf16.msra.mxu0 %v6527_v35  ;;  %3969 = vmatprep.subr.bf16.mxu1 %v6528_v36  ;;  %v6600_v35 = vld [vmem:[%s9870_s1 + $0xb90] ss:$40 sps:$4 sm:$0xff]  }
  0x25   :  { %4022 = vmatprep.subr.bf16.mxu0 %v6530_v37  ;;  %v6603_v36 = vld [vmem:[%s9870_s1 + $0x198] ss:$40 sps:$4 sm:$0xff]   ;;  %v7804_v37 = vcombine.high %v24_v33, %v28_v34 }
  0x27   :  { %3970 = vmatpush1.bf16.msra.mxu1 %v6532_v38  ;;  %v7806_v38 = vcombine.low %v23_v30, %v27_v31  ;;  %v6674_v30 = vld [vmem:[%s9870_s1 + $0xf54] ss:$40 sps:$4 sm:$0xff]  }
  0x28   :  { %4023 = vmatpush1.bf16.msra.mxu0 %v6533_v39  ;;  %3971 = vmatprep.subr.bf16.mxu1 %v6534_v40  ;;  %v7808_v39 = vcombine.low %v24_v33, %v28_v34  ;;  %v6608_v40 = vld [vmem:[%s9870_s1 + $0xbe4] ss:$40 sps:$4 sm:$0xff]   ;;  %v6672_v34 = vld [vmem:[%s9870_s1 + $0xf50] ss:$40 sps:$4 sm:$0xff]  }
  0x29   :  { %4024 = vmatprep.subr.bf16.mxu0 %v6536_v41  ;;  %v6611_v41 = vld [vmem:[%s9870_s1 + $0x1ec] ss:$40 sps:$4 sm:$0xff]   ;;  %v6677_v31 = vld [vmem:[%s9870_s1 + $0x55c] ss:$40 sps:$4 sm:$0xff]  }
  0x2b   :  { %3972 = vmatpush1.bf16.msra.mxu1 %v6538_v42  ;;  %v6606_v42 = vld [vmem:[%s9870_s1 + $0xbe0] ss:$40 sps:$4 sm:$0xff]  }
  0x2c   :  { %4025 = vmatpush1.bf16.msra.mxu0 %v6539_v43  ;;  %3973 = vmatprep.subr.bf16.mxu1 %v6540_v44  ;;  %v6609_v43 = vld [vmem:[%s9870_s1 + $0x1e8] ss:$40 sps:$4 sm:$0xff]  }
  0x2d   :  { %4026 = vmatprep.subr.bf16.mxu0 %v6542_v45  ;;  %v7829_v44 = vld [vmem:[%s9871_s0 + $0x10] sm:$0xff] }
  0x2e   :  { %v7834_v45 = vld [vmem:[%s9871_s0 + $0x30] sm:$0xff] }
  0x2f   :  { %3974 = vmatpush1.bf16.msra.mxu1 %v6544_v46  ;;  %v6614_v46 = vld [vmem:[%s9870_s1 + $0xc34] ss:$40 sps:$4 sm:$0xff]   ;;  %v7844_v48 = vcombine.high %v7829_v44, %v7834_v45 }
  0x30   :  { %4027 = vmatpush1.bf16.msra.mxu0 %v6545_v47  ;;  %3975 = vmatprep.subr.bf16.mxu1 %v6546_v52  ;;  %v6617_v47 = vld [vmem:[%s9870_s1 + $0x23c] ss:$40 sps:$4 sm:$0xff]   ;;  %v6623_v52 = vld [vmem:[%s9870_s1 + $0x28c] ss:$40 sps:$4 sm:$0xff]  }
  0x31   :  { %4028 = vmatprep.subr.bf16.mxu0 %v6548_v55  ;;  %v6618_v55 = vld [vmem:[%s9870_s1 + $0xc80] ss:$40 sps:$4 sm:$0xff]  }
  0x33   :  { %3976 = vmatpush1.bf16.msra.mxu1 %v6550_v56  ;;  %v6621_v56 = vld [vmem:[%s9870_s1 + $0x288] ss:$40 sps:$4 sm:$0xff]  }
  0x34   :  { %4029 = vmatpush1.bf16.msra.mxu0 %v6551_v57  ;;  %3977 = vmatprep.subr.bf16.mxu1 %v6552_v58  ;;  %v6626_v57 = vld [vmem:[%s9870_s1 + $0xcd4] ss:$40 sps:$4 sm:$0xff]  }
  0x35   :  { %4030 = vmatprep.subr.bf16.mxu0 %v6554_v59  ;;  %v6629_v58 = vld [vmem:[%s9870_s1 + $0x2dc] ss:$40 sps:$4 sm:$0xff]   ;;  %v6624_v59 = vld [vmem:[%s9870_s1 + $0xcd0] ss:$40 sps:$4 sm:$0xff]  }
  0x37   :  { %3978 = vmatpush1.bf16.msra.mxu1 %v6556_v60  ;;  %v6627_v60 = vld [vmem:[%s9870_s1 + $0x2d8] ss:$40 sps:$4 sm:$0xff]  }
  0x38   :  { %4031 = vmatpush1.bf16.msra.mxu0 %v6557_v61  ;;  %3979 = vmatprep.subr.bf16.mxu1 %v6558_v62  ;;  %v6632_v61 = vld [vmem:[%s9870_s1 + $0xd24] ss:$40 sps:$4 sm:$0xff]  }
  0x39   :  { %4032 = vmatprep.subr.bf16.mxu0 %v6560_v63  ;;  %v6635_v62 = vld [vmem:[%s9870_s1 + $0x32c] ss:$40 sps:$4 sm:$0xff]   ;;  %v6630_v63 = vld [vmem:[%s9870_s1 + $0xd20] ss:$40 sps:$4 sm:$0xff]  }
  0x3b   :  { %3980 = vmatpush1.bf16.msra.mxu1 %v6562_v0  ;;  %v6633_v0 = vld [vmem:[%s9870_s1 + $0x328] ss:$40 sps:$4 sm:$0xff]  }
  0x3c   :  { %4033 = vmatpush1.bf16.msra.mxu0 %v6563_v1  ;;  %3981 = vmatprep.subr.bf16.mxu1 %v6564_v2  ;;  %v6638_v1 = vld [vmem:[%s9870_s1 + $0xd74] ss:$40 sps:$4 sm:$0xff]  }
  0x3d   :  { %4034 = vmatprep.subr.bf16.mxu0 %v6566_v3  ;;  %v6641_v2 = vld [vmem:[%s9870_s1 + $0x37c] ss:$40 sps:$4 sm:$0xff]   ;;  %v6636_v3 = vld [vmem:[%s9870_s1 + $0xd70] ss:$40 sps:$4 sm:$0xff]  }
  0x3f   :  { %3982 = vmatpush1.bf16.msra.mxu1 %v6568_v4  ;;  %v6639_v4 = vld [vmem:[%s9870_s1 + $0x378] ss:$40 sps:$4 sm:$0xff]  }
  0x40   :  { %4035 = vmatpush1.bf16.msra.mxu0 %v6569_v5  ;;  %4163 = vmatprep.subr.bf16.mxu1 %v6575_v7  ;;  %v6644_v5 = vld [vmem:[%s9870_s1 + $0xdc4] ss:$40 sps:$4 sm:$0xff]   ;;  %v6642_v7 = vld [vmem:[%s9870_s1 + $0xdc0] ss:$40 sps:$4 sm:$0xff]  }
  0x41   :  { %4057 = vmatprep.subr.bf16.mxu0 %v6572_v6  ;;  %v6647_v6 = vld [vmem:[%s9870_s1 + $0x3cc] ss:$40 sps:$4 sm:$0xff]  }
  0x42   :  { %3984 = vmatmul.mubr.bf16.vlgmr.msra.gmra.mrb[0].mxu1 %v7724_v10 }
  0x43   :  { %4037 = vmatmul.mubr.bf16.vlgmr.msra.gmra.mrb[0].mxu0 %v7726_v11  ;;  %4164 = vmatpush1.bf16.msra.mxu1 %v6573_v9  ;;  %v6650_v9 = vld [vmem:[%s9870_s1 + $0xe14] ss:$40 sps:$4 sm:$0xff]  }
  0x44   :  { %4058 = vmatpush1.bf16.msra.mxu0 %v6570_v8  ;;  %4165 = vmatprep.subr.bf16.mxu1 %v6581_v13  ;;  %v6645_v8 = vld [vmem:[%s9870_s1 + $0x3c8] ss:$40 sps:$4 sm:$0xff]  }
  0x45   :  { %4059 = vmatprep.subr.bf16.mxu0 %v6578_v12  ;;  %3993 = vmatprep.mubr.bf16.mxu1 %v7790_v32  ;;  %v6653_v12 = vld [vmem:[%s9870_s1 + $0x41c] ss:$40 sps:$4 sm:$0xff]   ;;  %v6648_v13 = vld [vmem:[%s9870_s1 + $0xe10] ss:$40 sps:$4 sm:$0xff]  }
  0x46   :  { %4046 = vmatprep.mubr.bf16.mxu0 %v7804_v37 }
  0x47   :  { %4166 = vmatpush1.bf16.msra.mxu1 %v6579_v15  ;;  %v6656_v15 = vld [vmem:[%s9870_s1 + $0xe64] ss:$40 sps:$4 sm:$0xff]  }
  0x48   :  { %4060 = vmatpush1.bf16.msra.mxu0 %v6576_v14  ;;  %4167 = vmatprep.subr.bf16.mxu1 %v6587_v17  ;;  %v6651_v14 = vld [vmem:[%s9870_s1 + $0x418] ss:$40 sps:$4 sm:$0xff]  }
  0x49   :  { %4061 = vmatprep.subr.bf16.mxu0 %v6584_v16  ;;  %v6659_v16 = vld [vmem:[%s9870_s1 + $0x46c] ss:$40 sps:$4 sm:$0xff]   ;;  %v6654_v17 = vld [vmem:[%s9870_s1 + $0xe60] ss:$40 sps:$4 sm:$0xff]  }
  0x4a   :  { %3994 = vmatmul.mubr.bf16.gmra.mrb[4].mxu1 %v7806_v38 }
  0x4b   :  { %4168 = vmatpush1.bf16.msra.mxu1 %v6585_v19  ;;  %4047 = vmatmul.mubr.bf16.gmra.mrb[4].mxu0 %v7808_v39  ;;  %v6662_v19 = vld [vmem:[%s9870_s1 + $0xeb4] ss:$40 sps:$4 sm:$0xff]  }
  0x4c   :  { %4062 = vmatpush1.bf16.msra.mxu0 %v6582_v18  ;;  %4169 = vmatprep.subr.bf16.mxu1 %v6593_v21  ;;  %v6657_v18 = vld [vmem:[%s9870_s1 + $0x468] ss:$40 sps:$4 sm:$0xff]  }
  0x4d   :  { %4063 = vmatprep.subr.bf16.mxu0 %v6590_v20  ;;  %4195 = vmatprep.mubr.bf16.mxu1 %v7661_v53  ;;  %v6665_v20 = vld [vmem:[%s9870_s1 + $0x4bc] ss:$40 sps:$4 sm:$0xff]   ;;  %v6660_v21 = vld [vmem:[%s9870_s1 + $0xeb0] ss:$40 sps:$4 sm:$0xff]  }
  0x4e   :  { %4089 = vmatprep.mubr.bf16.mxu0 %v7844_v48 }
  0x4f   :  { %4170 = vmatpush1.bf16.msra.mxu1 %v6591_v23  ;;  %v6668_v23 = vld [vmem:[%s9870_s1 + $0xf04] ss:$40 sps:$4 sm:$0xff]  }
  0x50   :  { %4064 = vmatpush1.bf16.msra.mxu0 %v6588_v22  ;;  %4171 = vmatprep.subr.bf16.mxu1 %v6599_v25  ;;  %v6663_v22 = vld [vmem:[%s9870_s1 + $0x4b8] ss:$40 sps:$4 sm:$0xff]  }
  0x51   :  { %4065 = vmatprep.subr.bf16.mxu0 %v6596_v24  ;;  %v6671_v24 = vld [vmem:[%s9870_s1 + $0x50c] ss:$40 sps:$4 sm:$0xff]   ;;  %v6666_v25 = vld [vmem:[%s9870_s1 + $0xf00] ss:$40 sps:$4 sm:$0xff]  }
  0x53   :  { %4172 = vmatpush1.bf16.msra.mxu1 %v6597_v27  ;;  %v7964_v27 = vcombine.low %v7829_v44, %v7834_v45  ;;  %v6678_v44 = vld [vmem:[%s9870_s1 + $0xfa0] ss:$40 sps:$4 sm:$0xff]  }
  0x54   :  { %4066 = vmatpush1.bf16.msra.mxu0 %v6594_v26  ;;  %4173 = vmatprep.subr.bf16.mxu1 %v6605_v29  ;;  %v6669_v26 = vld [vmem:[%s9870_s1 + $0x508] ss:$40 sps:$4 sm:$0xff]  }
  0x55   :  { %4067 = vmatprep.subr.bf16.mxu0 %v6602_v28  ;;  %v25_v28 = vld [vmem:[%s9871_s0 + $0x50] sm:$0xff] }
  0x56   :  { %v29_v29 = vld [vmem:[%s9871_s0 + $0x70] sm:$0xff] }
  0x57   :  { %4174 = vmatpush1.bf16.msra.mxu1 %v6603_v36  ;;  %v7978_v33 = vcombine.high %v25_v28, %v29_v29  ;;  %v6680_v36 = vld [vmem:[%s9870_s1 + $0xfa4] ss:$40 sps:$4 sm:$0xff]   ;;  %v6681_v45 = vld [vmem:[%s9870_s1 + $0x5a8] ss:$40 sps:$4 sm:$0xff]  }
  0x58   :  { %4068 = vmatpush1.bf16.msra.mxu0 %v6600_v35  ;;  %4175 = vmatprep.subr.bf16.mxu1 %v6611_v41  ;;  %v6675_v35 = vld [vmem:[%s9870_s1 + $0x558] ss:$40 sps:$4 sm:$0xff]  }
  0x59   :  { %4069 = vmatprep.subr.bf16.mxu0 %v6608_v40  ;;  %v6683_v40 = vld [vmem:[%s9870_s1 + $0x5ac] ss:$40 sps:$4 sm:$0xff]   ;;  %v7999_v41 = vld [vmem:[%s9871_s0 + $0x18] sm:$0xff] }
  0x5b   :  { %4176 = vmatpush1.bf16.msra.mxu1 %v6609_v43  ;;  %v8006_v43 = vld [vmem:[%s9871_s0 + $0x38] sm:$0xff] }
  0x5c   :  { %4070 = vmatpush1.bf16.msra.mxu0 %v6606_v42  ;;  %4177 = vmatprep.subr.bf16.mxu1 %v6617_v47  ;;  %v8001_v42 = vcombine.low %v25_v28, %v29_v29  ;;  %v6689_v47 = vld [vmem:[%s9870_s1 + $0x5fc] ss:$40 sps:$4 sm:$0xff]   ;;  %v6741_v28 = vld [vmem:[%s9870_s1 + $0x8c8] ss:$40 sps:$4 sm:$0xff]  }
  0x5d   :  { %4071 = vmatprep.subr.bf16.mxu0 %v6614_v46  ;;  %v6686_v46 = vld [vmem:[%s9870_s1 + $0xff4] ss:$40 sps:$4 sm:$0xff]  }
  0x5e   :  { %v6746_v29 = vld [vmem:[%s9870_s1 + $0x1314] ss:$40 sps:$4 sm:$0xff]  }
  0x5f   :  { %4178 = vmatpush1.bf16.msra.mxu1 %v6615_v50  ;;  %v6684_v50 = vld [vmem:[%s9870_s1 + $0xff0] ss:$40 sps:$4 sm:$0xff]  }
  0x60   :  { %4072 = vmatpush1.bf16.msra.mxu0 %v6612_v49  ;;  %4179 = vmatprep.subr.bf16.mxu1 %v6623_v52  ;;  %v8022_v49 = vcombine.high %v7999_v41, %v8006_v43  ;;  %v6692_v52 = vld [vmem:[%s9870_s1 + $0x1044] ss:$40 sps:$4 sm:$0xff]  }
  0x61   :  { %4073 = vmatprep.subr.bf16.mxu0 %v6620_v51  ;;  %v6687_v51 = vld [vmem:[%s9870_s1 + $0x5f8] ss:$40 sps:$4 sm:$0xff]  }
  0x63   :  { %4180 = vmatpush1.bf16.msra.mxu1 %v6621_v56  ;;  %v6690_v56 = vld [vmem:[%s9870_s1 + $0x1040] ss:$40 sps:$4 sm:$0xff]  }
  0x64   :  { %4074 = vmatpush1.bf16.msra.mxu0 %v6618_v55  ;;  %4181 = vmatprep.subr.bf16.mxu1 %v6629_v58  ;;  %v6695_v55 = vld [vmem:[%s9870_s1 + $0x64c] ss:$40 sps:$4 sm:$0xff]  }
  0x65   :  { %4075 = vmatprep.subr.bf16.mxu0 %v6626_v57  ;;  %v6693_v57 = vld [vmem:[%s9870_s1 + $0x648] ss:$40 sps:$4 sm:$0xff]   ;;  %v6698_v58 = vld [vmem:[%s9870_s1 + $0x1094] ss:$40 sps:$4 sm:$0xff]  }
  0x67   :  { %4182 = vmatpush1.bf16.msra.mxu1 %v6627_v60  ;;  %v6696_v60 = vld [vmem:[%s9870_s1 + $0x1090] ss:$40 sps:$4 sm:$0xff]  }
  0x68   :  { %4076 = vmatpush1.bf16.msra.mxu0 %v6624_v59  ;;  %4183 = vmatprep.subr.bf16.mxu1 %v6635_v62  ;;  %v6701_v59 = vld [vmem:[%s9870_s1 + $0x69c] ss:$40 sps:$4 sm:$0xff]  }
  0x69   :  { %4077 = vmatprep.subr.bf16.mxu0 %v6632_v61  ;;  %v6699_v61 = vld [vmem:[%s9870_s1 + $0x698] ss:$40 sps:$4 sm:$0xff]   ;;  %v6704_v62 = vld [vmem:[%s9870_s1 + $0x10e4] ss:$40 sps:$4 sm:$0xff]  }
  0x6b   :  { %4184 = vmatpush1.bf16.msra.mxu1 %v6633_v0  ;;  %v6702_v0 = vld [vmem:[%s9870_s1 + $0x10e0] ss:$40 sps:$4 sm:$0xff]  }
  0x6c   :  { %4078 = vmatpush1.bf16.msra.mxu0 %v6630_v63  ;;  %4185 = vmatprep.subr.bf16.mxu1 %v6641_v2  ;;  %v6707_v63 = vld [vmem:[%s9870_s1 + $0x6ec] ss:$40 sps:$4 sm:$0xff]  }
  0x6d   :  { %4079 = vmatprep.subr.bf16.mxu0 %v6638_v1  ;;  %v6705_v1 = vld [vmem:[%s9870_s1 + $0x6e8] ss:$40 sps:$4 sm:$0xff]   ;;  %v6710_v2 = vld [vmem:[%s9870_s1 + $0x1134] ss:$40 sps:$4 sm:$0xff]  }
  0x6f   :  { %4186 = vmatpush1.bf16.msra.mxu1 %v6639_v4  ;;  %v6708_v4 = vld [vmem:[%s9870_s1 + $0x1130] ss:$40 sps:$4 sm:$0xff]  }
  0x70   :  { %4080 = vmatpush1.bf16.msra.mxu0 %v6636_v3  ;;  %4187 = vmatprep.subr.bf16.mxu1 %v6647_v6  ;;  %v6713_v3 = vld [vmem:[%s9870_s1 + $0x73c] ss:$40 sps:$4 sm:$0xff]  }
  0x71   :  { %4081 = vmatprep.subr.bf16.mxu0 %v6644_v5  ;;  %v6711_v5 = vld [vmem:[%s9870_s1 + $0x738] ss:$40 sps:$4 sm:$0xff]   ;;  %v6716_v6 = vld [vmem:[%s9870_s1 + $0x1184] ss:$40 sps:$4 sm:$0xff]  }
  0x73   :  { %4188 = vmatpush1.bf16.msra.mxu1 %v6645_v8  ;;  %v6714_v8 = vld [vmem:[%s9870_s1 + $0x1180] ss:$40 sps:$4 sm:$0xff]  }
  0x74   :  { %4082 = vmatpush1.bf16.msra.mxu0 %v6642_v7  ;;  %4189 = vmatprep.subr.bf16.mxu1 %v6653_v12  ;;  %v6719_v7 = vld [vmem:[%s9870_s1 + $0x78c] ss:$40 sps:$4 sm:$0xff]  }
  0x75   :  { %4083 = vmatprep.subr.bf16.mxu0 %v6650_v9  ;;  %v6717_v9 = vld [vmem:[%s9870_s1 + $0x788] ss:$40 sps:$4 sm:$0xff]   ;;  %v6722_v12 = vld [vmem:[%s9870_s1 + $0x11d4] ss:$40 sps:$4 sm:$0xff]  }
  0x77   :  { %4190 = vmatpush1.bf16.msra.mxu1 %v6651_v14  ;;  %v6720_v14 = vld [vmem:[%s9870_s1 + $0x11d0] ss:$40 sps:$4 sm:$0xff]  }
  0x78   :  { %4084 = vmatpush1.bf16.msra.mxu0 %v6648_v13  ;;  %4191 = vmatprep.subr.bf16.mxu1 %v6659_v16  ;;  %v6725_v13 = vld [vmem:[%s9870_s1 + $0x7dc] ss:$40 sps:$4 sm:$0xff]  }
  0x79   :  { %4085 = vmatprep.subr.bf16.mxu0 %v6656_v15  ;;  %v6723_v15 = vld [vmem:[%s9870_s1 + $0x7d8] ss:$40 sps:$4 sm:$0xff]   ;;  %v6728_v16 = vld [vmem:[%s9870_s1 + $0x1224] ss:$40 sps:$4 sm:$0xff]  }
  0x7b   :  { %4192 = vmatpush1.bf16.msra.mxu1 %v6657_v18  ;;  %v6726_v18 = vld [vmem:[%s9870_s1 + $0x1220] ss:$40 sps:$4 sm:$0xff]  }
  0x7c   :  { %4086 = vmatpush1.bf16.msra.mxu0 %v6654_v17  ;;  %4193 = vmatprep.subr.bf16.mxu1 %v6665_v20  ;;  %v6731_v17 = vld [vmem:[%s9870_s1 + $0x82c] ss:$40 sps:$4 sm:$0xff]  }
  0x7d   :  { %4087 = vmatprep.subr.bf16.mxu0 %v6662_v19  ;;  %v6729_v19 = vld [vmem:[%s9870_s1 + $0x828] ss:$40 sps:$4 sm:$0xff]   ;;  %v6734_v20 = vld [vmem:[%s9870_s1 + $0x1274] ss:$40 sps:$4 sm:$0xff]  }
  0x7f   :  { %4194 = vmatpush1.bf16.msra.mxu1 %v6663_v22  ;;  %v6732_v22 = vld [vmem:[%s9870_s1 + $0x1270] ss:$40 sps:$4 sm:$0xff]  }
  0x80   :  { %4088 = vmatpush1.bf16.msra.mxu0 %v6660_v21  ;;  %4216 = vmatprep.subr.bf16.mxu1 %v6671_v24  ;;  %v6737_v21 = vld [vmem:[%s9870_s1 + $0x87c] ss:$40 sps:$4 sm:$0xff]  }
  0x81   :  { %4110 = vmatprep.subr.bf16.mxu0 %v6668_v23  ;;  %v6735_v23 = vld [vmem:[%s9870_s1 + $0x878] ss:$40 sps:$4 sm:$0xff]   ;;  %v6740_v24 = vld [vmem:[%s9870_s1 + $0x12c4] ss:$40 sps:$4 sm:$0xff]  }
  0x82   :  { %4196 = vmatmul.mubr.bf16.vlgmr.msra.gmra.mrb[8].mxu1 %v7724_v10 }
  0x83   :  { %4090 = vmatmul.mubr.bf16.vlgmr.msra.gmra.mrb[0].mxu0 %v7964_v27  ;;  %4217 = vmatpush1.bf16.msra.mxu1 %v6669_v26  ;;  %v6738_v26 = vld [vmem:[%s9870_s1 + $0x12c0] ss:$40 sps:$4 sm:$0xff]  }
  0x84   :  { %4111 = vmatpush1.bf16.msra.mxu0 %v6666_v25  ;;  %4218 = vmatprep.subr.bf16.mxu1 %v6677_v31  ;;  %v6743_v25 = vld [vmem:[%s9870_s1 + $0x8cc] ss:$40 sps:$4 sm:$0xff]   ;;  %v6744_v31 = vld [vmem:[%s9870_s1 + $0x1310] ss:$40 sps:$4 sm:$0xff]  }
  0x85   :  { %4112 = vmatprep.subr.bf16.mxu0 %v6674_v30  ;;  %4099 = vmatprep.mubr.bf16.mxu0 %v7978_v33  ;;  %v6749_v30 = vld [vmem:[%s9870_s1 + $0x91c] ss:$40 sps:$4 sm:$0xff]  }
  0x86   :  { %4205 = vmatprep.mubr.bf16.mxu1 %v7790_v32 }
  0x87   :  { %4219 = vmatpush1.bf16.msra.mxu1 %v6675_v35  ;;  %v6752_v35 = vld [vmem:[%s9870_s1 + $0x1364] ss:$40 sps:$4 sm:$0xff]  }
  0x88   :  { %4113 = vmatpush1.bf16.msra.mxu0 %v6672_v34  ;;  %4220 = vmatprep.subr.bf16.mxu1 %v6683_v40  ;;  %v6747_v34 = vld [vmem:[%s9870_s1 + $0x918] ss:$40 sps:$4 sm:$0xff]  }
  0x89   :  { %4114 = vmatprep.subr.bf16.mxu0 %v6680_v36  ;;  %v6755_v36 = vld [vmem:[%s9870_s1 + $0x96c] ss:$40 sps:$4 sm:$0xff]   ;;  %v6750_v40 = vld [vmem:[%s9870_s1 + $0x1360] ss:$40 sps:$4 sm:$0xff]  }
  0x8a   :  { %4206 = vmatmul.mubr.bf16.gmra.mrb[12].mxu1 %v7806_v38 }
  0x8b   :  { %4100 = vmatmul.mubr.bf16.gmra.mrb[4].mxu0 %v8001_v42  ;;  %4221 = vmatpush1.bf16.msra.mxu1 %v6681_v45  ;;  %v6758_v45 = vld [vmem:[%s9870_s1 + $0x13b4] ss:$40 sps:$4 sm:$0xff]  }
  0x8c   :  { %4115 = vmatpush1.bf16.msra.mxu0 %v6678_v44  ;;  %4222 = vmatprep.subr.bf16.mxu1 %v6689_v47  ;;  %v6753_v44 = vld [vmem:[%s9870_s1 + $0x968] ss:$40 sps:$4 sm:$0xff]  }
  0x8d   :  { %4116 = vmatprep.subr.bf16.mxu0 %v6686_v46  ;;  %4142 = vmatprep.mubr.bf16.mxu0 %v8022_v49  ;;  %v6761_v46 = vld [vmem:[%s9870_s1 + $0x9bc] ss:$40 sps:$4 sm:$0xff]   ;;  %v6756_v47 = vld [vmem:[%s9870_s1 + $0x13b0] ss:$40 sps:$4 sm:$0xff]  }
  0x8e   :  { %4248 = vmatprep.mubr.bf16.mxu1 %v7663_v54 }
  0x8f   :  { %4223 = vmatpush1.bf16.msra.mxu1 %v6687_v51  ;;  %v6764_v51 = vld [vmem:[%s9870_s1 + $0xa0c] ss:$40 sps:$4 sm:$0xff]  }
  0x90   :  { %4117 = vmatpush1.bf16.msra.mxu0 %v6684_v50  ;;  %4224 = vmatprep.subr.bf16.mxu1 %v6695_v55  ;;  %v6759_v50 = vld [vmem:[%s9870_s1 + $0x9b8] ss:$40 sps:$4 sm:$0xff]   ;;  %v6762_v55 = vld [vmem:[%s9870_s1 + $0xa08] ss:$40 sps:$4 sm:$0xff]  }
  0x91   :  { %4118 = vmatprep.subr.bf16.mxu0 %v6692_v52  ;;  %v6767_v52 = vld [vmem:[%s9870_s1 + $0x14] ss:$40 sps:$4 sm:$0xff]  }
  0x93   :  { %4225 = vmatpush1.bf16.msra.mxu1 %v6693_v57  ;;  %v8192_v57 = vcombine.low %v7999_v41, %v8006_v43  ;;  %v6773_v41 = vld [vmem:[%s9870_s1 + $0x64] ss:$40 sps:$4 sm:$0xff]  }
  0x94   :  { %4119 = vmatpush1.bf16.msra.mxu0 %v6690_v56  ;;  %4226 = vmatprep.subr.bf16.mxu1 %v6701_v59  ;;  %v6765_v56 = vld [vmem:[%s9870_s1 + $0x10] ss:$40 sps:$4 sm:$0xff]  }
  0x95   :  { %4120 = vmatprep.subr.bf16.mxu0 %v6698_v58  ;;  %v26_v58 = vld [vmem:[%s9871_s0 + $0x58] sm:$0xff] }
  0x96   :  { %v30_v59 = vld [vmem:[%s9871_s0 + $0x78] sm:$0xff] }
  0x97   :  { %4227 = vmatpush1.bf16.msra.mxu1 %v6699_v61  ;;  %v8206_v43 = vcombine.high %v26_v58, %v30_v59  ;;  %v6768_v61 = vld [vmem:[%s9870_s1 + $0xa58] ss:$40 sps:$4 sm:$0xff]  }
  0x98   :  { %4121 = vmatpush1.bf16.msra.mxu0 %v6696_v60  ;;  %4228 = vmatprep.subr.bf16.mxu1 %v6707_v63  ;;  %v6770_v60 = vld [vmem:[%s9870_s1 + $0xa5c] ss:$40 sps:$4 sm:$0xff]   ;;  %v6776_v63 = vld [vmem:[%s9870_s1 + $0xaac] ss:$40 sps:$4 sm:$0xff]  }
  0x99   :  { %4122 = vmatprep.subr.bf16.mxu0 %v6704_v62  ;;  %v6771_v62 = vld [vmem:[%s9870_s1 + $0x60] ss:$40 sps:$4 sm:$0xff]  }
  0x9b   :  { %4229 = vmatpush1.bf16.msra.mxu1 %v6705_v1  ;;  %v8224_v1 = vcombine.low %v26_v58, %v30_v59  ;;  %v6834_v58 = vld [vmem:[%s9870_s1 + $0xdc8] ss:$40 sps:$4 sm:$0xff]  }
  0x9c   :  { %4123 = vmatpush1.bf16.msra.mxu0 %v6702_v0  ;;  %4230 = vmatprep.subr.bf16.mxu1 %v6713_v3  ;;  %v6779_v0 = vld [vmem:[%s9870_s1 + $0xb4] ss:$40 sps:$4 sm:$0xff]   ;;  %v6777_v3 = vld [vmem:[%s9870_s1 + $0xb0] ss:$40 sps:$4 sm:$0xff]  }
  0x9d   :  { %4124 = vmatprep.subr.bf16.mxu0 %v6710_v2  ;;  %v6774_v2 = vld [vmem:[%s9870_s1 + $0xaa8] ss:$40 sps:$4 sm:$0xff]  }
  0x9e   :  { %v6837_v59 = vld [vmem:[%s9870_s1 + $0x3d0] ss:$40 sps:$4 sm:$0xff]  }
  0x9f   :  { %4231 = vmatpush1.bf16.msra.mxu1 %v6711_v5  ;;  %v6785_v5 = vld [vmem:[%s9870_s1 + $0x104] ss:$40 sps:$4 sm:$0xff]  }
  0xa0   :  { %4125 = vmatpush1.bf16.msra.mxu0 %v6708_v4  ;;  %4232 = vmatprep.subr.bf16.mxu1 %v6719_v7  ;;  %v6782_v4 = vld [vmem:[%s9870_s1 + $0xafc] ss:$40 sps:$4 sm:$0xff]   ;;  %v6783_v7 = vld [vmem:[%s9870_s1 + $0x100] ss:$40 sps:$4 sm:$0xff]  }
  0xa1   :  { %4126 = vmatprep.subr.bf16.mxu0 %v6716_v6  ;;  %v6780_v6 = vld [vmem:[%s9870_s1 + $0xaf8] ss:$40 sps:$4 sm:$0xff]  }
  0xa3   :  { %4233 = vmatpush1.bf16.msra.mxu1 %v6717_v9  ;;  %v6791_v9 = vld [vmem:[%s9870_s1 + $0x154] ss:$40 sps:$4 sm:$0xff]  }
  0xa4   :  { %4127 = vmatpush1.bf16.msra.mxu0 %v6714_v8  ;;  %4234 = vmatprep.subr.bf16.mxu1 %v6725_v13  ;;  %v6788_v8 = vld [vmem:[%s9870_s1 + $0xb4c] ss:$40 sps:$4 sm:$0xff]   ;;  %v6789_v13 = vld [vmem:[%s9870_s1 + $0x150] ss:$40 sps:$4 sm:$0xff]  }
  0xa5   :  { %4128 = vmatprep.subr.bf16.mxu0 %v6722_v12  ;;  %v6786_v12 = vld [vmem:[%s9870_s1 + $0xb48] ss:$40 sps:$4 sm:$0xff]  }
  0xa7   :  { %4235 = vmatpush1.bf16.msra.mxu1 %v6723_v15  ;;  %v6797_v15 = vld [vmem:[%s9870_s1 + $0x1a4] ss:$40 sps:$4 sm:$0xff]  }
  0xa8   :  { %4129 = vmatpush1.bf16.msra.mxu0 %v6720_v14  ;;  %4236 = vmatprep.subr.bf16.mxu1 %v6731_v17  ;;  %v6794_v14 = vld [vmem:[%s9870_s1 + $0xb9c] ss:$40 sps:$4 sm:$0xff]   ;;  %v6795_v17 = vld [vmem:[%s9870_s1 + $0x1a0] ss:$40 sps:$4 sm:$0xff]  }
  0xa9   :  { %4130 = vmatprep.subr.bf16.mxu0 %v6728_v16  ;;  %v6792_v16 = vld [vmem:[%s9870_s1 + $0xb98] ss:$40 sps:$4 sm:$0xff]  }
  0xab   :  { %4237 = vmatpush1.bf16.msra.mxu1 %v6729_v19  ;;  %v6803_v19 = vld [vmem:[%s9870_s1 + $0x1f4] ss:$40 sps:$4 sm:$0xff]  }
  0xac   :  { %4131 = vmatpush1.bf16.msra.mxu0 %v6726_v18  ;;  %4238 = vmatprep.subr.bf16.mxu1 %v6737_v21  ;;  %v6800_v18 = vld [vmem:[%s9870_s1 + $0xbec] ss:$40 sps:$4 sm:$0xff]   ;;  %v6801_v21 = vld [vmem:[%s9870_s1 + $0x1f0] ss:$40 sps:$4 sm:$0xff]  }
  0xad   :  { %4132 = vmatprep.subr.bf16.mxu0 %v6734_v20  ;;  %v6798_v20 = vld [vmem:[%s9870_s1 + $0xbe8] ss:$40 sps:$4 sm:$0xff]  }
  0xaf   :  { %4239 = vmatpush1.bf16.msra.mxu1 %v6735_v23  ;;  %v6809_v23 = vld [vmem:[%s9870_s1 + $0x244] ss:$40 sps:$4 sm:$0xff]  }
  0xb0   :  { %4133 = vmatpush1.bf16.msra.mxu0 %v6732_v22  ;;  %4240 = vmatprep.subr.bf16.mxu1 %v6743_v25  ;;  %v6806_v22 = vld [vmem:[%s9870_s1 + $0xc3c] ss:$40 sps:$4 sm:$0xff]   ;;  %v6807_v25 = vld [vmem:[%s9870_s1 + $0x240] ss:$40 sps:$4 sm:$0xff]  }
  0xb1   :  { %4134 = vmatprep.subr.bf16.mxu0 %v6740_v24  ;;  %v6804_v24 = vld [vmem:[%s9870_s1 + $0xc38] ss:$40 sps:$4 sm:$0xff]  }
  0xb3   :  { %4241 = vmatpush1.bf16.msra.mxu1 %v6741_v28  ;;  %v6815_v28 = vld [vmem:[%s9870_s1 + $0x294] ss:$40 sps:$4 sm:$0xff]  }
  0xb4   :  { %4135 = vmatpush1.bf16.msra.mxu0 %v6738_v26  ;;  %4242 = vmatprep.subr.bf16.mxu1 %v6749_v30  ;;  %v6812_v26 = vld [vmem:[%s9870_s1 + $0xc8c] ss:$40 sps:$4 sm:$0xff]   ;;  %v6813_v30 = vld [vmem:[%s9870_s1 + $0x290] ss:$40 sps:$4 sm:$0xff]  }
  0xb5   :  { %4136 = vmatprep.subr.bf16.mxu0 %v6746_v29  ;;  %v6810_v29 = vld [vmem:[%s9870_s1 + $0xc88] ss:$40 sps:$4 sm:$0xff]  }
  0xb7   :  { %4243 = vmatpush1.bf16.msra.mxu1 %v6747_v34  ;;  %v6821_v34 = vld [vmem:[%s9870_s1 + $0x2e4] ss:$40 sps:$4 sm:$0xff]  }
  0xb8   :  { %4137 = vmatpush1.bf16.msra.mxu0 %v6744_v31  ;;  %4244 = vmatprep.subr.bf16.mxu1 %v6755_v36  ;;  %v6818_v31 = vld [vmem:[%s9870_s1 + $0xcdc] ss:$40 sps:$4 sm:$0xff]   ;;  %v6819_v36 = vld [vmem:[%s9870_s1 + $0x2e0] ss:$40 sps:$4 sm:$0xff]  }
  0xb9   :  { %4138 = vmatprep.subr.bf16.mxu0 %v6752_v35  ;;  %v6816_v35 = vld [vmem:[%s9870_s1 + $0xcd8] ss:$40 sps:$4 sm:$0xff]  }
  0xbb   :  { %4245 = vmatpush1.bf16.msra.mxu1 %v6753_v44  ;;  %v6827_v44 = vld [vmem:[%s9870_s1 + $0x334] ss:$40 sps:$4 sm:$0xff]  }
  0xbc   :  { %4139 = vmatpush1.bf16.msra.mxu0 %v6750_v40  ;;  %4246 = vmatprep.subr.bf16.mxu1 %v6761_v46  ;;  %v6824_v40 = vld [vmem:[%s9870_s1 + $0xd2c] ss:$40 sps:$4 sm:$0xff]   ;;  %v6825_v46 = vld [vmem:[%s9870_s1 + $0x330] ss:$40 sps:$4 sm:$0xff]  }
  0xbd   :  { %4140 = vmatprep.subr.bf16.mxu0 %v6758_v45  ;;  %v6822_v45 = vld [vmem:[%s9870_s1 + $0xd28] ss:$40 sps:$4 sm:$0xff]  }
  0xbf   :  { %4247 = vmatpush1.bf16.msra.mxu1 %v6759_v50  ;;  %v6833_v50 = vld [vmem:[%s9870_s1 + $0x384] ss:$40 sps:$4 sm:$0xff]  }
  0xc0   :  { %4141 = vmatpush1.bf16.msra.mxu0 %v6756_v47  ;;  %4269 = vmatprep.subr.bf16.mxu1 %v6764_v51  ;;  %v6830_v47 = vld [vmem:[%s9870_s1 + $0xd7c] ss:$40 sps:$4 sm:$0xff]   ;;  %v6828_v51 = vld [vmem:[%s9870_s1 + $0xd78] ss:$40 sps:$4 sm:$0xff]  }
  0xc1   :  { %4375 = vmatprep.subr.bf16.mxu0 %v6767_v52  ;;  %v6831_v52 = vld [vmem:[%s9870_s1 + $0x380] ss:$40 sps:$4 sm:$0xff]  }
  0xc2   :  { %4249 = vmatmul.mubr.bf16.vlgmr.msra.gmra.mrb[8].mxu1 %v7726_v11 }
  0xc3   :  { %4143 = vmatmul.mubr.bf16.vlgmr.msra.gmra.mrb[0].mxu0 %v8192_v57  ;;  %4270 = vmatpush1.bf16.msra.mxu1 %v6762_v55  ;;  %v6836_v55 = vld [vmem:[%s9870_s1 + $0xdcc] ss:$40 sps:$4 sm:$0xff]  }
  0xc4   :  { %4376 = vmatpush1.bf16.msra.mxu0 %v6765_v56  ;;  %4271 = vmatprep.subr.bf16.mxu1 %v6770_v60  ;;  %v6839_v56 = vld [vmem:[%s9870_s1 + $0x3d4] ss:$40 sps:$4 sm:$0xff]  }
  0xc5   :  { %4377 = vmatprep.subr.bf16.mxu0 %v6773_v41  ;;  %4152 = vmatprep.mubr.bf16.mxu0 %v8206_v43  ;;  %v6842_v60 = vld [vmem:[%s9870_s1 + $0xe1c] ss:$40 sps:$4 sm:$0xff]  }
  0xc6   :  { %4258 = vmatprep.mubr.bf16.mxu1 %v7804_v37  ;;  %v6845_v41 = vld [vmem:[%s9870_s1 + $0x424] ss:$40 sps:$4 sm:$0xff]  }
  0xc7   :  { %4272 = vmatpush1.bf16.msra.mxu1 %v6768_v61  ;;  %v6840_v61 = vld [vmem:[%s9870_s1 + $0xe18] ss:$40 sps:$4 sm:$0xff]  }
  0xc8   :  { %4378 = vmatpush1.bf16.msra.mxu0 %v6771_v62  ;;  %4273 = vmatprep.subr.bf16.mxu1 %v6776_v63  ;;  %v6843_v62 = vld [vmem:[%s9870_s1 + $0x420] ss:$40 sps:$4 sm:$0xff]   ;;  %v6848_v63 = vld [vmem:[%s9870_s1 + $0xe6c] ss:$40 sps:$4 sm:$0xff]  }
  0xc9   :  { %4379 = vmatprep.subr.bf16.mxu0 %v6779_v0  ;;  %v6851_v0 = vld [vmem:[%s9870_s1 + $0x474] ss:$40 sps:$4 sm:$0xff]  }
  0xca   :  { %4259 = vmatmul.mubr.bf16.gmra.mrb[12].mxu1 %v7808_v39 }
  0xcb   :  { %4153 = vmatmul.mubr.bf16.gmra.mrb[4].mxu0 %v8224_v1  ;;  %4274 = vmatpush1.bf16.msra.mxu1 %v6774_v2  ;;  %v6846_v2 = vld [vmem:[%s9870_s1 + $0xe68] ss:$40 sps:$4 sm:$0xff]  }
  0xcc   :  { %4380 = vmatpush1.bf16.msra.mxu0 %v6777_v3  ;;  %4275 = vmatprep.subr.bf16.mxu1 %v6782_v4  ;;  %v6849_v3 = vld [vmem:[%s9870_s1 + $0x470] ss:$40 sps:$4 sm:$0xff]   ;;  %v6854_v4 = vld [vmem:[%s9870_s1 + $0xebc] ss:$40 sps:$4 sm:$0xff]  }
  0xcd   :  { %4381 = vmatprep.subr.bf16.mxu0 %v6785_v5  ;;  %4301 = vmatprep.mubr.bf16.mxu1 %v7844_v48  ;;  %v6857_v5 = vld [vmem:[%s9870_s1 + $0x4c4] ss:$40 sps:$4 sm:$0xff]  }
  0xce   :  { %4407 = vmatprep.mubr.bf16.mxu0 %v7661_v53 }
  0xcf   :  { %4276 = vmatpush1.bf16.msra.mxu1 %v6780_v6  ;;  %v6852_v6 = vld [vmem:[%s9870_s1 + $0xeb8] ss:$40 sps:$4 sm:$0xff]  }
  0xd0   :  { %4382 = vmatpush1.bf16.msra.mxu0 %v6783_v7  ;;  %4277 = vmatprep.subr.bf16.mxu1 %v6788_v8  ;;  %v6855_v7 = vld [vmem:[%s9870_s1 + $0x4c0] ss:$40 sps:$4 sm:$0xff]   ;;  %v6860_v8 = vld [vmem:[%s9870_s1 + $0xf0c] ss:$40 sps:$4 sm:$0xff]  }
  0xd1   :  { %4383 = vmatprep.subr.bf16.mxu0 %v6791_v9  ;;  %v6863_v9 = vld [vmem:[%s9870_s1 + $0x514] ss:$40 sps:$4 sm:$0xff]  }
  0xd3   :  { %4278 = vmatpush1.bf16.msra.mxu1 %v6786_v12  ;;  %v6858_v12 = vld [vmem:[%s9870_s1 + $0xf08] ss:$40 sps:$4 sm:$0xff]  }
  0xd4   :  { %4384 = vmatpush1.bf16.msra.mxu0 %v6789_v13  ;;  %4279 = vmatprep.subr.bf16.mxu1 %v6794_v14  ;;  %v6861_v13 = vld [vmem:[%s9870_s1 + $0x510] ss:$40 sps:$4 sm:$0xff]   ;;  %v6866_v14 = vld [vmem:[%s9870_s1 + $0xf5c] ss:$40 sps:$4 sm:$0xff]  }
  0xd5   :  { %4385 = vmatprep.subr.bf16.mxu0 %v6797_v15  ;;  %v6869_v15 = vld [vmem:[%s9870_s1 + $0x564] ss:$40 sps:$4 sm:$0xff]  }
  0xd7   :  { %4280 = vmatpush1.bf16.msra.mxu1 %v6792_v16  ;;  %v6864_v16 = vld [vmem:[%s9870_s1 + $0xf58] ss:$40 sps:$4 sm:$0xff]  }
  0xd8   :  { %4386 = vmatpush1.bf16.msra.mxu0 %v6795_v17  ;;  %4281 = vmatprep.subr.bf16.mxu1 %v6800_v18  ;;  %v6867_v17 = vld [vmem:[%s9870_s1 + $0x560] ss:$40 sps:$4 sm:$0xff]   ;;  %v6872_v18 = vld [vmem:[%s9870_s1 + $0xfac] ss:$40 sps:$4 sm:$0xff]  }
  0xd9   :  { %4387 = vmatprep.subr.bf16.mxu0 %v6803_v19  ;;  %v6875_v19 = vld [vmem:[%s9870_s1 + $0x5b4] ss:$40 sps:$4 sm:$0xff]  }
  0xdb   :  { %4282 = vmatpush1.bf16.msra.mxu1 %v6798_v20  ;;  %v6870_v20 = vld [vmem:[%s9870_s1 + $0xfa8] ss:$40 sps:$4 sm:$0xff]  }
  0xdc   :  { %4388 = vmatpush1.bf16.msra.mxu0 %v6801_v21  ;;  %4283 = vmatprep.subr.bf16.mxu1 %v6806_v22  ;;  %v6873_v21 = vld [vmem:[%s9870_s1 + $0x5b0] ss:$40 sps:$4 sm:$0xff]   ;;  %v6878_v22 = vld [vmem:[%s9870_s1 + $0xffc] ss:$40 sps:$4 sm:$0xff]  }
  0xdd   :  { %4389 = vmatprep.subr.bf16.mxu0 %v6809_v23  ;;  %v6881_v23 = vld [vmem:[%s9870_s1 + $0x604] ss:$40 sps:$4 sm:$0xff]  }
  0xdf   :  { %4284 = vmatpush1.bf16.msra.mxu1 %v6804_v24  ;;  %v6876_v24 = vld [vmem:[%s9870_s1 + $0xff8] ss:$40 sps:$4 sm:$0xff]  }
  0xe0   :  { %4390 = vmatpush1.bf16.msra.mxu0 %v6807_v25  ;;  %4285 = vmatprep.subr.bf16.mxu1 %v6812_v26  ;;  %v6879_v25 = vld [vmem:[%s9870_s1 + $0x600] ss:$40 sps:$4 sm:$0xff]   ;;  %v6884_v26 = vld [vmem:[%s9870_s1 + $0x104c] ss:$40 sps:$4 sm:$0xff]  }
  0xe1   :  { %4391 = vmatprep.subr.bf16.mxu0 %v6815_v28  ;;  %v6887_v28 = vld [vmem:[%s9870_s1 + $0x654] ss:$40 sps:$4 sm:$0xff]  }
  0xe3   :  { %4286 = vmatpush1.bf16.msra.mxu1 %v6810_v29  ;;  %v6882_v29 = vld [vmem:[%s9870_s1 + $0x1048] ss:$40 sps:$4 sm:$0xff]  }
  0xe4   :  { %4392 = vmatpush1.bf16.msra.mxu0 %v6813_v30  ;;  %4287 = vmatprep.subr.bf16.mxu1 %v6818_v31  ;;  %v6885_v30 = vld [vmem:[%s9870_s1 + $0x650] ss:$40 sps:$4 sm:$0xff]   ;;  %v6890_v31 = vld [vmem:[%s9870_s1 + $0x109c] ss:$40 sps:$4 sm:$0xff]  }
  0xe5   :  { %4393 = vmatprep.subr.bf16.mxu0 %v6821_v34  ;;  %v6893_v34 = vld [vmem:[%s9870_s1 + $0x6a4] ss:$40 sps:$4 sm:$0xff]  }
  0xe7   :  { %4288 = vmatpush1.bf16.msra.mxu1 %v6816_v35  ;;  %v6888_v35 = vld [vmem:[%s9870_s1 + $0x1098] ss:$40 sps:$4 sm:$0xff]  }
  0xe8   :  { %4394 = vmatpush1.bf16.msra.mxu0 %v6819_v36  ;;  %4289 = vmatprep.subr.bf16.mxu1 %v6824_v40  ;;  %v6891_v36 = vld [vmem:[%s9870_s1 + $0x6a0] ss:$40 sps:$4 sm:$0xff]   ;;  %v6896_v40 = vld [vmem:[%s9870_s1 + $0x10ec] ss:$40 sps:$4 sm:$0xff]  }
  0xe9   :  { %4395 = vmatprep.subr.bf16.mxu0 %v6827_v44  ;;  %v6899_v44 = vld [vmem:[%s9870_s1 + $0x6f4] ss:$40 sps:$4 sm:$0xff]  }
  0xeb   :  { %4290 = vmatpush1.bf16.msra.mxu1 %v6822_v45  ;;  %v6894_v45 = vld [vmem:[%s9870_s1 + $0x10e8] ss:$40 sps:$4 sm:$0xff]  }
  0xec   :  { %4396 = vmatpush1.bf16.msra.mxu0 %v6825_v46  ;;  %4291 = vmatprep.subr.bf16.mxu1 %v6830_v47  ;;  %v6897_v46 = vld [vmem:[%s9870_s1 + $0x6f0] ss:$40 sps:$4 sm:$0xff]  }
  0xed   :  { %4397 = vmatprep.subr.bf16.mxu0 %v6833_v50 }
  0xef   :  { %4292 = vmatpush1.bf16.msra.mxu1 %v6828_v51 }
  0xf0   :  { %4398 = vmatpush1.bf16.msra.mxu0 %v6831_v52  ;;  %4293 = vmatprep.subr.bf16.mxu1 %v6836_v55  ;;  %v6902_v52 = vld [vmem:[%s9870_s1 + $0x113c] ss:$40 sps:$4 sm:$0xff]  }
  0xf1   :  { %4399 = vmatprep.subr.bf16.mxu0 %v6839_v56  ;;  %v6905_v55 = vld [vmem:[%s9870_s1 + $0x744] ss:$40 sps:$4 sm:$0xff]  }
  0xf3   :  { %4294 = vmatpush1.bf16.msra.mxu1 %v6834_v58  ;;  %v6900_v58 = vld [vmem:[%s9870_s1 + $0x1138] ss:$40 sps:$4 sm:$0xff]  }
  0xf4   :  { %4400 = vmatpush1.bf16.msra.mxu0 %v6837_v59  ;;  %4295 = vmatprep.subr.bf16.mxu1 %v6842_v60  ;;  %v6903_v59 = vld [vmem:[%s9870_s1 + $0x740] ss:$40 sps:$4 sm:$0xff]   ;;  %v6908_v60 = vld [vmem:[%s9870_s1 + $0x118c] ss:$40 sps:$4 sm:$0xff]  }
  0xf5   :  { %4401 = vmatprep.subr.bf16.mxu0 %v6845_v41  ;;  %v6911_v41 = vld [vmem:[%s9870_s1 + $0x794] ss:$40 sps:$4 sm:$0xff]  }
  0xf7   :  { %4296 = vmatpush1.bf16.msra.mxu1 %v6840_v61  ;;  %v6906_v61 = vld [vmem:[%s9870_s1 + $0x1188] ss:$40 sps:$4 sm:$0xff]  }
  0xf8   :  { %4402 = vmatpush1.bf16.msra.mxu0 %v6843_v62  ;;  %4297 = vmatprep.subr.bf16.mxu1 %v6848_v63  ;;  %v6909_v62 = vld [vmem:[%s9870_s1 + $0x790] ss:$40 sps:$4 sm:$0xff]   ;;  %v6914_v63 = vld [vmem:[%s9870_s1 + $0x11dc] ss:$40 sps:$4 sm:$0xff]  }
  0xf9   :  { %4403 = vmatprep.subr.bf16.mxu0 %v6851_v0  ;;  %v6917_v0 = vld [vmem:[%s9870_s1 + $0x7e4] ss:$40 sps:$4 sm:$0xff]  }
  0xfb   :  { %4298 = vmatpush1.bf16.msra.mxu1 %v6846_v2  ;;  %v6912_v2 = vld [vmem:[%s9870_s1 + $0x11d8] ss:$40 sps:$4 sm:$0xff]  }
  0xfc   :  { %4404 = vmatpush1.bf16.msra.mxu0 %v6849_v3  ;;  %4299 = vmatprep.subr.bf16.mxu1 %v6854_v4  ;;  %v6915_v3 = vld [vmem:[%s9870_s1 + $0x7e0] ss:$40 sps:$4 sm:$0xff]   ;;  %v6920_v4 = vld [vmem:[%s9870_s1 + $0x122c] ss:$40 sps:$4 sm:$0xff]  }
  0xfd   :  { %4405 = vmatprep.subr.bf16.mxu0 %v6857_v5  ;;  %v6923_v5 = vld [vmem:[%s9870_s1 + $0x834] ss:$40 sps:$4 sm:$0xff]  }
  0xff   :  { %4300 = vmatpush1.bf16.msra.mxu1 %v6852_v6  ;;  %v6918_v6 = vld [vmem:[%s9870_s1 + $0x1228] ss:$40 sps:$4 sm:$0xff]  }
 0x100   :  { %4406 = vmatpush1.bf16.msra.mxu0 %v6855_v7  ;;  %4322 = vmatprep.subr.bf16.mxu1 %v6860_v8  ;;  %v6921_v7 = vld [vmem:[%s9870_s1 + $0x830] ss:$40 sps:$4 sm:$0xff]   ;;  %v6926_v8 = vld [vmem:[%s9870_s1 + $0x127c] ss:$40 sps:$4 sm:$0xff]  }
 0x101   :  { %4428 = vmatprep.subr.bf16.mxu0 %v6863_v9  ;;  %v6929_v9 = vld [vmem:[%s9870_s1 + $0x884] ss:$40 sps:$4 sm:$0xff]  }
 0x102   :  { %4302 = vmatmul.mubr.bf16.vlgmr.msra.gmra.mrb[8].mxu1 %v7964_v27 }
 0x103   :  { %4408 = vmatmul.mubr.bf16.vlgmr.msra.gmra.mrb[8].mxu0 %v7724_v10  ;;  %4323 = vmatpush1.bf16.msra.mxu1 %v6858_v12 }
 0x104   :  { %4429 = vmatpush1.bf16.msra.mxu0 %v6861_v13  ;;  %4324 = vmatprep.subr.bf16.mxu1 %v6866_v14  ;;  %v6924_v14 = vld [vmem:[%s9870_s1 + $0x1278] ss:$40 sps:$4 sm:$0xff]  }
 0x105   :  { %4430 = vmatprep.subr.bf16.mxu0 %v6869_v15  ;;  %4311 = vmatprep.mubr.bf16.mxu1 %v7978_v33  ;;  %v6927_v15 = vld [vmem:[%s9870_s1 + $0x880] ss:$40 sps:$4 sm:$0xff]  }
 0x106   :  { %4417 = vmatprep.mubr.bf16.mxu0 %v7790_v32 }
 0x107   :  { %4325 = vmatpush1.bf16.msra.mxu1 %v6864_v16 }
 0x108   :  { %4431 = vmatpush1.bf16.msra.mxu0 %v6867_v17  ;;  %4326 = vmatprep.subr.bf16.mxu1 %v6872_v18  ;;  %v6932_v17 = vld [vmem:[%s9870_s1 + $0x12cc] ss:$40 sps:$4 sm:$0xff]  }
 0x109   :  { %4432 = vmatprep.subr.bf16.mxu0 %v6875_v19  ;;  %v6935_v18 = vld [vmem:[%s9870_s1 + $0x8d4] ss:$40 sps:$4 sm:$0xff]  }
 0x10a   :  { %4312 = vmatmul.mubr.bf16.gmra.mrb[12].mxu1 %v8001_v42 }
 0x10b   :  { %4418 = vmatmul.mubr.bf16.gmra.mrb[12].mxu0 %v7806_v38  ;;  %4327 = vmatpush1.bf16.msra.mxu1 %v6870_v20  ;;  %v6930_v20 = vld [vmem:[%s9870_s1 + $0x12c8] ss:$40 sps:$4 sm:$0xff]  }
 0x10c   :  { %4433 = vmatpush1.bf16.msra.mxu0 %v6873_v21  ;;  %4328 = vmatprep.subr.bf16.mxu1 %v6878_v22  ;;  %v6933_v21 = vld [vmem:[%s9870_s1 + $0x8d0] ss:$40 sps:$4 sm:$0xff]   ;;  %v6938_v22 = vld [vmem:[%s9870_s1 + $0x131c] ss:$40 sps:$4 sm:$0xff]  }
 0x10d   :  { %4434 = vmatprep.subr.bf16.mxu0 %v6881_v23  ;;  %4354 = vmatprep.mubr.bf16.mxu1 %v8022_v49  ;;  %v6941_v23 = vld [vmem:[%s9870_s1 + $0x924] ss:$40 sps:$4 sm:$0xff]  }
 0x10e   :  { %4460 = vmatprep.mubr.bf16.mxu0 %v7663_v54 }
 0x10f   :  { %4329 = vmatpush1.bf16.msra.mxu1 %v6876_v24  ;;  %v6936_v24 = vld [vmem:[%s9870_s1 + $0x1318] ss:$40 sps:$4 sm:$0xff]  }
 0x110   :  { %4435 = vmatpush1.bf16.msra.mxu0 %v6879_v25  ;;  %4330 = vmatprep.subr.bf16.mxu1 %v6884_v26  ;;  %v6939_v25 = vld [vmem:[%s9870_s1 + $0x920] ss:$40 sps:$4 sm:$0xff]   ;;  %v6944_v26 = vld [vmem:[%s9870_s1 + $0x136c] ss:$40 sps:$4 sm:$0xff]  }
 0x111   :  { %4436 = vmatprep.subr.bf16.mxu0 %v6887_v28  ;;  %v6947_v28 = vld [vmem:[%s9870_s1 + $0x974] ss:$40 sps:$4 sm:$0xff]  }
 0x113   :  { %4331 = vmatpush1.bf16.msra.mxu1 %v6882_v29  ;;  %v6942_v29 = vld [vmem:[%s9870_s1 + $0x1368] ss:$40 sps:$4 sm:$0xff]  }
 0x114   :  { %4437 = vmatpush1.bf16.msra.mxu0 %v6885_v30  ;;  %4332 = vmatprep.subr.bf16.mxu1 %v6890_v31  ;;  %v6945_v30 = vld [vmem:[%s9870_s1 + $0x970] ss:$40 sps:$4 sm:$0xff]   ;;  %v6950_v31 = vld [vmem:[%s9870_s1 + $0x13bc] ss:$40 sps:$4 sm:$0xff]  }
 0x115   :  { %4438 = vmatprep.subr.bf16.mxu0 %v6893_v34  ;;  %v8484_v47 = vpop.f32.mrb[0].mxu1  ;;  %v6953_v34 = vld [vmem:[%s9870_s1 + $0x9c4] ss:$40 sps:$4 sm:$0xff]  }
 0x116   :  { %v8486_v50 = vpop.f32.mrb[1].mxu1 }
 0x117   :  { %4333 = vmatpush1.bf16.msra.mxu1 %v6888_v35  ;;  %v8488_v51 = vpop.f32.mrb[2].mxu1  ;;  %v6948_v35 = vld [vmem:[%s9870_s1 + $0x13b8] ss:$40 sps:$4 sm:$0xff]  }
 0x118   :  { %4439 = vmatpush1.bf16.msra.mxu0 %v6891_v36  ;;  %4334 = vmatprep.subr.bf16.mxu1 %v6896_v40  ;;  %v8496_v56 = vpop.f32.mrb[3].mxu1  ;;  %v6951_v36 = vld [vmem:[%s9870_s1 + $0x9c0] ss:$40 sps:$4 sm:$0xff]   ;;  %v6956_v40 = vld [vmem:[%s9870_s1 + $0xa14] ss:$40 sps:$4 sm:$0xff]  }
 0x119   :  { %4440 = vmatprep.subr.bf16.mxu0 %v6899_v44  ;;  %v6959_v44 = vld [vmem:[%s9870_s1 + $0x1c] ss:$40 sps:$4 sm:$0xff]  }
 0x11b   :  { %4335 = vmatpush1.bf16.msra.mxu1 %v6894_v45  ;;  %v6954_v45 = vld [vmem:[%s9870_s1 + $0xa10] ss:$40 sps:$4 sm:$0xff]  }
 0x11c   :  { %4441 = vmatpush1.bf16.msra.mxu0 %v6897_v46  ;;  %4336 = vmatprep.subr.bf16.mxu1 %v6902_v52  ;;  %v6957_v46 = vld [vmem:[%s9870_s1 + $0x18] ss:$40 sps:$4 sm:$0xff]   ;;  %v6962_v52 = vld [vmem:[%s9870_s1 + $0xa64] ss:$40 sps:$4 sm:$0xff]  }
 0x11d   :  { %4442 = vmatprep.subr.bf16.mxu0 %v6905_v55  ;;  %v8546_v12 = vpop.f32.mrb[4].mxu1  ;;  %v6965_v55 = vld [vmem:[%s9870_s1 + $0x6c] ss:$40 sps:$4 sm:$0xff]  }
 0x11e   :  { %v8548_v13 = vpop.f32.mrb[5].mxu1 }
 0x11f   :  { %4337 = vmatpush1.bf16.msra.mxu1 %v6900_v58  ;;  %v8556_v16 = vpop.f32.mrb[6].mxu1  ;;  %v6960_v58 = vld [vmem:[%s9870_s1 + $0xa60] ss:$40 sps:$4 sm:$0xff]  }
 0x120   :  { %4443 = vmatpush1.bf16.msra.mxu0 %v6903_v59  ;;  %4338 = vmatprep.subr.bf16.mxu1 %v6908_v60  ;;  %v8564_v19 = vpop.f32.mrb[7].mxu1  ;;  %v6963_v59 = vld [vmem:[%s9870_s1 + $0x68] ss:$40 sps:$4 sm:$0xff]   ;;  %v6968_v60 = vld [vmem:[%s9870_s1 + $0xab4] ss:$40 sps:$4 sm:$0xff]  }
 0x121   :  { %4444 = vmatprep.subr.bf16.mxu0 %v6911_v41  ;;  %v6971_v41 = vld [vmem:[%s9870_s1 + $0xbc] ss:$40 sps:$4 sm:$0xff]  }
 0x123   :  { %4339 = vmatpush1.bf16.msra.mxu1 %v6906_v61  ;;  %v6966_v61 = vld [vmem:[%s9870_s1 + $0xab0] ss:$40 sps:$4 sm:$0xff]  }
 0x124   :  { %4445 = vmatpush1.bf16.msra.mxu0 %v6909_v62  ;;  %4340 = vmatprep.subr.bf16.mxu1 %v6914_v63  ;;  %v6969_v62 = vld [vmem:[%s9870_s1 + $0xb8] ss:$40 sps:$4 sm:$0xff]   ;;  %v6974_v63 = vld [vmem:[%s9870_s1 + $0xb04] ss:$40 sps:$4 sm:$0xff]  }
 0x125   :  { %4446 = vmatprep.subr.bf16.mxu0 %v6917_v0  ;;  %v6977_v0 = vld [vmem:[%s9870_s1 + $0x10c] ss:$40 sps:$4 sm:$0xff]  }
 0x127   :  { %4341 = vmatpush1.bf16.msra.mxu1 %v6912_v2  ;;  %v6972_v2 = vld [vmem:[%s9870_s1 + $0xb00] ss:$40 sps:$4 sm:$0xff]  }
 0x128   :  { %4447 = vmatpush1.bf16.msra.mxu0 %v6915_v3  ;;  %4342 = vmatprep.subr.bf16.mxu1 %v6920_v4  ;;  %v6975_v3 = vld [vmem:[%s9870_s1 + $0x108] ss:$40 sps:$4 sm:$0xff]   ;;  %v6980_v4 = vld [vmem:[%s9870_s1 + $0xb54] ss:$40 sps:$4 sm:$0xff]  }
 0x129   :  { %4448 = vmatprep.subr.bf16.mxu0 %v6923_v5  ;;  %v6983_v5 = vld [vmem:[%s9870_s1 + $0x15c] ss:$40 sps:$4 sm:$0xff]  }
 0x12b   :  { %4343 = vmatpush1.bf16.msra.mxu1 %v6918_v6  ;;  %v6978_v6 = vld [vmem:[%s9870_s1 + $0xb50] ss:$40 sps:$4 sm:$0xff]  }
 0x12c   :  { %4449 = vmatpush1.bf16.msra.mxu0 %v6921_v7  ;;  %4344 = vmatprep.subr.bf16.mxu1 %v6926_v8  ;;  %v6981_v7 = vld [vmem:[%s9870_s1 + $0x158] ss:$40 sps:$4 sm:$0xff]   ;;  %v6986_v8 = vld [vmem:[%s9870_s1 + $0xba4] ss:$40 sps:$4 sm:$0xff]  }
 0x12d   :  { %4450 = vmatprep.subr.bf16.mxu0 %v6929_v9  ;;  %v6989_v9 = vld [vmem:[%s9870_s1 + $0x1ac] ss:$40 sps:$4 sm:$0xff]  }
 0x12f   :  { %4345 = vmatpush1.bf16.msra.mxu1 %v6924_v14  ;;  %v6984_v14 = vld [vmem:[%s9870_s1 + $0xba0] ss:$40 sps:$4 sm:$0xff]  }
 0x130   :  { %4451 = vmatpush1.bf16.msra.mxu0 %v6927_v15  ;;  %4346 = vmatprep.subr.bf16.mxu1 %v6932_v17  ;;  %v6987_v15 = vld [vmem:[%s9870_s1 + $0x1a8] ss:$40 sps:$4 sm:$0xff]   ;;  %v6992_v17 = vld [vmem:[%s9870_s1 + $0xbf4] ss:$40 sps:$4 sm:$0xff]  }
 0x131   :  { %4452 = vmatprep.subr.bf16.mxu0 %v6935_v18  ;;  %v6995_v18 = vld [vmem:[%s9870_s1 + $0x1fc] ss:$40 sps:$4 sm:$0xff]  }
 0x133   :  { %4347 = vmatpush1.bf16.msra.mxu1 %v6930_v20  ;;  %v6990_v20 = vld [vmem:[%s9870_s1 + $0xbf0] ss:$40 sps:$4 sm:$0xff]  }
 0x134   :  { %4453 = vmatpush1.bf16.msra.mxu0 %v6933_v21  ;;  %4348 = vmatprep.subr.bf16.mxu1 %v6938_v22  ;;  %v6993_v21 = vld [vmem:[%s9870_s1 + $0x1f8] ss:$40 sps:$4 sm:$0xff]   ;;  %v6998_v22 = vld [vmem:[%s9870_s1 + $0xc44] ss:$40 sps:$4 sm:$0xff]  }
 0x135   :  { %4454 = vmatprep.subr.bf16.mxu0 %v6941_v23  ;;  %v7001_v23 = vld [vmem:[%s9870_s1 + $0x24c] ss:$40 sps:$4 sm:$0xff]  }
 0x137   :  { %4349 = vmatpush1.bf16.msra.mxu1 %v6936_v24  ;;  %v6996_v24 = vld [vmem:[%s9870_s1 + $0xc40] ss:$40 sps:$4 sm:$0xff]  }
 0x138   :  { %4455 = vmatpush1.bf16.msra.mxu0 %v6939_v25  ;;  %4350 = vmatprep.subr.bf16.mxu1 %v6944_v26  ;;  %v6999_v25 = vld [vmem:[%s9870_s1 + $0x248] ss:$40 sps:$4 sm:$0xff]   ;;  %v7004_v26 = vld [vmem:[%s9870_s1 + $0xc94] ss:$40 sps:$4 sm:$0xff]  }
 0x139   :  { %4456 = vmatprep.subr.bf16.mxu0 %v6947_v28  ;;  %v7007_v28 = vld [vmem:[%s9870_s1 + $0x29c] ss:$40 sps:$4 sm:$0xff]  }
 0x13b   :  { %4351 = vmatpush1.bf16.msra.mxu1 %v6942_v29  ;;  %v7002_v29 = vld [vmem:[%s9870_s1 + $0xc90] ss:$40 sps:$4 sm:$0xff]  }
 0x13c   :  { %4457 = vmatpush1.bf16.msra.mxu0 %v6945_v30  ;;  %4352 = vmatprep.subr.bf16.mxu1 %v6950_v31  ;;  %v7005_v30 = vld [vmem:[%s9870_s1 + $0x298] ss:$40 sps:$4 sm:$0xff]   ;;  %v7010_v31 = vld [vmem:[%s9870_s1 + $0xce4] ss:$40 sps:$4 sm:$0xff]  }
 0x13d   :  { %4458 = vmatprep.subr.bf16.mxu0 %v6953_v34  ;;  %v7013_v34 = vld [vmem:[%s9870_s1 + $0x2ec] ss:$40 sps:$4 sm:$0xff]  }
 0x13f   :  { %4353 = vmatpush1.bf16.msra.mxu1 %v6948_v35  ;;  %v7008_v35 = vld [vmem:[%s9870_s1 + $0xce0] ss:$40 sps:$4 sm:$0xff]  }
 0x140   :  { %4459 = vmatpush1.bf16.msra.mxu0 %v6951_v36  ;;  %4587 = vmatprep.subr.bf16.mxu1 %v6959_v44  ;;  %v7011_v36 = vld [vmem:[%s9870_s1 + $0x2e8] ss:$40 sps:$4 sm:$0xff]   ;;  %v7019_v44 = vld [vmem:[%s9870_s1 + $0x33c] ss:$40 sps:$4 sm:$0xff]  }
 0x141   :  { %4481 = vmatprep.subr.bf16.mxu0 %v6956_v40  ;;  %v7016_v40 = vld [vmem:[%s9870_s1 + $0xd34] ss:$40 sps:$4 sm:$0xff]  }
 0x142   :  { %4355 = vmatmul.mubr.bf16.vlgmr.msra.gmra.mrb[8].mxu1 %v8192_v57 }
 0x143   :  { %4461 = vmatmul.mubr.bf16.vlgmr.msra.gmra.mrb[8].mxu0 %v7726_v11  ;;  %4588 = vmatpush1.bf16.msra.mxu1 %v6957_v46  ;;  %v7017_v46 = vld [vmem:[%s9870_s1 + $0x338] ss:$40 sps:$4 sm:$0xff]  }
 0x144   :  { %4482 = vmatpush1.bf16.msra.mxu0 %v6954_v45  ;;  %4589 = vmatprep.subr.bf16.mxu1 %v6965_v55  ;;  %v7014_v45 = vld [vmem:[%s9870_s1 + $0xd30] ss:$40 sps:$4 sm:$0xff]   ;;  %v7025_v55 = vld [vmem:[%s9870_s1 + $0x38c] ss:$40 sps:$4 sm:$0xff]  }
 0x145   :  { %4483 = vmatprep.subr.bf16.mxu0 %v6962_v52  ;;  %4364 = vmatprep.mubr.bf16.mxu1 %v8206_v43  ;;  %v7022_v52 = vld [vmem:[%s9870_s1 + $0xd84] ss:$40 sps:$4 sm:$0xff]  }
 0x146   :  { %4470 = vmatprep.mubr.bf16.mxu0 %v7804_v37 }
 0x147   :  { %4590 = vmatpush1.bf16.msra.mxu1 %v6963_v59  ;;  %v7023_v59 = vld [vmem:[%s9870_s1 + $0x388] ss:$40 sps:$4 sm:$0xff]  }
 0x148   :  { %4484 = vmatpush1.bf16.msra.mxu0 %v6960_v58  ;;  %4591 = vmatprep.subr.bf16.mxu1 %v6971_v41  ;;  %v7020_v58 = vld [vmem:[%s9870_s1 + $0xd80] ss:$40 sps:$4 sm:$0xff]   ;;  %v7031_v41 = vld [vmem:[%s9870_s1 + $0x3dc] ss:$40 sps:$4 sm:$0xff]  }
 0x149   :  { %4485 = vmatprep.subr.bf16.mxu0 %v6968_v60  ;;  %v7028_v60 = vld [vmem:[%s9870_s1 + $0xdd4] ss:$40 sps:$4 sm:$0xff]  }
 0x14a   :  { %4365 = vmatmul.mubr.bf16.gmra.mrb[12].mxu1 %v8224_v1 }
 0x14b   :  { %4471 = vmatmul.mubr.bf16.gmra.mrb[12].mxu0 %v7808_v39  ;;  %4592 = vmatpush1.bf16.msra.mxu1 %v6969_v62  ;;  %v7029_v62 = vld [vmem:[%s9870_s1 + $0x3d8] ss:$40 sps:$4 sm:$0xff]  }
 0x14c   :  { %4486 = vmatpush1.bf16.msra.mxu0 %v6966_v61  ;;  %4593 = vmatprep.subr.bf16.mxu1 %v6977_v0  ;;  %v7026_v61 = vld [vmem:[%s9870_s1 + $0xdd0] ss:$40 sps:$4 sm:$0xff]   ;;  %v7037_v0 = vld [vmem:[%s9870_s1 + $0x42c] ss:$40 sps:$4 sm:$0xff]  }
 0x14d   :  { %4487 = vmatprep.subr.bf16.mxu0 %v6974_v63  ;;  %4513 = vmatprep.mubr.bf16.mxu0 %v7844_v48  ;;  %v7034_v63 = vld [vmem:[%s9870_s1 + $0xe24] ss:$40 sps:$4 sm:$0xff]  }
 0x14e   :  { %4619 = vmatprep.mubr.bf16.mxu1 %v7661_v53 }
 0x14f   :  { %4594 = vmatpush1.bf16.msra.mxu1 %v6975_v3  ;;  %v7035_v3 = vld [vmem:[%s9870_s1 + $0x428] ss:$40 sps:$4 sm:$0xff]  }
 0x150   :  { %4488 = vmatpush1.bf16.msra.mxu0 %v6972_v2  ;;  %4595 = vmatprep.subr.bf16.mxu1 %v6983_v5  ;;  %v7032_v2 = vld [vmem:[%s9870_s1 + $0xe20] ss:$40 sps:$4 sm:$0xff]   ;;  %v7043_v5 = vld [vmem:[%s9870_s1 + $0x47c] ss:$40 sps:$4 sm:$0xff]  }
 0x151   :  { %4489 = vmatprep.subr.bf16.mxu0 %v6980_v4  ;;  %v7040_v4 = vld [vmem:[%s9870_s1 + $0xe74] ss:$40 sps:$4 sm:$0xff]  }
 0x153   :  { %4596 = vmatpush1.bf16.msra.mxu1 %v6981_v7  ;;  %v7041_v7 = vld [vmem:[%s9870_s1 + $0x478] ss:$40 sps:$4 sm:$0xff]  }
 0x154   :  { %4490 = vmatpush1.bf16.msra.mxu0 %v6978_v6  ;;  %4597 = vmatprep.subr.bf16.mxu1 %v6989_v9  ;;  %v7038_v6 = vld [vmem:[%s9870_s1 + $0xe70] ss:$40 sps:$4 sm:$0xff]   ;;  %v7049_v9 = vld [vmem:[%s9870_s1 + $0x4cc] ss:$40 sps:$4 sm:$0xff]  }
 0x155   :  { %4491 = vmatprep.subr.bf16.mxu0 %v6986_v8  ;;  %v7046_v8 = vld [vmem:[%s9870_s1 + $0xec4] ss:$40 sps:$4 sm:$0xff]  }
 0x157   :  { %4598 = vmatpush1.bf16.msra.mxu1 %v6987_v15  ;;  %v7047_v15 = vld [vmem:[%s9870_s1 + $0x4c8] ss:$40 sps:$4 sm:$0xff]  }
 0x158   :  { %4492 = vmatpush1.bf16.msra.mxu0 %v6984_v14  ;;  %4599 = vmatprep.subr.bf16.mxu1 %v6995_v18  ;;  %v7044_v14 = vld [vmem:[%s9870_s1 + $0xec0] ss:$40 sps:$4 sm:$0xff]   ;;  %v7055_v18 = vld [vmem:[%s9870_s1 + $0x51c] ss:$40 sps:$4 sm:$0xff]  }
 0x159   :  { %4493 = vmatprep.subr.bf16.mxu0 %v6992_v17  ;;  %v7052_v17 = vld [vmem:[%s9870_s1 + $0xf14] ss:$40 sps:$4 sm:$0xff]  }
 0x15b   :  { %4600 = vmatpush1.bf16.msra.mxu1 %v6993_v21  ;;  %v7053_v21 = vld [vmem:[%s9870_s1 + $0x518] ss:$40 sps:$4 sm:$0xff]  }
 0x15c   :  { %4494 = vmatpush1.bf16.msra.mxu0 %v6990_v20  ;;  %4601 = vmatprep.subr.bf16.mxu1 %v7001_v23  ;;  %v7050_v20 = vld [vmem:[%s9870_s1 + $0xf10] ss:$40 sps:$4 sm:$0xff]   ;;  %v7061_v23 = vld [vmem:[%s9870_s1 + $0x56c] ss:$40 sps:$4 sm:$0xff]  }
 0x15d   :  { %4495 = vmatprep.subr.bf16.mxu0 %v6998_v22  ;;  %v7058_v22 = vld [vmem:[%s9870_s1 + $0xf64] ss:$40 sps:$4 sm:$0xff]  }
 0x15f   :  { %4602 = vmatpush1.bf16.msra.mxu1 %v6999_v25  ;;  %v7059_v25 = vld [vmem:[%s9870_s1 + $0x568] ss:$40 sps:$4 sm:$0xff]  }
 0x160   :  { %4496 = vmatpush1.bf16.msra.mxu0 %v6996_v24  ;;  %4603 = vmatprep.subr.bf16.mxu1 %v7007_v28  ;;  %v7056_v24 = vld [vmem:[%s9870_s1 + $0xf60] ss:$40 sps:$4 sm:$0xff]   ;;  %v7067_v28 = vld [vmem:[%s9870_s1 + $0x5bc] ss:$40 sps:$4 sm:$0xff]  }
 0x161   :  { %4497 = vmatprep.subr.bf16.mxu0 %v7004_v26  ;;  %v7064_v26 = vld [vmem:[%s9870_s1 + $0xfb4] ss:$40 sps:$4 sm:$0xff]  }
 0x163   :  { %4604 = vmatpush1.bf16.msra.mxu1 %v7005_v30  ;;  %v7065_v30 = vld [vmem:[%s9870_s1 + $0x5b8] ss:$40 sps:$4 sm:$0xff]  }
 0x164   :  { %4498 = vmatpush1.bf16.msra.mxu0 %v7002_v29  ;;  %4605 = vmatprep.subr.bf16.mxu1 %v7013_v34  ;;  %v7062_v29 = vld [vmem:[%s9870_s1 + $0xfb0] ss:$40 sps:$4 sm:$0xff]   ;;  %v7073_v34 = vld [vmem:[%s9870_s1 + $0x60c] ss:$40 sps:$4 sm:$0xff]  }
 0x165   :  { %4499 = vmatprep.subr.bf16.mxu0 %v7010_v31  ;;  %v7070_v31 = vld [vmem:[%s9870_s1 + $0x1004] ss:$40 sps:$4 sm:$0xff]  }
 0x167   :  { %4606 = vmatpush1.bf16.msra.mxu1 %v7011_v36  ;;  %v7071_v36 = vld [vmem:[%s9870_s1 + $0x608] ss:$40 sps:$4 sm:$0xff]  }
 0x168   :  { %4500 = vmatpush1.bf16.msra.mxu0 %v7008_v35  ;;  %4607 = vmatprep.subr.bf16.mxu1 %v7019_v44  ;;  %v7068_v35 = vld [vmem:[%s9870_s1 + $0x1000] ss:$40 sps:$4 sm:$0xff]   ;;  %v7079_v44 = vld [vmem:[%s9870_s1 + $0x65c] ss:$40 sps:$4 sm:$0xff]  }
 0x169   :  { %4501 = vmatprep.subr.bf16.mxu0 %v7016_v40  ;;  %v7076_v40 = vld [vmem:[%s9870_s1 + $0x1054] ss:$40 sps:$4 sm:$0xff]  }
 0x16b   :  { %4608 = vmatpush1.bf16.msra.mxu1 %v7017_v46  ;;  %v7077_v46 = vld [vmem:[%s9870_s1 + $0x658] ss:$40 sps:$4 sm:$0xff]  }
 0x16c   :  { %4502 = vmatpush1.bf16.msra.mxu0 %v7014_v45  ;;  %4609 = vmatprep.subr.bf16.mxu1 %v7025_v55  ;;  %v7074_v45 = vld [vmem:[%s9870_s1 + $0x1050] ss:$40 sps:$4 sm:$0xff]   ;;  %v7085_v55 = vld [vmem:[%s9870_s1 + $0x6ac] ss:$40 sps:$4 sm:$0xff]  }
 0x16d   :  { %4503 = vmatprep.subr.bf16.mxu0 %v7022_v52  ;;  %v7082_v52 = vld [vmem:[%s9870_s1 + $0x10a4] ss:$40 sps:$4 sm:$0xff]  }
 0x16f   :  { %4610 = vmatpush1.bf16.msra.mxu1 %v7023_v59  ;;  %v7083_v59 = vld [vmem:[%s9870_s1 + $0x6a8] ss:$40 sps:$4 sm:$0xff]  }
 0x170   :  { %4504 = vmatpush1.bf16.msra.mxu0 %v7020_v58  ;;  %4611 = vmatprep.subr.bf16.mxu1 %v7031_v41  ;;  %v7080_v58 = vld [vmem:[%s9870_s1 + $0x10a0] ss:$40 sps:$4 sm:$0xff]   ;;  %v7091_v41 = vld [vmem:[%s9870_s1 + $0x6fc] ss:$40 sps:$4 sm:$0xff]  }
 0x171   :  { %4505 = vmatprep.subr.bf16.mxu0 %v7028_v60  ;;  %v7088_v60 = vld [vmem:[%s9870_s1 + $0x10f4] ss:$40 sps:$4 sm:$0xff]  }
 0x173   :  { %4612 = vmatpush1.bf16.msra.mxu1 %v7029_v62 }
 0x174   :  { %4506 = vmatpush1.bf16.msra.mxu0 %v7026_v61  ;;  %4613 = vmatprep.subr.bf16.mxu1 %v7037_v0 }
 0x175   :  { %4507 = vmatprep.subr.bf16.mxu0 %v7034_v63 }
 0x177   :  { %4614 = vmatpush1.bf16.msra.mxu1 %v7035_v3  ;;  %v7086_v3 = vld [vmem:[%s9870_s1 + $0x10f0] ss:$40 sps:$4 sm:$0xff]  }
 0x178   :  { %4508 = vmatpush1.bf16.msra.mxu0 %v7032_v2  ;;  %4615 = vmatprep.subr.bf16.mxu1 %v7043_v5 }
 0x179   :  { %4509 = vmatprep.subr.bf16.mxu0 %v7040_v4  ;;  %v7089_v4 = vld [vmem:[%s9870_s1 + $0x6f8] ss:$40 sps:$4 sm:$0xff]  }
 0x17b   :  { %4616 = vmatpush1.bf16.msra.mxu1 %v7041_v7 }
 0x17c   :  { %4510 = vmatpush1.bf16.msra.mxu0 %v7038_v6  ;;  %4617 = vmatprep.subr.bf16.mxu1 %v7049_v9  ;;  %v7097_v6 = vld [vmem:[%s9870_s1 + $0x74c] ss:$40 sps:$4 sm:$0xff]  }
 0x17d   :  { %4511 = vmatprep.subr.bf16.mxu0 %v7046_v8  ;;  %v7095_v8 = vld [vmem:[%s9870_s1 + $0x748] ss:$40 sps:$4 sm:$0xff]   ;;  %v7100_v9 = vld [vmem:[%s9870_s1 + $0x1194] ss:$40 sps:$4 sm:$0xff]  }
 0x17f   :  { %4618 = vmatpush1.bf16.msra.mxu1 %v7047_v15 }
 0x180   :  { %4512 = vmatpush1.bf16.msra.mxu0 %v7044_v14  ;;  %4640 = vmatprep.subr.bf16.mxu1 %v7055_v18 }
 0x181   :  { %4534 = vmatprep.subr.bf16.mxu0 %v7052_v17 }
 0x182   :  { %4620 = vmatmul.mubr.bf16.vlgmr.msra.gmra.mrb[16].mxu1 %v7724_v10 }
 0x183   :  { %4514 = vmatmul.mubr.bf16.vlgmr.msra.gmra.mrb[8].mxu0 %v7964_v27  ;;  %4641 = vmatpush1.bf16.msra.mxu1 %v7053_v21  ;;  %v7098_v21 = vld [vmem:[%s9870_s1 + $0x1190] ss:$40 sps:$4 sm:$0xff]  }
 0x184   :  { %4535 = vmatpush1.bf16.msra.mxu0 %v7050_v20  ;;  %4642 = vmatprep.subr.bf16.mxu1 %v7061_v23 }
 0x185   :  { %4536 = vmatprep.subr.bf16.mxu0 %v7058_v22  ;;  %4523 = vmatprep.mubr.bf16.mxu0 %v7978_v33  ;;  %v7101_v22 = vld [vmem:[%s9870_s1 + $0x798] ss:$40 sps:$4 sm:$0xff]  }
 0x186   :  { %4629 = vmatprep.mubr.bf16.mxu1 %v7790_v32 }
 0x187   :  { %4643 = vmatpush1.bf16.msra.mxu1 %v7059_v25 }
 0x188   :  { %4537 = vmatpush1.bf16.msra.mxu0 %v7056_v24  ;;  %4644 = vmatprep.subr.bf16.mxu1 %v7067_v28  ;;  %v7109_v24 = vld [vmem:[%s9870_s1 + $0x7ec] ss:$40 sps:$4 sm:$0xff]  }
 0x189   :  { %4538 = vmatprep.subr.bf16.mxu0 %v7064_v26  ;;  %v7107_v26 = vld [vmem:[%s9870_s1 + $0x7e8] ss:$40 sps:$4 sm:$0xff]   ;;  %v7112_v28 = vld [vmem:[%s9870_s1 + $0x1234] ss:$40 sps:$4 sm:$0xff]  }
 0x18a   :  { %4630 = vmatmul.mubr.bf16.gmra.mrb[20].mxu1 %v7806_v38 }
 0x18b   :  { %4524 = vmatmul.mubr.bf16.gmra.mrb[12].mxu0 %v8001_v42  ;;  %4645 = vmatpush1.bf16.msra.mxu1 %v7065_v30  ;;  %v7113_v30 = vld [vmem:[%s9870_s1 + $0x838] ss:$40 sps:$4 sm:$0xff]  }
 0x18c   :  { %4539 = vmatpush1.bf16.msra.mxu0 %v7062_v29  ;;  %4646 = vmatprep.subr.bf16.mxu1 %v7073_v34  ;;  %v7110_v29 = vld [vmem:[%s9870_s1 + $0x1230] ss:$40 sps:$4 sm:$0xff]   ;;  %v7121_v34 = vld [vmem:[%s9870_s1 + $0x88c] ss:$40 sps:$4 sm:$0xff]  }
 0x18d   :  { %4540 = vmatprep.subr.bf16.mxu0 %v7070_v31  ;;  %4566 = vmatprep.mubr.bf16.mxu0 %v8022_v49  ;;  %v7118_v31 = vld [vmem:[%s9870_s1 + $0x1284] ss:$40 sps:$4 sm:$0xff]  }
 0x18e   :  { %4672 = vmatprep.mubr.bf16.mxu1 %v7663_v54 }
 0x18f   :  { %4647 = vmatpush1.bf16.msra.mxu1 %v7071_v36  ;;  %v7119_v36 = vld [vmem:[%s9870_s1 + $0x888] ss:$40 sps:$4 sm:$0xff]  }
 0x190   :  { %4541 = vmatpush1.bf16.msra.mxu0 %v7068_v35  ;;  %4648 = vmatprep.subr.bf16.mxu1 %v7079_v44  ;;  %v7116_v35 = vld [vmem:[%s9870_s1 + $0x1280] ss:$40 sps:$4 sm:$0xff]   ;;  %v7127_v44 = vld [vmem:[%s9870_s1 + $0x8dc] ss:$40 sps:$4 sm:$0xff]  }
 0x191   :  { %4542 = vmatprep.subr.bf16.mxu0 %v7076_v40  ;;  %v7124_v40 = vld [vmem:[%s9870_s1 + $0x12d4] ss:$40 sps:$4 sm:$0xff]  }
 0x193   :  { %4649 = vmatpush1.bf16.msra.mxu1 %v7077_v46  ;;  %v7125_v46 = vld [vmem:[%s9870_s1 + $0x8d8] ss:$40 sps:$4 sm:$0xff]  }
 0x194   :  { %4543 = vmatpush1.bf16.msra.mxu0 %v7074_v45  ;;  %4650 = vmatprep.subr.bf16.mxu1 %v7085_v55  ;;  %v7122_v45 = vld [vmem:[%s9870_s1 + $0x12d0] ss:$40 sps:$4 sm:$0xff]   ;;  %v7133_v55 = vld [vmem:[%s9870_s1 + $0x92c] ss:$40 sps:$4 sm:$0xff]  }
 0x195   :  { %4544 = vmatprep.subr.bf16.mxu0 %v7082_v52  ;;  %v7130_v52 = vld [vmem:[%s9870_s1 + $0x1324] ss:$40 sps:$4 sm:$0xff]  }
 0x196   :  { %v4144_v61 = vpop.f32.mrb[0].mxu0 }
 0x197   :  { %v8895_v62 = vadd.f32 %v4144_v61, %v8484_v47  ;;  %v4146_v63 = vpop.f32.mrb[1].mxu0  ;;  %4651 = vmatpush1.bf16.msra.mxu1 %v7083_v59  ;;  %v7131_v59 = vld [vmem:[%s9870_s1 + $0x928] ss:$40 sps:$4 sm:$0xff]  }
 0x198   :  { %v8898_v0 = vadd.f32 %v4146_v63, %v8486_v50  ;;  %v4148_v2 = vpop.f32.mrb[2].mxu0  ;;  %4545 = vmatpush1.bf16.msra.mxu0 %v7080_v58  ;;  %4652 = vmatprep.subr.bf16.mxu1 %v7091_v41  ;;  %v7094_v50 = vld [vmem:[%s9870_s1 + $0x1144] ss:$40 sps:$4 sm:$0xff]   ;;  %v7128_v58 = vld [vmem:[%s9870_s1 + $0x1320] ss:$40 sps:$4 sm:$0xff]  }
 0x199   :  { %v8907_v5 = vadd.f32 %v4148_v2, %v8488_v51  ;;  %v4150_v47 = vpop.f32.mrb[3].mxu0  ;;  %4546 = vmatprep.subr.bf16.mxu0 %v7088_v60  ;;  %v7092_v51 = vld [vmem:[%s9870_s1 + $0x1140] ss:$40 sps:$4 sm:$0xff]   ;;  %v7136_v60 = vld [vmem:[%s9870_s1 + $0x1374] ss:$40 sps:$4 sm:$0xff]  }
 0x19a   :  { %v8916_v7 = vadd.f32 %v4150_v47, %v8496_v56  ;;  %v7103_v56 = vld [vmem:[%s9870_s1 + $0x79c] ss:$40 sps:$4 sm:$0xff]   ;;  %v7134_v61 = vld [vmem:[%s9870_s1 + $0x1370] ss:$40 sps:$4 sm:$0xff]  }
 0x19b   :  { %4653 = vmatpush1.bf16.msra.mxu1 %v7089_v4  ;;  %v7139_v41 = vld [vmem:[%s9870_s1 + $0x97c] ss:$40 sps:$4 sm:$0xff]   ;;  %v7137_v63 = vld [vmem:[%s9870_s1 + $0x978] ss:$40 sps:$4 sm:$0xff]   ;;  %v7143_v47 = vld [vmem:[%s9870_s1 + $0x9c8] ss:$40 sps:$4 sm:$0xff]  }
 0x19c   :  { %4547 = vmatpush1.bf16.msra.mxu0 %v7086_v3  ;;  %4654 = vmatprep.subr.bf16.mxu1 %v7097_v6  ;;  %v7142_v2 = vld [vmem:[%s9870_s1 + $0x13c4] ss:$40 sps:$4 sm:$0xff]   ;;  %v7140_v4 = vld [vmem:[%s9870_s1 + $0x13c0] ss:$40 sps:$4 sm:$0xff]  }
 0x19d   :  { %4548 = vmatprep.subr.bf16.mxu0 %v7094_v50  ;;  %v7145_v3 = vld [vmem:[%s9870_s1 + $0x9cc] ss:$40 sps:$4 sm:$0xff]   ;;  %v7148_v50 = vld [vmem:[%s9870_s1 + $0xa1c] ss:$40 sps:$4 sm:$0xff]  }
 0x19e   :  { %v4154_v14 = vpop.f32.mrb[4].mxu0  ;;  %v7151_v6 = vld [vmem:[%s9870_s1 + $0x24] ss:$40 sps:$4 sm:$0xff]  }
 0x19f   :  { %v8931_v15 = vadd.f32 %v4154_v14, %v8546_v12  ;;  %v4156_v17 = vpop.f32.mrb[5].mxu0  ;;  %4655 = vmatpush1.bf16.msra.mxu1 %v7095_v8  ;;  %v7149_v8 = vld [vmem:[%s9870_s1 + $0x20] ss:$40 sps:$4 sm:$0xff]  }
 0x1a0   :  { %v8934_v18 = vadd.f32 %v4156_v17, %v8548_v13  ;;  %v4158_v20 = vpop.f32.mrb[6].mxu0  ;;  %4549 = vmatpush1.bf16.msra.mxu0 %v7092_v51  ;;  %4656 = vmatprep.subr.bf16.mxu1 %v7103_v56  ;;  %v7106_v13 = vld [vmem:[%s9870_s1 + $0x11e4] ss:$40 sps:$4 sm:$0xff]   ;;  %v7146_v51 = vld [vmem:[%s9870_s1 + $0xa18] ss:$40 sps:$4 sm:$0xff]  }
 0x1a1   :  { %v8943_v23 = vadd.f32 %v4158_v20, %v8556_v16  ;;  %v4160_v12 = vpop.f32.mrb[7].mxu0  ;;  %4550 = vmatprep.subr.bf16.mxu0 %v7100_v9  ;;  %v7104_v16 = vld [vmem:[%s9870_s1 + $0x11e0] ss:$40 sps:$4 sm:$0xff]   ;;  %v7154_v9 = vld [vmem:[%s9870_s1 + $0xa6c] ss:$40 sps:$4 sm:$0xff]  }
 0x1a2   :  { %v8952_v25 = vadd.f32 %v4160_v12, %v8564_v19  ;;  %v7115_v19 = vld [vmem:[%s9870_s1 + $0x83c] ss:$40 sps:$4 sm:$0xff]   ;;  %v7152_v14 = vld [vmem:[%s9870_s1 + $0xa68] ss:$40 sps:$4 sm:$0xff]  }
 0x1a3   :  { %4657 = vmatpush1.bf16.msra.mxu1 %v7101_v22  ;;  %v7157_v56 = vld [vmem:[%s9870_s1 + $0x74] ss:$40 sps:$4 sm:$0xff]   ;;  %v7155_v17 = vld [vmem:[%s9870_s1 + $0x70] ss:$40 sps:$4 sm:$0xff]   ;;  %v7161_v12 = vld [vmem:[%s9870_s1 + $0xc0] ss:$40 sps:$4 sm:$0xff]  }
 0x1a4   :  { %4551 = vmatpush1.bf16.msra.mxu0 %v7098_v21  ;;  %4658 = vmatprep.subr.bf16.mxu1 %v7109_v24  ;;  %v7160_v20 = vld [vmem:[%s9870_s1 + $0xabc] ss:$40 sps:$4 sm:$0xff]   ;;  %v7158_v22 = vld [vmem:[%s9870_s1 + $0xab8] ss:$40 sps:$4 sm:$0xff]  }
 0x1a5   :  { %4552 = vmatprep.subr.bf16.mxu0 %v7106_v13  ;;  %v7163_v21 = vld [vmem:[%s9870_s1 + $0xc4] ss:$40 sps:$4 sm:$0xff]   ;;  %v7169_v24 = vld [vmem:[%s9870_s1 + $0x114] ss:$40 sps:$4 sm:$0xff]  }
 0x1a6   :  { %v7166_v13 = vld [vmem:[%s9870_s1 + $0xb0c] ss:$40 sps:$4 sm:$0xff]  }
 0x1a7   :  { %4659 = vmatpush1.bf16.msra.mxu1 %v7107_v26  ;;  %v7167_v26 = vld [vmem:[%s9870_s1 + $0x110] ss:$40 sps:$4 sm:$0xff]  }
 0x1a8   :  { %4553 = vmatpush1.bf16.msra.mxu0 %v7104_v16  ;;  %4660 = vmatprep.subr.bf16.mxu1 %v7115_v19  ;;  %v7164_v16 = vld [vmem:[%s9870_s1 + $0xb08] ss:$40 sps:$4 sm:$0xff]   ;;  %v7175_v19 = vld [vmem:[%s9870_s1 + $0x164] ss:$40 sps:$4 sm:$0xff]  }
 0x1a9   :  { %4554 = vmatprep.subr.bf16.mxu0 %v7112_v28  ;;  %v7172_v28 = vld [vmem:[%s9870_s1 + $0xb5c] ss:$40 sps:$4 sm:$0xff]  }
 0x1ab   :  { %4661 = vmatpush1.bf16.msra.mxu1 %v7113_v30  ;;  %v7173_v30 = vld [vmem:[%s9870_s1 + $0x160] ss:$40 sps:$4 sm:$0xff]  }
 0x1ac   :  { %4555 = vmatpush1.bf16.msra.mxu0 %v7110_v29  ;;  %4662 = vmatprep.subr.bf16.mxu1 %v7121_v34  ;;  %v7170_v29 = vld [vmem:[%s9870_s1 + $0xb58] ss:$40 sps:$4 sm:$0xff]   ;;  %v7176_v34 = vld [vmem:[%s9870_s1 + $0xba8] ss:$40 sps:$4 sm:$0xff]  }
 0x1ad   :  { %4556 = vmatprep.subr.bf16.mxu0 %v7118_v31  ;;  %v7178_v31 = vld [vmem:[%s9870_s1 + $0xbac] ss:$40 sps:$4 sm:$0xff]  }
 0x1af   :  { %4663 = vmatpush1.bf16.msra.mxu1 %v7119_v36  ;;  %v7184_v36 = vld [vmem:[%s9870_s1 + $0xbfc] ss:$40 sps:$4 sm:$0xff]  }
 0x1b0   :  { %4557 = vmatpush1.bf16.msra.mxu0 %v7116_v35  ;;  %4664 = vmatprep.subr.bf16.mxu1 %v7127_v44  ;;  %v7179_v35 = vld [vmem:[%s9870_s1 + $0x1b0] ss:$40 sps:$4 sm:$0xff]  }
 0x1b1   :  { %4558 = vmatprep.subr.bf16.mxu0 %v7124_v40  ;;  %v7187_v40 = vld [vmem:[%s9870_s1 + $0x204] ss:$40 sps:$4 sm:$0xff]   ;;  %v7182_v44 = vld [vmem:[%s9870_s1 + $0xbf8] ss:$40 sps:$4 sm:$0xff]  }
 0x1b3   :  { %4665 = vmatpush1.bf16.msra.mxu1 %v7125_v46  ;;  %v7190_v46 = vld [vmem:[%s9870_s1 + $0xc4c] ss:$40 sps:$4 sm:$0xff]  }
 0x1b4   :  { %4559 = vmatpush1.bf16.msra.mxu0 %v7122_v45  ;;  %4666 = vmatprep.subr.bf16.mxu1 %v7133_v55  ;;  %v7185_v45 = vld [vmem:[%s9870_s1 + $0x200] ss:$40 sps:$4 sm:$0xff]  }
 0x1b5   :  { %4560 = vmatprep.subr.bf16.mxu0 %v7130_v52  ;;  %v7193_v52 = vld [vmem:[%s9870_s1 + $0x254] ss:$40 sps:$4 sm:$0xff]   ;;  %v7188_v55 = vld [vmem:[%s9870_s1 + $0xc48] ss:$40 sps:$4 sm:$0xff]  }
 0x1b7   :  { %4667 = vmatpush1.bf16.msra.mxu1 %v7131_v59  ;;  %v7196_v59 = vld [vmem:[%s9870_s1 + $0xc9c] ss:$40 sps:$4 sm:$0xff]  }
 0x1b8   :  { %4561 = vmatpush1.bf16.msra.mxu0 %v7128_v58  ;;  %4668 = vmatprep.subr.bf16.mxu1 %v7139_v41  ;;  %v7191_v58 = vld [vmem:[%s9870_s1 + $0x250] ss:$40 sps:$4 sm:$0xff]  }
 0x1b9   :  { %4562 = vmatprep.subr.bf16.mxu0 %v7136_v60  ;;  %v7199_v60 = vld [vmem:[%s9870_s1 + $0x2a4] ss:$40 sps:$4 sm:$0xff]   ;;  %v7194_v41 = vld [vmem:[%s9870_s1 + $0xc98] ss:$40 sps:$4 sm:$0xff]  }
 0x1bb   :  { %4669 = vmatpush1.bf16.msra.mxu1 %v7137_v63  ;;  %v7202_v63 = vld [vmem:[%s9870_s1 + $0xcec] ss:$40 sps:$4 sm:$0xff]  }
 0x1bc   :  { %4563 = vmatpush1.bf16.msra.mxu0 %v7134_v61  ;;  %4670 = vmatprep.subr.bf16.mxu1 %v7145_v3  ;;  %v7197_v61 = vld [vmem:[%s9870_s1 + $0x2a0] ss:$40 sps:$4 sm:$0xff]  }
 0x1bd   :  { %4564 = vmatprep.subr.bf16.mxu0 %v7142_v2  ;;  %v7205_v2 = vld [vmem:[%s9870_s1 + $0x2f4] ss:$40 sps:$4 sm:$0xff]   ;;  %v7200_v3 = vld [vmem:[%s9870_s1 + $0xce8] ss:$40 sps:$4 sm:$0xff]  }
 0x1bf   :  { %4671 = vmatpush1.bf16.msra.mxu1 %v7143_v47  ;;  %v7208_v47 = vld [vmem:[%s9870_s1 + $0xd3c] ss:$40 sps:$4 sm:$0xff]  }
 0x1c0   :  { %4565 = vmatpush1.bf16.msra.mxu0 %v7140_v4  ;;  %4693 = vmatprep.subr.bf16.mxu1 %v7148_v50  ;;  %v7203_v4 = vld [vmem:[%s9870_s1 + $0x2f0] ss:$40 sps:$4 sm:$0xff]   ;;  %v7211_v50 = vld [vmem:[%s9870_s1 + $0x344] ss:$40 sps:$4 sm:$0xff]  }
 0x1c1   :  { %4799 = vmatprep.subr.bf16.mxu0 %v7151_v6  ;;  %v7206_v6 = vld [vmem:[%s9870_s1 + $0xd38] ss:$40 sps:$4 sm:$0xff]  }
 0x1c2   :  { %4673 = vmatmul.mubr.bf16.vlgmr.msra.gmra.mrb[16].mxu1 %v7726_v11 }
 0x1c3   :  { %4567 = vmatmul.mubr.bf16.vlgmr.msra.gmra.mrb[8].mxu0 %v8192_v57  ;;  %4694 = vmatpush1.bf16.msra.mxu1 %v7146_v51  ;;  %v7209_v51 = vld [vmem:[%s9870_s1 + $0x340] ss:$40 sps:$4 sm:$0xff]  }
 0x1c4   :  { %4800 = vmatpush1.bf16.msra.mxu0 %v7149_v8  ;;  %4695 = vmatprep.subr.bf16.mxu1 %v7154_v9  ;;  %v7214_v8 = vld [vmem:[%s9870_s1 + $0xd8c] ss:$40 sps:$4 sm:$0xff]  }
 0x1c5   :  { %4801 = vmatprep.subr.bf16.mxu0 %v7157_v56  ;;  %4576 = vmatprep.mubr.bf16.mxu0 %v8206_v43  ;;  %v7217_v9 = vld [vmem:[%s9870_s1 + $0x394] ss:$40 sps:$4 sm:$0xff]   ;;  %v7212_v56 = vld [vmem:[%s9870_s1 + $0xd88] ss:$40 sps:$4 sm:$0xff]  }
 0x1c6   :  { %4682 = vmatprep.mubr.bf16.mxu1 %v7804_v37 }
 0x1c7   :  { %4696 = vmatpush1.bf16.msra.mxu1 %v7152_v14  ;;  %v7215_v14 = vld [vmem:[%s9870_s1 + $0x390] ss:$40 sps:$4 sm:$0xff]  }
 0x1c8   :  { %4802 = vmatpush1.bf16.msra.mxu0 %v7155_v17  ;;  %4697 = vmatprep.subr.bf16.mxu1 %v7160_v20  ;;  %v7220_v17 = vld [vmem:[%s9870_s1 + $0xddc] ss:$40 sps:$4 sm:$0xff]  }
 0x1c9   :  { %4803 = vmatprep.subr.bf16.mxu0 %v7163_v21  ;;  %v7223_v20 = vld [vmem:[%s9870_s1 + $0x3e4] ss:$40 sps:$4 sm:$0xff]   ;;  %v7218_v21 = vld [vmem:[%s9870_s1 + $0xdd8] ss:$40 sps:$4 sm:$0xff]  }
 0x1ca   :  { %4683 = vmatmul.mubr.bf16.gmra.mrb[20].mxu1 %v7808_v39 }
 0x1cb   :  { %4577 = vmatmul.mubr.bf16.gmra.mrb[12].mxu0 %v8224_v1  ;;  %4698 = vmatpush1.bf16.msra.mxu1 %v7158_v22  ;;  %v7221_v22 = vld [vmem:[%s9870_s1 + $0x3e0] ss:$40 sps:$4 sm:$0xff]  }
 0x1cc   :  { %4804 = vmatpush1.bf16.msra.mxu0 %v7161_v12  ;;  %4699 = vmatprep.subr.bf16.mxu1 %v7166_v13  ;;  %v7226_v12 = vld [vmem:[%s9870_s1 + $0xe2c] ss:$40 sps:$4 sm:$0xff]  }
 0x1cd   :  { %4805 = vmatprep.subr.bf16.mxu0 %v7169_v24  ;;  %4725 = vmatprep.mubr.bf16.mxu1 %v7844_v48  ;;  %v7229_v13 = vld [vmem:[%s9870_s1 + $0x434] ss:$40 sps:$4 sm:$0xff]   ;;  %v7224_v24 = vld [vmem:[%s9870_s1 + $0xe28] ss:$40 sps:$4 sm:$0xff]  }
 0x1ce   :  { %4831 = vmatprep.mubr.bf16.mxu0 %v7661_v53  ;;  %v7181_v53 = vld [vmem:[%s9870_s1 + $0x1b4] ss:$40 sps:$4 sm:$0xff]  }
 0x1cf   :  { %4700 = vmatpush1.bf16.msra.mxu1 %v7164_v16  ;;  %v7227_v16 = vld [vmem:[%s9870_s1 + $0x430] ss:$40 sps:$4 sm:$0xff]  }
 0x1d0   :  { %4806 = vmatpush1.bf16.msra.mxu0 %v7167_v26  ;;  %4701 = vmatprep.subr.bf16.mxu1 %v7172_v28  ;;  %v7232_v26 = vld [vmem:[%s9870_s1 + $0xe7c] ss:$40 sps:$4 sm:$0xff]  }
 0x1d1   :  { %4807 = vmatprep.subr.bf16.mxu0 %v7175_v19  ;;  %v7235_v28 = vld [vmem:[%s9870_s1 + $0x484] ss:$40 sps:$4 sm:$0xff]   ;;  %v7230_v19 = vld [vmem:[%s9870_s1 + $0xe78] ss:$40 sps:$4 sm:$0xff]  }
 0x1d3   :  { %4702 = vmatpush1.bf16.msra.mxu1 %v7170_v29  ;;  %v7233_v29 = vld [vmem:[%s9870_s1 + $0x480] ss:$40 sps:$4 sm:$0xff]  }
 0x1d4   :  { %4808 = vmatpush1.bf16.msra.mxu0 %v7173_v30  ;;  %4703 = vmatprep.subr.bf16.mxu1 %v7178_v31  ;;  %v7238_v30 = vld [vmem:[%s9870_s1 + $0xecc] ss:$40 sps:$4 sm:$0xff]  }
 0x1d5   :  { %4809 = vmatprep.subr.bf16.mxu0 %v7181_v53  ;;  %v7241_v31 = vld [vmem:[%s9870_s1 + $0x4d4] ss:$40 sps:$4 sm:$0xff]   ;;  %v7236_v53 = vld [vmem:[%s9870_s1 + $0xec8] ss:$40 sps:$4 sm:$0xff]  }
 0x1d7   :  { %4704 = vmatpush1.bf16.msra.mxu1 %v7176_v34  ;;  %v7239_v34 = vld [vmem:[%s9870_s1 + $0x4d0] ss:$40 sps:$4 sm:$0xff]  }
 0x1d8   :  { %4810 = vmatpush1.bf16.msra.mxu0 %v7179_v35  ;;  %4705 = vmatprep.subr.bf16.mxu1 %v7184_v36  ;;  %v7244_v35 = vld [vmem:[%s9870_s1 + $0xf1c] ss:$40 sps:$4 sm:$0xff]  }
 0x1d9   :  { %4811 = vmatprep.subr.bf16.mxu0 %v7187_v40  ;;  %v7247_v36 = vld [vmem:[%s9870_s1 + $0x524] ss:$40 sps:$4 sm:$0xff]   ;;  %v7242_v40 = vld [vmem:[%s9870_s1 + $0xf18] ss:$40 sps:$4 sm:$0xff]  }
 0x1db   :  { %4706 = vmatpush1.bf16.msra.mxu1 %v7182_v44  ;;  %v7245_v44 = vld [vmem:[%s9870_s1 + $0x520] ss:$40 sps:$4 sm:$0xff]  }
 0x1dc   :  { %4812 = vmatpush1.bf16.msra.mxu0 %v7185_v45  ;;  %4707 = vmatprep.subr.bf16.mxu1 %v7190_v46  ;;  %v7250_v45 = vld [vmem:[%s9870_s1 + $0xf6c] ss:$40 sps:$4 sm:$0xff]  }
 0x1dd   :  { %4813 = vmatprep.subr.bf16.mxu0 %v7193_v52  ;;  %v7253_v46 = vld [vmem:[%s9870_s1 + $0x574] ss:$40 sps:$4 sm:$0xff]   ;;  %v7248_v52 = vld [vmem:[%s9870_s1 + $0xf68] ss:$40 sps:$4 sm:$0xff]  }
 0x1df   :  { %4708 = vmatpush1.bf16.msra.mxu1 %v7188_v55  ;;  %v7251_v55 = vld [vmem:[%s9870_s1 + $0x570] ss:$40 sps:$4 sm:$0xff]  }
 0x1e0   :  { %4814 = vmatpush1.bf16.msra.mxu0 %v7191_v58  ;;  %4709 = vmatprep.subr.bf16.mxu1 %v7196_v59  ;;  %v7256_v58 = vld [vmem:[%s9870_s1 + $0xfbc] ss:$40 sps:$4 sm:$0xff]   ;;  %v7254_v59 = vld [vmem:[%s9870_s1 + $0xfb8] ss:$40 sps:$4 sm:$0xff]  }
 0x1e1   :  { %4815 = vmatprep.subr.bf16.mxu0 %v7199_v60  ;;  %v7257_v60 = vld [vmem:[%s9870_s1 + $0x5c0] ss:$40 sps:$4 sm:$0xff]  }
 0x1e3   :  { %4710 = vmatpush1.bf16.msra.mxu1 %v7194_v41  ;;  %v7262_v41 = vld [vmem:[%s9870_s1 + $0x100c] ss:$40 sps:$4 sm:$0xff]  }
 0x1e4   :  { %4816 = vmatpush1.bf16.msra.mxu0 %v7197_v61  ;;  %4711 = vmatprep.subr.bf16.mxu1 %v7202_v63  ;;  %v7260_v61 = vld [vmem:[%s9870_s1 + $0x1008] ss:$40 sps:$4 sm:$0xff]  }
 0x1e5   :  { %4817 = vmatprep.subr.bf16.mxu0 %v7205_v2  ;;  %v7263_v63 = vld [vmem:[%s9870_s1 + $0x610] ss:$40 sps:$4 sm:$0xff]   ;;  %v7268_v2 = vld [vmem:[%s9870_s1 + $0x105c] ss:$40 sps:$4 sm:$0xff]  }
 0x1e7   :  { %4712 = vmatpush1.bf16.msra.mxu1 %v7200_v3  ;;  %v7266_v3 = vld [vmem:[%s9870_s1 + $0x1058] ss:$40 sps:$4 sm:$0xff]  }
 0x1e8   :  { %4818 = vmatpush1.bf16.msra.mxu0 %v7203_v4  ;;  %4713 = vmatprep.subr.bf16.mxu1 %v7208_v47  ;;  %v7269_v4 = vld [vmem:[%s9870_s1 + $0x660] ss:$40 sps:$4 sm:$0xff]   ;;  %v7274_v47 = vld [vmem:[%s9870_s1 + $0x10ac] ss:$40 sps:$4 sm:$0xff]  }
 0x1e9   :  { %4819 = vmatprep.subr.bf16.mxu0 %v7211_v50  ;;  %v7272_v50 = vld [vmem:[%s9870_s1 + $0x10a8] ss:$40 sps:$4 sm:$0xff]  }
 0x1eb   :  { %4714 = vmatpush1.bf16.msra.mxu1 %v7206_v6  ;;  %v7275_v6 = vld [vmem:[%s9870_s1 + $0x6b0] ss:$40 sps:$4 sm:$0xff]  }
 0x1ec   :  { %4820 = vmatpush1.bf16.msra.mxu0 %v7209_v51  ;;  %4715 = vmatprep.subr.bf16.mxu1 %v7214_v8  ;;  %v7280_v51 = vld [vmem:[%s9870_s1 + $0x10fc] ss:$40 sps:$4 sm:$0xff]  }
 0x1ed   :  { %4821 = vmatprep.subr.bf16.mxu0 %v7217_v9  ;;  %v7283_v8 = vld [vmem:[%s9870_s1 + $0x704] ss:$40 sps:$4 sm:$0xff]  }
 0x1ef   :  { %4716 = vmatpush1.bf16.msra.mxu1 %v7212_v56 }
 0x1f0   :  { %4822 = vmatpush1.bf16.msra.mxu0 %v7215_v14  ;;  %4717 = vmatprep.subr.bf16.mxu1 %v7220_v17  ;;  %v7278_v17 = vld [vmem:[%s9870_s1 + $0x10f8] ss:$40 sps:$4 sm:$0xff]  }
 0x1f1   :  { %4823 = vmatprep.subr.bf16.mxu0 %v7223_v20  ;;  %v7281_v20 = vld [vmem:[%s9870_s1 + $0x700] ss:$40 sps:$4 sm:$0xff]  }
 0x1f3   :  { %4718 = vmatpush1.bf16.msra.mxu1 %v7218_v21 }
 0x1f4   :  { %4824 = vmatpush1.bf16.msra.mxu0 %v7221_v22  ;;  %4719 = vmatprep.subr.bf16.mxu1 %v7226_v12  ;;  %v7286_v22 = vld [vmem:[%s9870_s1 + $0x114c] ss:$40 sps:$4 sm:$0xff]  }
 0x1f5   :  { %4825 = vmatprep.subr.bf16.mxu0 %v7229_v13  ;;  %v7289_v12 = vld [vmem:[%s9870_s1 + $0x754] ss:$40 sps:$4 sm:$0xff]   ;;  %v7284_v13 = vld [vmem:[%s9870_s1 + $0x1148] ss:$40 sps:$4 sm:$0xff]  }
 0x1f7   :  { %4720 = vmatpush1.bf16.msra.mxu1 %v7224_v24  ;;  %v7287_v24 = vld [vmem:[%s9870_s1 + $0x750] ss:$40 sps:$4 sm:$0xff]  }
 0x1f8   :  { %4826 = vmatpush1.bf16.msra.mxu0 %v7227_v16  ;;  %4721 = vmatprep.subr.bf16.mxu1 %v7232_v26  ;;  %v7292_v16 = vld [vmem:[%s9870_s1 + $0x119c] ss:$40 sps:$4 sm:$0xff]  }
 0x1f9   :  { %4827 = vmatprep.subr.bf16.mxu0 %v7235_v28  ;;  %v7295_v26 = vld [vmem:[%s9870_s1 + $0x7a4] ss:$40 sps:$4 sm:$0xff]  }
 0x1fb   :  { %4722 = vmatpush1.bf16.msra.mxu1 %v7230_v19 }
 0x1fc   :  { %4828 = vmatpush1.bf16.msra.mxu0 %v7233_v29  ;;  %4723 = vmatprep.subr.bf16.mxu1 %v7238_v30  ;;  %v7290_v30 = vld [vmem:[%s9870_s1 + $0x1198] ss:$40 sps:$4 sm:$0xff]  }
 0x1fd   :  { %4829 = vmatprep.subr.bf16.mxu0 %v7241_v31  ;;  %v7293_v31 = vld [vmem:[%s9870_s1 + $0x7a0] ss:$40 sps:$4 sm:$0xff]  }
 0x1ff   :  { %4724 = vmatpush1.bf16.msra.mxu1 %v7236_v53 }
 0x200   :  { %4830 = vmatpush1.bf16.msra.mxu0 %v7239_v34  ;;  %4746 = vmatprep.subr.bf16.mxu1 %v7244_v35  ;;  %v7298_v34 = vld [vmem:[%s9870_s1 + $0x11ec] ss:$40 sps:$4 sm:$0xff]  }
 0x201   :  { %4852 = vmatprep.subr.bf16.mxu0 %v7247_v36  ;;  %v7301_v35 = vld [vmem:[%s9870_s1 + $0x7f4] ss:$40 sps:$4 sm:$0xff]   ;;  %v7296_v36 = vld [vmem:[%s9870_s1 + $0x11e8] ss:$40 sps:$4 sm:$0xff]  }
 0x202   :  { %4726 = vmatmul.mubr.bf16.vlgmr.msra.gmra.mrb[16].mxu1 %v7964_v27 }
 0x203   :  { %4832 = vmatmul.mubr.bf16.vlgmr.msra.gmra.mrb[16].mxu0 %v7724_v10  ;;  %4747 = vmatpush1.bf16.msra.mxu1 %v7242_v40  ;;  %v7259_v10 = vld [vmem:[%s9870_s1 + $0x5c4] ss:$40 sps:$4 sm:$0xff]   ;;  %v7299_v40 = vld [vmem:[%s9870_s1 + $0x7f0] ss:$40 sps:$4 sm:$0xff]  }
 0x204   :  { %4853 = vmatpush1.bf16.msra.mxu0 %v7245_v44  ;;  %4748 = vmatprep.subr.bf16.mxu1 %v7250_v45  ;;  %v7304_v44 = vld [vmem:[%s9870_s1 + $0x123c] ss:$40 sps:$4 sm:$0xff]  }
 0x205   :  { %4854 = vmatprep.subr.bf16.mxu0 %v7253_v46  ;;  %4735 = vmatprep.mubr.bf16.mxu1 %v7978_v33  ;;  %v7307_v45 = vld [vmem:[%s9870_s1 + $0x844] ss:$40 sps:$4 sm:$0xff]   ;;  %v7302_v46 = vld [vmem:[%s9870_s1 + $0x1238] ss:$40 sps:$4 sm:$0xff]  }
 0x206   :  { %4841 = vmatprep.mubr.bf16.mxu0 %v7790_v32  ;;  %v7265_v32 = vld [vmem:[%s9870_s1 + $0x614] ss:$40 sps:$4 sm:$0xff]  }
 0x207   :  { %4749 = vmatpush1.bf16.msra.mxu1 %v7248_v52  ;;  %v7305_v52 = vld [vmem:[%s9870_s1 + $0x840] ss:$40 sps:$4 sm:$0xff]  }
 0x208   :  { %4855 = vmatpush1.bf16.msra.mxu0 %v7251_v55  ;;  %4750 = vmatprep.subr.bf16.mxu1 %v7256_v58  ;;  %v7310_v55 = vld [vmem:[%s9870_s1 + $0x128c] ss:$40 sps:$4 sm:$0xff]  }
 0x209   :  { %4856 = vmatprep.subr.bf16.mxu0 %v7259_v10  ;;  %v7313_v58 = vld [vmem:[%s9870_s1 + $0x894] ss:$40 sps:$4 sm:$0xff]   ;;  %v7308_v10 = vld [vmem:[%s9870_s1 + $0x1288] ss:$40 sps:$4 sm:$0xff]  }
 0x20a   :  { %4736 = vmatmul.mubr.bf16.gmra.mrb[20].mxu1 %v8001_v42 }
 0x20b   :  { %4842 = vmatmul.mubr.bf16.gmra.mrb[20].mxu0 %v7806_v38  ;;  %4751 = vmatpush1.bf16.msra.mxu1 %v7254_v59  ;;  %v7271_v38 = vld [vmem:[%s9870_s1 + $0x664] ss:$40 sps:$4 sm:$0xff]   ;;  %v7311_v59 = vld [vmem:[%s9870_s1 + $0x890] ss:$40 sps:$4 sm:$0xff]  }
 0x20c   :  { %4857 = vmatpush1.bf16.msra.mxu0 %v7257_v60  ;;  %4752 = vmatprep.subr.bf16.mxu1 %v7262_v41  ;;  %v7316_v60 = vld [vmem:[%s9870_s1 + $0x12dc] ss:$40 sps:$4 sm:$0xff]  }
 0x20d   :  { %4858 = vmatprep.subr.bf16.mxu0 %v7265_v32  ;;  %4778 = vmatprep.mubr.bf16.mxu1 %v8022_v49  ;;  %v7319_v41 = vld [vmem:[%s9870_s1 + $0x8e4] ss:$40 sps:$4 sm:$0xff]   ;;  %v7314_v32 = vld [vmem:[%s9870_s1 + $0x12d8] ss:$40 sps:$4 sm:$0xff]  }
 0x20e   :  { %4884 = vmatprep.mubr.bf16.mxu0 %v7663_v54  ;;  %v7277_v54 = vld [vmem:[%s9870_s1 + $0x6b4] ss:$40 sps:$4 sm:$0xff]  }
 0x20f   :  { %4753 = vmatpush1.bf16.msra.mxu1 %v7260_v61  ;;  %v7317_v61 = vld [vmem:[%s9870_s1 + $0x8e0] ss:$40 sps:$4 sm:$0xff]  }
 0x210   :  { %4859 = vmatpush1.bf16.msra.mxu0 %v7263_v63  ;;  %4754 = vmatprep.subr.bf16.mxu1 %v7268_v2  ;;  %v7322_v63 = vld [vmem:[%s9870_s1 + $0x132c] ss:$40 sps:$4 sm:$0xff]  }
 0x211   :  { %4860 = vmatprep.subr.bf16.mxu0 %v7271_v38  ;;  %v7325_v2 = vld [vmem:[%s9870_s1 + $0x934] ss:$40 sps:$4 sm:$0xff]   ;;  %v7320_v38 = vld [vmem:[%s9870_s1 + $0x1328] ss:$40 sps:$4 sm:$0xff]  }
 0x213   :  { %4755 = vmatpush1.bf16.msra.mxu1 %v7266_v3  ;;  %v7323_v3 = vld [vmem:[%s9870_s1 + $0x930] ss:$40 sps:$4 sm:$0xff]  }
 0x214   :  { %4861 = vmatpush1.bf16.msra.mxu0 %v7269_v4  ;;  %4756 = vmatprep.subr.bf16.mxu1 %v7274_v47  ;;  %v7328_v4 = vld [vmem:[%s9870_s1 + $0x137c] ss:$40 sps:$4 sm:$0xff]  }
 0x215   :  { %4862 = vmatprep.subr.bf16.mxu0 %v7277_v54  ;;  %v9318_v9 = vpop.f32.mrb[8].mxu1  ;;  %v7331_v47 = vld [vmem:[%s9870_s1 + $0x984] ss:$40 sps:$4 sm:$0xff]   ;;  %v7326_v54 = vld [vmem:[%s9870_s1 + $0x1378] ss:$40 sps:$4 sm:$0xff]  }
 0x216   :  { %v9320_v56 = vpop.f32.mrb[9].mxu1 }
 0x217   :  { %v9322_v14 = vpop.f32.mrb[10].mxu1  ;;  %4757 = vmatpush1.bf16.msra.mxu1 %v7272_v50  ;;  %v7329_v50 = vld [vmem:[%s9870_s1 + $0x980] ss:$40 sps:$4 sm:$0xff]  }
 0x218   :  { %4863 = vmatpush1.bf16.msra.mxu0 %v7275_v6  ;;  %v9330_v21 = vpop.f32.mrb[11].mxu1  ;;  %4758 = vmatprep.subr.bf16.mxu1 %v7280_v51  ;;  %v7334_v6 = vld [vmem:[%s9870_s1 + $0x13cc] ss:$40 sps:$4 sm:$0xff]  }
 0x219   :  { %4864 = vmatprep.subr.bf16.mxu0 %v7283_v8  ;;  %v7337_v51 = vld [vmem:[%s9870_s1 + $0x9d4] ss:$40 sps:$4 sm:$0xff]   ;;  %v7332_v8 = vld [vmem:[%s9870_s1 + $0x13c8] ss:$40 sps:$4 sm:$0xff]  }
 0x21b   :  { %4759 = vmatpush1.bf16.msra.mxu1 %v7278_v17  ;;  %v7335_v17 = vld [vmem:[%s9870_s1 + $0x9d0] ss:$40 sps:$4 sm:$0xff]  }
 0x21c   :  { %4865 = vmatpush1.bf16.msra.mxu0 %v7281_v20  ;;  %4760 = vmatprep.subr.bf16.mxu1 %v7286_v22  ;;  %v7340_v20 = vld [vmem:[%s9870_s1 + $0xa24] ss:$40 sps:$4 sm:$0xff]   ;;  %v7338_v22 = vld [vmem:[%s9870_s1 + $0xa20] ss:$40 sps:$4 sm:$0xff]  }
 0x21d   :  { %4866 = vmatprep.subr.bf16.mxu0 %v7289_v12  ;;  %v9350_v28 = vpop.f32.mrb[12].mxu1  ;;  %v7343_v12 = vld [vmem:[%s9870_s1 + $0xa74] ss:$40 sps:$4 sm:$0xff]  }
 0x21e   :  { %v9352_v19 = vpop.f32.mrb[13].mxu1 }
 0x21f   :  { %v9354_v29 = vpop.f32.mrb[14].mxu1  ;;  %4761 = vmatpush1.bf16.msra.mxu1 %v7284_v13  ;;  %v7341_v13 = vld [vmem:[%s9870_s1 + $0xa70] ss:$40 sps:$4 sm:$0xff]  }
 0x220   :  { %4867 = vmatpush1.bf16.msra.mxu0 %v7287_v24  ;;  %v9362_v53 = vpop.f32.mrb[15].mxu1  ;;  %4762 = vmatprep.subr.bf16.mxu1 %v7292_v16  ;;  %v7346_v24 = vld [vmem:[%s9870_s1 + $0xac4] ss:$40 sps:$4 sm:$0xff]   ;;  %v7344_v16 = vld [vmem:[%s9870_s1 + $0xac0] ss:$40 sps:$4 sm:$0xff]  }
 0x221   :  { %4868 = vmatprep.subr.bf16.mxu0 %v7295_v26  ;;  %v7347_v26 = vld [vmem:[%s9870_s1 + $0xb10] ss:$40 sps:$4 sm:$0xff]  }
 0x223   :  { %4763 = vmatpush1.bf16.msra.mxu1 %v7290_v30  ;;  %v7434_v30 = vld [vmem:[%s9872_s2 + $0x40] sm:$0xff]  }
 0x224   :  { %4869 = vmatpush1.bf16.msra.mxu0 %v7293_v31  ;;  %4764 = vmatprep.subr.bf16.mxu1 %v7298_v34  ;;  %v7435_v31 = vld [vmem:[%s9872_s2] sm:$0xff]  }
 0x225   :  { %4870 = vmatprep.subr.bf16.mxu0 %v7301_v35  ;;  %v7350_v34 = vld [vmem:[%s9870_s1 + $0xb60] ss:$40 sps:$4 sm:$0xff]   ;;  %v7438_v35 = vld [vmem:[%s9872_s2 + $0x50] sm:$0xff]  }
 0x227   :  { %4765 = vmatpush1.bf16.msra.mxu1 %v7296_v36  ;;  %v7355_v36 = vld [vmem:[%s9870_s1 + $0xbb4] ss:$40 sps:$4 sm:$0xff]  }
 0x228   :  { %4871 = vmatpush1.bf16.msra.mxu0 %v7299_v40  ;;  %4766 = vmatprep.subr.bf16.mxu1 %v7304_v44  ;;  %v7353_v40 = vld [vmem:[%s9870_s1 + $0xbb0] ss:$40 sps:$4 sm:$0xff]  }
 0x229   :  { %4872 = vmatprep.subr.bf16.mxu0 %v7307_v45  ;;  %v7439_v44 = vld [vmem:[%s9872_s2 + $0x10] sm:$0xff]   ;;  %v7440_v45 = vld [vmem:[%s9872_s2 + $0x58] sm:$0xff]  }
 0x22b   :  { %4767 = vmatpush1.bf16.msra.mxu1 %v7302_v46  ;;  %v7358_v46 = vld [vmem:[%s9870_s1 + $0xc04] ss:$40 sps:$4 sm:$0xff]  }
 0x22c   :  { %4873 = vmatpush1.bf16.msra.mxu0 %v7305_v52  ;;  %4768 = vmatprep.subr.bf16.mxu1 %v7310_v55  ;;  %v7356_v52 = vld [vmem:[%s9870_s1 + $0xc00] ss:$40 sps:$4 sm:$0xff]   ;;  %v7441_v55 = vld [vmem:[%s9872_s2 + $0x18] sm:$0xff]  }
 0x22d   :  { %4874 = vmatprep.subr.bf16.mxu0 %v7313_v58  ;;  %v7361_v58 = vld [vmem:[%s9870_s1 + $0xc54] ss:$40 sps:$4 sm:$0xff]  }
 0x22f   :  { %4769 = vmatpush1.bf16.msra.mxu1 %v7308_v10  ;;  %v7442_v10 = vld [vmem:[%s9872_s2 + $0x60] sm:$0xff]  }
 0x230   :  { %4875 = vmatpush1.bf16.msra.mxu0 %v7311_v59  ;;  %4770 = vmatprep.subr.bf16.mxu1 %v7316_v60  ;;  %v7443_v59 = vld [vmem:[%s9872_s2 + $0x20] sm:$0xff]   ;;  %v7359_v60 = vld [vmem:[%s9870_s1 + $0xc50] ss:$40 sps:$4 sm:$0xff]  }
 0x231   :  { %4876 = vmatprep.subr.bf16.mxu0 %v7319_v41  ;;  %v7444_v41 = vld [vmem:[%s9872_s2 + $0x68] sm:$0xff]  }
 0x233   :  { %4771 = vmatpush1.bf16.msra.mxu1 %v7314_v32  ;;  %v7364_v32 = vld [vmem:[%s9870_s1 + $0xca4] ss:$40 sps:$4 sm:$0xff]  }
 0x234   :  { %4877 = vmatpush1.bf16.msra.mxu0 %v7317_v61  ;;  %4772 = vmatprep.subr.bf16.mxu1 %v7322_v63  ;;  %v7445_v61 = vld [vmem:[%s9872_s2 + $0x28] sm:$0xff]  }
 0x235   :  { %4878 = vmatprep.subr.bf16.mxu0 %v7325_v2  ;;  %v7362_v63 = vld [vmem:[%s9870_s1 + $0xca0] ss:$40 sps:$4 sm:$0xff]   ;;  %v7367_v2 = vld [vmem:[%s9870_s1 + $0xcf4] ss:$40 sps:$4 sm:$0xff]  }
 0x237   :  { %4773 = vmatpush1.bf16.msra.mxu1 %v7320_v38  ;;  %v7365_v38 = vld [vmem:[%s9870_s1 + $0xcf0] ss:$40 sps:$4 sm:$0xff]  }
 0x238   :  { %4879 = vmatpush1.bf16.msra.mxu0 %v7323_v3  ;;  %4774 = vmatprep.subr.bf16.mxu1 %v7328_v4  ;;  %v7370_v3 = vld [vmem:[%s9870_s1 + $0xd44] ss:$40 sps:$4 sm:$0xff]   ;;  %v7368_v4 = vld [vmem:[%s9870_s1 + $0xd40] ss:$40 sps:$4 sm:$0xff]  }
 0x239   :  { %4880 = vmatprep.subr.bf16.mxu0 %v7331_v47  ;;  %v7373_v47 = vld [vmem:[%s9870_s1 + $0xd94] ss:$40 sps:$4 sm:$0xff]  }
 0x23b   :  { %4775 = vmatpush1.bf16.msra.mxu1 %v7326_v54  ;;  %v7371_v54 = vld [vmem:[%s9870_s1 + $0xd90] ss:$40 sps:$4 sm:$0xff]  }
 0x23c   :  { %4881 = vmatpush1.bf16.msra.mxu0 %v7329_v50  ;;  %4776 = vmatprep.subr.bf16.mxu1 %v7334_v6  ;;  %v7376_v50 = vld [vmem:[%s9870_s1 + $0xde4] ss:$40 sps:$4 sm:$0xff]   ;;  %v7374_v6 = vld [vmem:[%s9870_s1 + $0xde0] ss:$40 sps:$4 sm:$0xff]  }
 0x23d   :  { %4882 = vmatprep.subr.bf16.mxu0 %v7337_v51  ;;  %v7379_v51 = vld [vmem:[%s9870_s1 + $0xe34] ss:$40 sps:$4 sm:$0xff]  }
 0x23f   :  { %4777 = vmatpush1.bf16.msra.mxu1 %v7332_v8  ;;  %v7377_v8 = vld [vmem:[%s9870_s1 + $0xe30] ss:$40 sps:$4 sm:$0xff]  }
 0x240   :  { %4883 = vmatpush1.bf16.msra.mxu0 %v7335_v17  ;;  %6268 = vmatprep.subr.bf16.mxu1 %v7434_v30  ;;  %v7382_v17 = vld [vmem:[%s9870_s1 + $0xe84] ss:$40 sps:$4 sm:$0xff]  }
 0x241   :  { %4905 = vmatprep.subr.bf16.mxu0 %v7340_v20  ;;  %v7380_v20 = vld [vmem:[%s9870_s1 + $0xe80] ss:$40 sps:$4 sm:$0xff]   ;;  %v7400_v30 = vld [vmem:[%s9870_s1 + $0x1064] ss:$40 sps:$4 sm:$0xff]  }
 0x242   :  { %4779 = vmatmul.mubr.bf16.vlgmr.msra.gmra.mrb[16].mxu1 %v8192_v57 }
 0x243   :  { %4885 = vmatmul.mubr.bf16.vlgmr.msra.gmra.mrb[16].mxu0 %v7726_v11  ;;  %4788 = vmatprep.mubr.bf16.mxu1 %v8206_v43  ;;  %v7349_v11 = vld [vmem:[%s9870_s1 + $0xb14] ss:$40 sps:$4 sm:$0xff]  }
 0x244   :  { %4906 = vmatpush1.bf16.msra.mxu0 %v7338_v22  ;;  %4894 = vmatprep.mubr.bf16.mxu0 %v7804_v37  ;;  %v7352_v37 = vld [vmem:[%s9870_s1 + $0xb64] ss:$40 sps:$4 sm:$0xff]   ;;  %v7385_v22 = vld [vmem:[%s9870_s1 + $0xed4] ss:$40 sps:$4 sm:$0xff]  }
 0x245   :  { %4907 = vmatprep.subr.bf16.mxu0 %v7343_v12  ;;  %6269 = vmatpush3.bf16.msra.mxu1 %v7435_v31  ;;  %v7383_v12 = vld [vmem:[%s9870_s1 + $0xed0] ss:$40 sps:$4 sm:$0xff]   ;;  %v7398_v31 = vld [vmem:[%s9870_s1 + $0x1060] ss:$40 sps:$4 sm:$0xff]  }
 0x248   :  { %4908 = vmatpush1.bf16.msra.mxu0 %v7341_v13  ;;  %v7388_v13 = vld [vmem:[%s9870_s1 + $0xf24] ss:$40 sps:$4 sm:$0xff]  }
 0x249   :  { %4909 = vmatprep.subr.bf16.mxu0 %v7346_v24  ;;  %v7386_v24 = vld [vmem:[%s9870_s1 + $0xf20] ss:$40 sps:$4 sm:$0xff]  }
 0x24a   :  { %4789 = vmatmul.mubr.bf16.gmra.mrb[20].mxu1 %v8224_v1 }
 0x24b   :  { %4895 = vmatmul.mubr.bf16.gmra.mrb[20].mxu0 %v7808_v39  ;;  %v7436_v39 = vld [vmem:[%s9872_s2 + $0x48] sm:$0xff]  }
 0x24c   :  { %4910 = vmatpush1.bf16.msra.mxu0 %v7344_v16  ;;  %4937 = vmatprep.mubr.bf16.mxu0 %v7844_v48  ;;  %v7437_v48 = vld [vmem:[%s9872_s2 + $0x8] sm:$0xff]   ;;  %v7391_v16 = vld [vmem:[%s9870_s1 + $0xf74] ss:$40 sps:$4 sm:$0xff]  }
 0x24d   :  { %4911 = vmatprep.subr.bf16.mxu0 %v7349_v11  ;;  %6270 = vmatprep.subr.bf16.mxu1 %v7436_v39  ;;  %v7389_v11 = vld [vmem:[%s9870_s1 + $0xf70] ss:$40 sps:$4 sm:$0xff]  }
 0x24e   :  { %6271 = vmatpush3.bf16.msra.mxu1 %v7437_v48  ;;  %v7446_v48 = vld [vmem:[%s9872_s2 + $0x70] sm:$0xff]  }
 0x24f   :  { %6272 = vmatprep.subr.bf16.mxu1 %v7438_v35 }
 0x250   :  { %4912 = vmatpush1.bf16.msra.mxu0 %v7347_v26  ;;  %v7394_v26 = vld [vmem:[%s9870_s1 + $0xfc4] ss:$40 sps:$4 sm:$0xff]  }
 0x251   :  { %4913 = vmatprep.subr.bf16.mxu0 %v7352_v37  ;;  %v7392_v37 = vld [vmem:[%s9870_s1 + $0xfc0] ss:$40 sps:$4 sm:$0xff]  }
 0x252   :  { %6273 = vmatpush3.bf16.msra.mxu1 %v7439_v44 }
 0x253   :  { %6274 = vmatprep.subr.bf16.mxu1 %v7440_v45 }
 0x254   :  { %4914 = vmatpush1.bf16.msra.mxu0 %v7350_v34  ;;  %v7406_v34 = vld [vmem:[%s9870_s1 + $0x1104] ss:$40 sps:$4 sm:$0xff]  }
 0x255   :  { %4915 = vmatprep.subr.bf16.mxu0 %v7355_v36  ;;  %v7447_v36 = vld [vmem:[%s9872_s2 + $0x30] sm:$0xff]  }
 0x256   :  { %6275 = vmatpush3.bf16.msra.mxu1 %v7441_v55  ;;  %v7409_v55 = vld [vmem:[%s9870_s1 + $0x1154] ss:$40 sps:$4 sm:$0xff]  }
 0x257   :  { %6276 = vmatprep.subr.bf16.mxu1 %v7442_v10 }
 0x258   :  { %4916 = vmatpush1.bf16.msra.mxu0 %v7353_v40  ;;  %v5011_v40 = vmul.f32 %v8895_v62, %v8895_v62 }
 0x259   :  { %4917 = vmatprep.subr.bf16.mxu0 %v7358_v46  ;;  %v7404_v46 = vld [vmem:[%s9870_s1 + $0x1100] ss:$40 sps:$4 sm:$0xff]  }
 0x25a   :  { %6277 = vmatpush3.bf16.msra.mxu1 %v7443_v59  ;;  %v7448_v59 = vld [vmem:[%s9872_s2 + $0x78] sm:$0xff]  }
 0x25b   :  { %6278 = vmatprep.subr.bf16.mxu1 %v7444_v41 }
 0x25c   :  { %4918 = vmatpush1.bf16.msra.mxu0 %v7356_v52 }
 0x25d   :  { %4919 = vmatprep.subr.bf16.mxu0 %v7361_v58  ;;  %v5016_v58 = vmul.f32 %v8907_v5, %v8907_v5  ;;  %v7412_v5 = vld [vmem:[%s9870_s1 + $0x11a4] ss:$40 sps:$4 sm:$0xff]  }
 0x25e   :  { %6279 = vmatpush3.bf16.msra.mxu1 %v7445_v61 }
 0x25f   :  { %6280 = vmatprep.subr.bf16.mxu1 %v7446_v48 }
 0x260   :  { %4920 = vmatpush1.bf16.msra.mxu0 %v7359_v60  ;;  %v7449_v60 = vld [vmem:[%s9872_s2 + $0x38] sm:$0xff]  }
 0x261   :  { %4921 = vmatprep.subr.bf16.mxu0 %v7364_v32  ;;  %v7407_v32 = vld [vmem:[%s9870_s1 + $0x1150] ss:$40 sps:$4 sm:$0xff]  }
 0x262   :  { %6281 = vmatpush3.bf16.msra.mxu1 %v7447_v36 }
 0x263   :  { %6282 = vmatprep.subr.bf16.mxu1 %v7448_v59 }
 0x264   :  { %4922 = vmatpush1.bf16.msra.mxu0 %v7362_v63 }
 0x265   :  { %4923 = vmatprep.subr.bf16.mxu0 %v7367_v2 }
 0x266   :  { %6283 = vmatpush3.bf16.msra.mxu1 %v7449_v60  ;;  %v7452_v60 = vld [vmem:[%s9872_s2 + $0xc8] sm:$0xff]  }
 0x268   :  { %4924 = vmatpush1.bf16.msra.mxu0 %v7365_v38  ;;  %v5021_v38 = vmul.f32 %v8931_v15, %v8931_v15 }
 0x269   :  { %4925 = vmatprep.subr.bf16.mxu0 %v7370_v3 }
 0x26c   :  { %4926 = vmatpush1.bf16.msra.mxu0 %v7368_v4 }
 0x26d   :  { %4927 = vmatprep.subr.bf16.mxu0 %v7373_v47  ;;  %v7410_v47 = vld [vmem:[%s9870_s1 + $0x11a0] ss:$40 sps:$4 sm:$0xff]  }
 0x270   :  { %4928 = vmatpush1.bf16.msra.mxu0 %v7371_v54 }
 0x271   :  { %4929 = vmatprep.subr.bf16.mxu0 %v7376_v50  ;;  %v7415_v50 = vld [vmem:[%s9870_s1 + $0x11f4] ss:$40 sps:$4 sm:$0xff]  }
 0x274   :  { %4930 = vmatpush1.bf16.msra.mxu0 %v7374_v6  ;;  %v5026_v6 = vmul.f32 %v8943_v23, %v8943_v23  ;;  %v7416_v23 = vld [vmem:[%s9870_s1 + $0x1240] ss:$40 sps:$4 sm:$0xff]  }
 0x275   :  { %4931 = vmatprep.subr.bf16.mxu0 %v7379_v51 }
 0x278   :  { %4932 = vmatpush1.bf16.msra.mxu0 %v7377_v8 }
 0x279   :  { %4933 = vmatprep.subr.bf16.mxu0 %v7382_v17  ;;  %v7413_v17 = vld [vmem:[%s9870_s1 + $0x11f0] ss:$40 sps:$4 sm:$0xff]  }
 0x27c   :  { %4934 = vmatpush1.bf16.msra.mxu0 %v7380_v20  ;;  %v7418_v20 = vld [vmem:[%s9870_s1 + $0x1244] ss:$40 sps:$4 sm:$0xff]  }
 0x27d   :  { %4935 = vmatprep.subr.bf16.mxu0 %v7385_v22 }
 0x280   :  { %4936 = vmatpush1.bf16.msra.mxu0 %v7383_v12  ;;  %v7450_v12 = vld [vmem:[%s9872_s2 + $0xc0] sm:$0xff]  }
 0x281   :  { %4958 = vmatprep.subr.bf16.mxu0 %v7388_v13  ;;  %v7421_v13 = vld [vmem:[%s9870_s1 + $0x1294] ss:$40 sps:$4 sm:$0xff]   ;;  %6296 = vmatprep.subr.bf16.mxu1 %v7450_v12 }
 0x282   :  { %v7457_v12 = vld [vmem:[%s9872_s2 + $0x98] sm:$0xff]  }
 0x283   :  { %4938 = vmatmul.mubr.bf16.vlgmr.msra.gmra.mrb[16].mxu0 %v7964_v27  ;;  %v7397_v27 = vld [vmem:[%s9870_s1 + $0x1014] ss:$40 sps:$4 sm:$0xff]  }
 0x284   :  { %4959 = vmatpush1.bf16.msra.mxu0 %v7386_v24  ;;  %4947 = vmatprep.mubr.bf16.mxu0 %v7978_v33  ;;  %v7395_v33 = vld [vmem:[%s9870_s1 + $0x1010] ss:$40 sps:$4 sm:$0xff]  }
 0x285   :  { %4960 = vmatprep.subr.bf16.mxu0 %v7391_v16  ;;  %v7419_v24 = vld [vmem:[%s9870_s1 + $0x1290] ss:$40 sps:$4 sm:$0xff]   ;;  %v7424_v16 = vld [vmem:[%s9870_s1 + $0x12e4] ss:$40 sps:$4 sm:$0xff]  }
 0x288   :  { %4961 = vmatpush1.bf16.msra.mxu0 %v7389_v11  ;;  %v7422_v11 = vld [vmem:[%s9870_s1 + $0x12e0] ss:$40 sps:$4 sm:$0xff]  }
 0x289   :  { %4962 = vmatprep.subr.bf16.mxu0 %v7394_v26  ;;  %v7427_v26 = vld [vmem:[%s9870_s1 + $0x1334] ss:$40 sps:$4 sm:$0xff]  }
 0x28b   :  { %4948 = vmatmul.mubr.bf16.gmra.mrb[20].mxu0 %v8001_v42  ;;  %v7403_v42 = vld [vmem:[%s9870_s1 + $0x10b4] ss:$40 sps:$4 sm:$0xff]  }
 0x28c   :  { %4963 = vmatpush1.bf16.msra.mxu0 %v7392_v37  ;;  %4990 = vmatprep.mubr.bf16.mxu0 %v8022_v49  ;;  %v7401_v49 = vld [vmem:[%s9870_s1 + $0x10b0] ss:$40 sps:$4 sm:$0xff]  }
 0x28d   :  { %4964 = vmatprep.subr.bf16.mxu0 %v7397_v27  ;;  %v7425_v37 = vld [vmem:[%s9870_s1 + $0x1330] ss:$40 sps:$4 sm:$0xff]   ;;  %v7430_v27 = vld [vmem:[%s9870_s1 + $0x1384] ss:$40 sps:$4 sm:$0xff]  }
 0x290   :  { %4965 = vmatpush1.bf16.msra.mxu0 %v7395_v33  ;;  %v7428_v33 = vld [vmem:[%s9870_s1 + $0x1380] ss:$40 sps:$4 sm:$0xff]  }
 0x291   :  { %4966 = vmatprep.subr.bf16.mxu0 %v7400_v30  ;;  %v7433_v30 = vld [vmem:[%s9870_s1 + $0x13d4] ss:$40 sps:$4 sm:$0xff]  }
 0x294   :  { %4967 = vmatpush1.bf16.msra.mxu0 %v7398_v31  ;;  %v7431_v31 = vld [vmem:[%s9870_s1 + $0x13d0] ss:$40 sps:$4 sm:$0xff]  }
 0x295   :  { %4968 = vmatprep.subr.bf16.mxu0 %v7403_v42 }
 0x296   :  { %v9630_v39 = vpop.f32.mrb[8].mxu0 }
 0x297   :  { %v4570_v35 = vpop.f32.mrb[9].mxu0 }
 0x298   :  { %v5031_v44 = vmul.f32 %v4570_v35, %v4570_v35  ;;  %v9640_v45 = vpop.f32.mrb[10].mxu0  ;;  %4969 = vmatpush1.bf16.msra.mxu0 %v7401_v49  ;;  %v5012_v49 = vmul.f32 %v8898_v0, %v8898_v0  ;;  %v5013_v35 = vmul.f32 %v9318_v9, %v9318_v9  ;;  %v7451_v9 = vld [vmem:[%s9872_s2 + $0x80] sm:$0xff]  }
 0x299   :  { %v4574_v52 = vpop.f32.mrb[11].mxu0  ;;  %4970 = vmatprep.subr.bf16.mxu0 %v7406_v34 }
 0x29a   :  { %v9650_v62 = vadd.f32 %v5031_v44, %v5011_v40  ;;  %v5036_v10 = vmul.f32 %v4574_v52, %v4574_v52  ;;  %v5017_v44 = vmul.f32 %v8916_v7, %v8916_v7 }
 0x29c   :  { %v9658_v41 = vadd.f32 %v5036_v10, %v5016_v58  ;;  %4971 = vmatpush1.bf16.msra.mxu0 %v7404_v46 }
 0x29d   :  { %4972 = vmatprep.subr.bf16.mxu0 %v7409_v55 }
 0x29e   :  { %v5071_v61 = vpack.c.bf16 %v9658_v41, %v9650_v62  ;;  %v9668_v63 = vpop.f32.mrb[12].mxu0  ;;  %v7454_v62 = vld [vmem:[%s9872_s2 + $0xd0] sm:$0xff]  }
 0x29f   :  { %v4580_v2 = vpop.f32.mrb[13].mxu0 }
 0x2a0   :  { %v5041_v3 = vmul.f32 %v4580_v2, %v4580_v2  ;;  %v9672_v4 = vpop.f32.mrb[14].mxu0  ;;  %4973 = vmatpush1.bf16.msra.mxu0 %v7407_v32  ;;  %v5023_v2 = vmul.f32 %v9350_v28, %v9350_v28  ;;  %v5028_v28 = vmul.f32 %v9354_v29, %v9354_v29  ;;  %v7456_v29 = vld [vmem:[%s9872_s2 + $0xd8] sm:$0xff]  }
 0x2a1   :  { %v4584_v54 = vpop.f32.mrb[15].mxu0  ;;  %4974 = vmatprep.subr.bf16.mxu0 %v7412_v5 }
 0x2a2   :  { %v9682_v51 = vadd.f32 %v5041_v3, %v5021_v38  ;;  %v5046_v15 = vmul.f32 %v4584_v54, %v4584_v54 }
 0x2a4   :  { %v9684_v8 = vadd.f32 %v5046_v15, %v5026_v6  ;;  %4975 = vmatpush1.bf16.msra.mxu0 %v7410_v47  ;;  %v5027_v47 = vmul.f32 %v8952_v25, %v8952_v25 }
 0x2a5   :  { %4976 = vmatprep.subr.bf16.mxu0 %v7415_v50 }
 0x2a6   :  { %v5076_v22 = vpack.c.bf16 %v9684_v8, %v9682_v51  ;;  %v7460_v51 = vld [vmem:[%s9872_s2 + $0xe8] sm:$0xff]  }
 0x2a7   :  { %v7461_v8 = vld [vmem:[%s9872_s2 + $0xa8] sm:$0xff]  }
 0x2a8   :  { %4977 = vmatpush1.bf16.msra.mxu0 %v7413_v17 }
 0x2a9   :  { %4978 = vmatprep.subr.bf16.mxu0 %v7418_v20  ;;  %v7455_v20 = vld [vmem:[%s9872_s2 + $0x90] sm:$0xff]  }
 0x2ac   :  { %4979 = vmatpush1.bf16.msra.mxu0 %v7416_v23 }
 0x2ad   :  { %4980 = vmatprep.subr.bf16.mxu0 %v7421_v13  ;;  %v7458_v13 = vld [vmem:[%s9872_s2 + $0xe0] sm:$0xff]  }
 0x2b0   :  { %4981 = vmatpush1.bf16.msra.mxu0 %v7419_v24  ;;  %v7459_v24 = vld [vmem:[%s9872_s2 + $0xa0] sm:$0xff]  }
 0x2b1   :  { %4982 = vmatprep.subr.bf16.mxu0 %v7424_v16  ;;  %v7463_v16 = vld [vmem:[%s9872_s2 + $0xb0] sm:$0xff]  }
 0x2b4   :  { %4983 = vmatpush1.bf16.msra.mxu0 %v7422_v11  ;;  %v7464_v11 = vld [vmem:[%s9872_s2 + $0xf8] sm:$0xff]  }
 0x2b5   :  { %4984 = vmatprep.subr.bf16.mxu0 %v7427_v26  ;;  %v7465_v26 = vld [vmem:[%s9872_s2 + $0xb8] sm:$0xff]  }
 0x2b8   :  { %4985 = vmatpush1.bf16.msra.mxu0 %v7425_v37  ;;  %v7466_v37 = vld [vmem:[%s9872_s2 + $0x100] sm:$0xff]  }
 0x2b9   :  { %4986 = vmatprep.subr.bf16.mxu0 %v7430_v27 }
 0x2bc   :  { %4987 = vmatpush1.bf16.msra.mxu0 %v7428_v33  ;;  %v5014_v33 = vmul.f32 %v9320_v56, %v9320_v56 }
 0x2bd   :  { %4988 = vmatprep.subr.bf16.mxu0 %v7433_v30 }
 0x2c0   :  { %4989 = vmatpush1.bf16.msra.mxu0 %v7431_v31 }
 0x2c3   :  { %4991 = vmatmul.mubr.bf16.vlgmr.msra.gmra.mrb[16].mxu0 %v8192_v57 }
 0x2c4   :  { %5000 = vmatprep.mubr.bf16.mxu0 %v8206_v43  ;;  %v5018_v43 = vmul.f32 %v9322_v14, %v9322_v14  ;;  %v5022_v14 = vmul.f32 %v8934_v18, %v8934_v18  ;;  %v7453_v18 = vld [vmem:[%s9872_s2 + $0x88] sm:$0xff]  }
 0x2cb   :  { %5001 = vmatmul.mubr.bf16.gmra.mrb[20].mxu0 %v8224_v1 }
 0x315   :  { %v4780_v42 = vpop.f32.mrb[16].mxu1 }
 0x316   :  { %v5032_v34 = vmul.f32 %v4780_v42, %v4780_v42  ;;  %v4782_v48 = vpop.f32.mrb[17].mxu1  ;;  %v5015_v42 = vmul.f32 %v9630_v39, %v9630_v39  ;;  %v7467_v39 = vld [vmem:[%s9872_s2 + $0x108] sm:$0xff]  }
 0x317   :  { %v5033_v36 = vmul.f32 %v4782_v48, %v4782_v48  ;;  %v4784_v40 = vpop.f32.mrb[18].mxu1  ;;  %v5019_v48 = vmul.f32 %v9330_v21, %v9330_v21  ;;  %v5024_v21 = vmul.f32 %v9352_v19, %v9352_v19  ;;  %v5030_v19 = vmul.f32 %v9672_v4, %v9672_v4  ;;  %v7470_v4 = vld [vmem:[%s9872_s2 + $0x120] sm:$0xff]  }
 0x318   :  { %v5052_v46 = vadd.f32 %v5032_v34, %v5012_v49  ;;  %v5037_v57 = vmul.f32 %v4784_v40, %v4784_v40  ;;  %v4786_v52 = vpop.f32.mrb[19].mxu1 }
 0x319   :  { %v9741_v1 = vadd.f32 %v5033_v36, %v5013_v35  ;;  %v5038_v55 = vmul.f32 %v4786_v52, %v4786_v52 }
 0x31a   :  { %v5057_v0 = vadd.f32 %v5037_v57, %v5017_v44  ;;  %v5020_v44 = vmul.f32 %v9640_v45, %v9640_v45  ;;  %v5025_v45 = vmul.f32 %v9668_v63, %v9668_v63  ;;  %v7468_v63 = vld [vmem:[%s9872_s2 + $0x110] sm:$0xff]  }
 0x31b   :  { %v9743_v58 = vadd.f32 %v5038_v55, %v5018_v43 }
 0x31c   :  { %v5072_v10 = vpack.c.bf16 %v5057_v0, %v5052_v46 }
 0x31d   :  { %v5073_v7 = vpack.c.bf16 %v9743_v58, %v9741_v1  ;;  %v4790_v59 = vpop.f32.mrb[20].mxu1 }
 0x31e   :  { %v5042_v32 = vmul.f32 %v4790_v59, %v4790_v59  ;;  %v4792_v5 = vpop.f32.mrb[21].mxu1  ;;  %5433 = vmatprep.mubr.bf16.mxu1 %v5072_v10 }
 0x31f   :  { %v5043_v38 = vmul.f32 %v4792_v5, %v4792_v5  ;;  %v4794_v3 = vpop.f32.mrb[22].mxu1  ;;  %5434 = vmatmul.mubr.bf16.vlgmr.msra.gmra.mrb[24].mxu1 %v5071_v61 }
 0x320   :  { %v5062_v54 = vadd.f32 %v5042_v32, %v5022_v14  ;;  %v5047_v50 = vmul.f32 %v4794_v3, %v4794_v3  ;;  %v4796_v6 = vpop.f32.mrb[23].mxu1  ;;  %6297 = vmatpush3.bf16.msra.mxu1 %v7451_v9  ;;  %v5029_v14 = vmul.f32 %v9362_v53, %v9362_v53  ;;  %v7469_v53 = vld [vmem:[%s9872_s2 + $0x118] sm:$0xff]  }
 0x321   :  { %v9767_v15 = vadd.f32 %v5043_v38, %v5023_v2  ;;  %v5048_v17 = vmul.f32 %v4796_v6, %v4796_v6  ;;  %6298 = vmatprep.subr.bf16.mxu1 %v7452_v60  ;;  %v7473_v6 = vld [vmem:[%s9872_s2 + $0x138] sm:$0xff]  }
 0x322   :  { %v5067_v25 = vadd.f32 %v5047_v50, %v5027_v47  ;;  %v7472_v50 = vld [vmem:[%s9872_s2 + $0x130] sm:$0xff]  }
 0x323   :  { %v9772_v41 = vadd.f32 %v5048_v17, %v5028_v28 }
 0x324   :  { %v5077_v61 = vpack.c.bf16 %v5067_v25, %v5062_v54  ;;  %6299 = vmatpush3.bf16.msra.mxu1 %v7453_v18  ;;  %v7471_v54 = vld [vmem:[%s9872_s2 + $0x128] sm:$0xff]  }
 0x325   :  { %6300 = vmatprep.subr.bf16.mxu1 %v7454_v62  ;;  %v5078_v23 = vpack.c.bf16 %v9772_v41, %v9767_v15 }
 0x326   :  { %5441 = vmatprep.mubr.bf16.mxu1 %v5077_v61 }
 0x327   :  { %5442 = vmatmul.mubr.bf16.gmra.mrb[28].mxu1 %v5076_v22  ;;  %v7462_v22 = vld [vmem:[%s9872_s2 + $0xf0] sm:$0xff]  }
 0x328   :  { %6301 = vmatpush3.bf16.msra.mxu1 %v7455_v20 }
 0x329   :  { %6302 = vmatprep.subr.bf16.mxu1 %v7456_v29 }
 0x32c   :  { %6303 = vmatpush3.bf16.msra.mxu1 %v7457_v12 }
 0x32d   :  { %6304 = vmatprep.subr.bf16.mxu1 %v7458_v13 }
 0x330   :  { %6305 = vmatpush3.bf16.msra.mxu1 %v7459_v24 }
 0x331   :  { %6306 = vmatprep.subr.bf16.mxu1 %v7460_v51 }
 0x334   :  { %6307 = vmatpush3.bf16.msra.mxu1 %v7461_v8 }
 0x335   :  { %6308 = vmatprep.subr.bf16.mxu1 %v7462_v22 }
 0x338   :  { %6309 = vmatpush3.bf16.msra.mxu1 %v7463_v16 }
 0x339   :  { %6310 = vmatprep.subr.bf16.mxu1 %v7464_v11 }
 0x33c   :  { %6311 = vmatpush3.bf16.msra.mxu1 %v7465_v26 }
 0x33d   :  { %6334 = vmatprep.subr.bf16.mxu1 %v7466_v37 }
 0x396   :  { %v4992_v27 = vpop.f32.mrb[16].mxu0 }
 0x397   :  { %v5034_v30 = vmul.f32 %v4992_v27, %v4992_v27  ;;  %v4994_v31 = vpop.f32.mrb[17].mxu0 }
 0x398   :  { %v5035_v49 = vmul.f32 %v4994_v31, %v4994_v31  ;;  %v4996_v34 = vpop.f32.mrb[18].mxu0 }
 0x399   :  { %v5054_v35 = vadd.f32 %v5034_v30, %v5014_v33  ;;  %v5039_v36 = vmul.f32 %v4996_v34, %v4996_v34  ;;  %v4998_v40 = vpop.f32.mrb[19].mxu0 }
 0x39a   :  { %v5055_v46 = vadd.f32 %v5035_v49, %v5015_v42  ;;  %v5040_v57 = vmul.f32 %v4998_v40, %v4998_v40 }
 0x39b   :  { %v5059_v52 = vadd.f32 %v5039_v36, %v5019_v48 }
 0x39c   :  { %v5060_v56 = vadd.f32 %v5040_v57, %v5020_v44 }
 0x39d   :  { %v5074_v43 = vpack.c.bf16 %v5059_v52, %v5054_v35 }
 0x39e   :  { %v5002_v55 = vpop.f32.mrb[20].mxu0  ;;  %v5075_v0 = vpack.c.bf16 %v5060_v56, %v5055_v46 }
 0x39f   :  { %v5044_v10 = vmul.f32 %v5002_v55, %v5002_v55  ;;  %v5004_v9 = vpop.f32.mrb[21].mxu0  ;;  %5482 = vmatprep.mubr.bf16.mxu1 %v5074_v43 }
 0x3a0   :  { %v5045_v59 = vmul.f32 %v5004_v9, %v5004_v9  ;;  %v5006_v60 = vpop.f32.mrb[22].mxu0  ;;  %5483 = vmatmul.mubr.bf16.vlgmr.msra.gmra.mrb[32].mxu1 %v5073_v7 }
 0x3a1   :  { %v5064_v32 = vadd.f32 %v5044_v10, %v5024_v21  ;;  %v5049_v5 = vmul.f32 %v5006_v60, %v5006_v60  ;;  %6335 = vmatpush3.bf16.msra.mxu1 %v7466_v37  ;;  %v5008_v2 = vpop.f32.mrb[23].mxu0 }
 0x3a2   :  { %v5065_v38 = vadd.f32 %v5045_v59, %v5025_v45  ;;  %v5050_v3 = vmul.f32 %v5008_v2, %v5008_v2  ;;  %6336 = vmatprep.subr.bf16.mxu1 %v7467_v39 }
 0x3a3   :  { %v5069_v47 = vadd.f32 %v5049_v5, %v5029_v14 }
 0x3a4   :  { %v5070_v1 = vadd.f32 %v5050_v3, %v5030_v19 }
 0x3a5   :  { %6337 = vmatpush3.bf16.msra.mxu1 %v7467_v39  ;;  %v5079_v58 = vpack.c.bf16 %v5069_v47, %v5064_v32 }
 0x3a6   :  { %v5080_v7 = vpack.c.bf16 %v5070_v1, %v5065_v38  ;;  %6338 = vmatprep.subr.bf16.mxu1 %v7468_v63 }
 0x3a7   :  { %5490 = vmatprep.mubr.bf16.mxu1 %v5079_v58 }
 0x3a8   :  { %5491 = vmatmul.mubr.bf16.gmra.mrb[36].mxu1 %v5078_v23 }
 0x3a9   :  { %6339 = vmatpush3.bf16.msra.mxu1 %v7468_v63  ;;  %6350 = vmatprep.mubr.bf16.mxu1 %v5075_v0 }
 0x3aa   :  { %6340 = vmatprep.subr.bf16.mxu1 %v7469_v53 }
 0x3ad   :  { %6341 = vmatpush3.bf16.msra.mxu1 %v7469_v53 }
 0x3ae   :  { %6342 = vmatprep.subr.bf16.mxu1 %v7470_v4 }
 0x3b1   :  { %6343 = vmatpush3.bf16.msra.mxu1 %v7470_v4 }
 0x3b2   :  { %6344 = vmatprep.subr.bf16.mxu1 %v7471_v54 }
 0x3b5   :  { %6345 = vmatpush3.bf16.msra.mxu1 %v7471_v54 }
 0x3b6   :  { %6346 = vmatprep.subr.bf16.mxu1 %v7472_v50 }
 0x3b9   :  { %6347 = vmatpush3.bf16.msra.mxu1 %v7472_v50 }
 0x3ba   :  { %6348 = vmatprep.subr.bf16.mxu1 %v7473_v6 }
 0x3bd   :  { %6349 = vmatpush3.bf16.msra.mxu1 %v7473_v6 }
 0x3c0   :  { %6351 = vmatmul.mubr.bf16.vlgmr.msra.gmra.mrb[40].mxu1 %v5080_v7 }
 0x3f2   :  { %v6284_v18 = vpop.f32.mrb[24].mxu1 }
 0x3f3   :  { %v6285_v28 = vpop.f32.mrb[25].mxu1 }
 0x3f4   :  { %v6286_v15 = vadd.f32 %v6285_v28, %v6284_v18  ;;  %v6287_v17 = vpop.f32.mrb[26].mxu1 }
 0x3f5   :  { %v6288_v62 = vpop.f32.mrb[27].mxu1 }
 0x3f6   :  { %v6289_v25 = vadd.f32 %v6288_v62, %v6287_v17 }
 0x3fa   :  { %v6290_v41 = vpop.f32.mrb[28].mxu1 }
 0x3fb   :  { %v6291_v61 = vpop.f32.mrb[29].mxu1 }
 0x3fc   :  { %v6292_v20 = vadd.f32 %v6291_v61, %v6290_v41  ;;  %v6293_v29 = vpop.f32.mrb[30].mxu1 }
 0x3fd   :  { %v6294_v23 = vpop.f32.mrb[31].mxu1 }
 0x3fe   :  { %v6295_v12 = vadd.f32 %v6294_v23, %v6293_v29 }
 0x473   :  { %v6312_v13 = vpop.f32.mrb[32].mxu1 }
 0x474   :  { %v6313_v24 = vpop.f32.mrb[33].mxu1 }
 0x475   :  { %v6314_v51 = vadd.f32 %v6313_v24, %v6312_v13  ;;  %v6315_v8 = vpop.f32.mrb[34].mxu1 }
 0x476   :  { %v6316_v22 = vpop.f32.mrb[35].mxu1 }
 0x477   :  { %v6317_v16 = vadd.f32 %v6316_v22, %v6315_v8  ;;  %v5485_v11 = vadd.f32 %v6314_v51, %v6286_v15 }
 0x479   :  { %v5488_v26 = vadd.f32 %v6317_v16, %v6289_v25 }
 0x47b   :  { %v6318_v37 = vpop.f32.mrb[36].mxu1 }
 0x47c   :  { %v6319_v27 = vpop.f32.mrb[37].mxu1 }
 0x47d   :  { %v6320_v33 = vadd.f32 %v6319_v27, %v6318_v37  ;;  %v6321_v30 = vpop.f32.mrb[38].mxu1 }
 0x47e   :  { %v6322_v31 = vpop.f32.mrb[39].mxu1 }
 0x47f   :  { %v6323_v42 = vadd.f32 %v6322_v31, %v6321_v30  ;;  %v5493_v49 = vadd.f32 %v6320_v33, %v6292_v20 }
 0x481   :  { %v5496_v34 = vadd.f32 %v6323_v42, %v6295_v12 }
 0x493   :  { %v6352_v48 = vpop.f32.mrb[40].mxu1 }
 0x494   :  { %v5542_v35 = vadd.f32 %v6352_v48, %v5493_v49  ;;  %v5533_v36 = vpop.f32.mrb[41].mxu1 }
 0x495   :  { %v5534_v40 = vadd.f32 %v5533_v36, %v5485_v11  ;;  %v6353_v44 = vpop.f32.mrb[42].mxu1 }
 0x496   :  { %v5550_v46 = vmax.f32 %v5542_v35, 1e-10  ;;  %v5545_v57 = vadd.f32 %v6353_v44, %v5496_v34  ;;  %v5536_v52 = vpop.f32.mrb[43].mxu1 }
 0x497   :  { %v5548_v56 = vmax.f32 %v5534_v40, 1e-10  ;;  %v5537_v43 = vadd.f32 %v5536_v52, %v5488_v26 }
 0x498   :  { %7474 = vlog2.f32 %v5550_v46  ;;  %v5551_v55 = vmax.f32 %v5545_v57, 1e-10 }
 0x499   :  { %7476 = vlog2.f32 %v5548_v56  ;;  %v5549_v39 = vmax.f32 %v5537_v43, 1e-10 }
 0x49a   :  { %7478 = vlog2.f32 %v5551_v55 }
 0x49b   :  { %7480 = vlog2.f32 %v5549_v39 }
 0x4a2   :  { %v7475_v0 = vpop.eup %7474 }
 0x4a3   :  { %v7477_v21 = vpop.eup %7476  ;;  %v5557_v10 = vmul.f32 0.6931472, %v7475_v0 }
 0x4a4   :  { %v7479_v9 = vpop.eup %7478  ;;  %v5553_v45 = vmul.f32 0.6931472, %v7477_v21 }
 0x4a5   :  { %v7481_v59 = vpop.eup %7480  ;;  %v5562_v60 = vmul.f32 4.3429446, %v5557_v10  ;;  %v5559_v14 = vmul.f32 0.6931472, %v7479_v9 }
 0x4a6   :  { %v5560_v32 = vmul.f32 4.3429446, %v5553_v45  ;;  %v5555_v5 = vmul.f32 0.6931472, %v7481_v59 }
 0x4a7   :  { %5566 = vst [vmem:[%s9873_s3 + $0x10] sm:$0xff] %v5562_v60  ;;  %v5563_v2 = vmul.f32 4.3429446, %v5559_v14 }
 0x4a8   :  { %5564 = vst [vmem:[%s9873_s3] sm:$0xff] %v5560_v32  ;;  %v5561_v19 = vmul.f32 4.3429446, %v5555_v5 }
 0x4a9   :  { %5567 = vst [vmem:[%s9873_s3 + $0x18] sm:$0xff] %v5563_v2 }
 0x4aa   :  { %5565 = vst [vmem:[%s9873_s3 + $0x8] sm:$0xff] %v5561_v19 }

</bundles_post_ra>
